<compile_context>
chip_gen: v7x
topology: tpu7x:2x2x1
jax: 0.10.0
libtpu: 0.0.40
codegen_flags: <defaults>
</compile_context>

<pallas_src>
import functools

import jax
import jax.numpy as jnp
from jax.experimental import pallas as pl
from jax.experimental.pallas import tpu as pltpu


def _round8(n):
    return (n + 7) // 8 * 8


def _parity_sel(npool, width):
    """0/1 selection matrices: SE picks even rows, SO picks odd rows."""
    j = jax.lax.broadcasted_iota(jnp.int32, (npool, width), 0)
    k = jax.lax.broadcasted_iota(jnp.int32, (npool, width), 1)
    se = (k == 2 * j).astype(jnp.float32)
    so = (k == 2 * j + 1).astype(jnp.float32)
    return se, so


# ----------------------------------------------------------------------------
# Fused kernel: conv1+pool -> conv2+pool -> conv3 -> avgpool -> feat / pred
# ----------------------------------------------------------------------------
def _fused_kernel(x1_ref, w1_ref, b1_ref, w2_ref, b2_ref, w3_ref, b3_ref,
                  hw1_ref, hb1_ref, hw2_ref, hb2_ref, pvec_ref,
                  feat_ref, pred_ref,
                  s1p, y2s, s2p,
                  *, H1, W1):
    f32 = jnp.float32
    H2, W2 = H1 // 2, W1 // 2          # spatial after pool1
    H3, W3 = H2 // 2, W2 // 2          # spatial after pool2
    W2P, W3P = W2 + 2, W3 + 2          # padded (flattened) row widths
    M2, M3 = H2 * W2P, H3 * W3P

    # Zero the padded next-layer-input scratches (their zero borders ARE the
    # conv padding).  Scratch persists across grid steps -> re-zero every step.
    s1p[...] = jnp.zeros(s1p.shape, s1p.dtype)
    s2p[...] = jnp.zeros(s2p.shape, s2p.dtype)

    # --- layer 1: conv3x3(Cin->C1) + foldedBN + ReLU + maxpool2, strip-fused -
    # x1 rows are ordered (hp, dy, parity, w2): one 2-input-row band per pooled
    # row, even/odd output columns split into four aligned contiguous groups.
    w1 = w1_ref[...]                               # (9*Cin, C1) bf16
    b1 = b1_ref[...]                               # (1, C1)     f32
    band = 4 * W2                                  # = 2 * W1 rows per pooled row
    for hp in range(H2):
        lhs = x1_ref[0, pl.ds(hp * band, band), :]                 # (band, 9*Cin)
        y = jnp.dot(lhs, w1, preferred_element_type=f32)
        y = jnp.maximum(y + b1, 0.0)                               # (band, C1)
        pr = jnp.maximum(
            jnp.maximum(y[0 * W2:1 * W2, :], y[1 * W2:2 * W2, :]),
            jnp.maximum(y[2 * W2:3 * W2, :], y[3 * W2:4 * W2, :])) # (W2, C1)
        # pooled row hp -> padded row hp+1, cols 1..W2 of the flat scratch
        s1p[pl.ds((hp + 1) * W2P + 1, W2), :] = pr

    # --- layer 2: conv3x3(C1->C2) + foldedBN + ReLU (shift-trick on s1p) -----
    c2 = w2_ref.shape[2]
    acc = jnp.zeros((M2, c2), f32)
    for tap in range(9):                           # consecutive acc += dot
        sh = (tap // 3) * W2P + (tap % 3)
        lhs = s1p[pl.ds(sh, M2), :].astype(jnp.bfloat16)
        acc = acc + jnp.dot(lhs, w2_ref[tap], preferred_element_type=f32)
    y2s[...] = jnp.maximum(acc + b2_ref[...], 0.0)                 # (M2, C2)

    # maxpool2 on the flat activation; the 2 junk columns (w = W2, W2+1) of
    # each flat row are never read.
    se2, so2 = _parity_sel(W3, W2)
    for hp in range(H3):
        r0 = y2s[pl.ds((2 * hp) * W2P, W2), :]                     # row 2hp
        r1 = y2s[pl.ds((2 * hp + 1) * W2P, W2), :]                 # row 2hp+1
        rv = jnp.maximum(r0, r1)                                   # (W2, C2)
        pr = jnp.maximum(jnp.dot(se2, rv, preferred_element_type=f32),
                         jnp.dot(so2, rv, preferred_element_type=f32))  # (W3, C2)
        s2p[pl.ds((hp + 1) * W3P + 1, W3), :] = pr

    # --- layer 3: conv3x3(C2->C3) + foldedBN + ReLU --------------------------
    c3 = w3_ref.shape[2]
    acc3 = jnp.zeros((M3, c3), f32)
    for tap in range(9):
        sh = (tap // 3) * W3P + (tap % 3)
        lhs = s2p[pl.ds(sh, M3), :].astype(jnp.bfloat16)
        acc3 = acc3 + jnp.dot(lhs, w3_ref[tap], preferred_element_type=f32)
    y3 = jnp.maximum(acc3 + b3_ref[...], 0.0)                      # (M3, C3)

    # --- head: masked global avg-pool (as a matmul) + feat / classifier ------
    pooled = jnp.dot(pvec_ref[...], y3, preferred_element_type=f32)  # (1, C3)

    # feat = F.normalize(pooled, p=2, dim=1), eps = 1e-12
    nrm = jnp.sqrt(jnp.sum(pooled * pooled, axis=1, keepdims=True))
    feat_ref[0] = pooled / jnp.maximum(nrm, 1e-12)

    # classifier on the UN-normalized pooled feature (matches PyTorch forward)
    h = jnp.dot(pooled.astype(jnp.bfloat16), hw1_ref[...],
                preferred_element_type=f32)
    h = jnp.maximum(h + hb1_ref[...], 0.0)                         # Linear+BN1d+ReLU
    pred_ref[0] = (jnp.dot(h.astype(jnp.bfloat16), hw2_ref[...],
                           preferred_element_type=f32) + hb2_ref[...])


# ----------------------------------------------------------------------------
# XLA-side prep (tiny input only): pad + im2col + parity row permutation
# ----------------------------------------------------------------------------
def _build_layer1_im2col(x_nhwc):
    B, H, W, C = x_nhwc.shape
    xp = jnp.pad(x_nhwc, ((0, 0), (1, 1), (1, 1), (0, 0)))
    taps = [xp[:, dy:dy + H, dx:dx + W, :] for dy in range(3) for dx in range(3)]
    pat = jnp.concatenate(taps, axis=-1)                       # (B, H, W, 9C)
    # reorder rows to (hp, dy, parity, w2) so the in-kernel 2x2 max pool reads
    # four aligned contiguous row groups per pooled row.
    pat = pat.reshape(B, H // 2, 2, W // 2, 2, 9 * C)
    pat = jnp.transpose(pat, (0, 1, 2, 4, 3, 5))
    return pat.reshape(B, H * W, 9 * C).astype(jnp.bfloat16)


# ----------------------------------------------------------------------------
# Full forward
# ----------------------------------------------------------------------------
@jax.jit
def feat_embedder_forward(x_nchw, params):
    x = jnp.transpose(x_nchw, (0, 2, 3, 1))                    # NCHW -> NHWC f32
    B, H, W, Cin = x.shape
    assert H % 4 == 0 and W % 4 == 0, "two MaxPool2d(2) stages need H,W % 4 == 0"
    H2, W2 = H // 2, W // 2
    H3, W3 = H2 // 2, W2 // 2
    W2P, W3P = W2 + 2, W3 + 2
    M1, M2, M3 = H * W, H2 * W2P, H3 * W3P

    c1 = params['conv1_w'].shape[1]
    c2 = params['conv2_w'].shape[2]
    c3 = params['conv3_w'].shape[2]
    ep = params['head_w1'].shape[1]

    x1 = _build_layer1_im2col(x)                               # (B, M1, 9*Cin) bf16

    # avg-pool weights over the flat layer-3 output (junk columns masked out)
    pvec = (((jnp.arange(M3) % W3P) < W3).astype(jnp.float32)
            / float(H3 * W3)).reshape(1, M3)

    kernel = functools.partial(_fused_kernel, H1=H, W1=W)
    feat3, pred3 = pl.pallas_call(
        kernel,
        out_shape=(
            jax.ShapeDtypeStruct((B, 1, c3), jnp.float32),
            jax.ShapeDtypeStruct((B, 1, 128), jnp.float32),
        ),
        grid_spec=pltpu.PrefetchScalarGridSpec(
            num_scalar_prefetch=0,
            grid=(B,),
            in_specs=[
                pl.BlockSpec((1, M1, 9 * Cin), lambda b: (b, 0, 0)),   # im2col input
                pl.BlockSpec((9 * Cin, c1), lambda b: (0, 0)),         # conv1 w
                pl.BlockSpec((1, c1), lambda b: (0, 0)),               # conv1 bias
                pl.BlockSpec((9, c1, c2), lambda b: (0, 0, 0)),        # conv2 w
                pl.BlockSpec((1, c2), lambda b: (0, 0)),               # conv2 bias
                pl.BlockSpec((9, c2, c3), lambda b: (0, 0, 0)),        # conv3 w
                pl.BlockSpec((1, c3), lambda b: (0, 0)),               # conv3 bias
                pl.BlockSpec((c3, ep), lambda b: (0, 0)),              # head w1
                pl.BlockSpec((1, ep), lambda b: (0, 0)),               # head b1
                pl.BlockSpec((ep, 128), lambda b: (0, 0)),             # head w2 (padded)
                pl.BlockSpec((1, 128), lambda b: (0, 0)),              # head b2 (padded)
                pl.BlockSpec((1, M3), lambda b: (0, 0)),               # avg-pool vector
            ],
            out_specs=(
                pl.BlockSpec((1, 1, c3), lambda b: (b, 0, 0)),
                pl.BlockSpec((1, 1, 128), lambda b: (b, 0, 0)),
            ),
            scratch_shapes=[
                pltpu.VMEM((_round8((H2 + 3) * W2P), c1), jnp.float32),  # padded in2
                pltpu.VMEM((M2, c2), jnp.float32),                        # conv2 out
                pltpu.VMEM((_round8((H3 + 3) * W3P), c2), jnp.float32),  # padded in3
            ],
        ),
        compiler_params=pltpu.CompilerParams(
            dimension_semantics=("parallel",),
        ),
    )(x1,
      params['conv1_w'], params['conv1_b'],
      params['conv2_w'], params['conv2_b'],
      params['conv3_w'], params['conv3_b'],
      params['head_w1'], params['head_b1'],
      params['head_w2'], params['head_b2'],
      pvec)

    return feat3[:, 0, :], pred3[:, 0, :2]


# ----------------------------------------------------------------------------
# Parameter construction (deterministic, synthetic; BN eval-mode folded)
# ----------------------------------------------------------------------------
def _fold_bn(gamma, beta, mean, var, eps=1e-5):
    scale = gamma / jnp.sqrt(var + eps)
    return scale, beta - mean * scale


def make_params(key, in_channels, embed_size):
    ks = jax.random.split(key, 32)
    it = iter(range(32))

    def nrm(shape, std):
        return std * jax.random.normal(ks[next(it)], shape, jnp.float32)

    def bn(c):
        gamma = 1.0 + 0.1 * jax.random.normal(ks[next(it)], (c,), jnp.float32)
        beta = 0.1 * jax.random.normal(ks[next(it)], (c,), jnp.float32)
        mean = 0.1 * jax.random.normal(ks[next(it)], (c,), jnp.float32)
        var = 1.0 + 0.1 * jnp.abs(jax.random.normal(ks[next(it)], (c,), jnp.float32))
        return _fold_bn(gamma, beta, mean, var)

    def conv_folded(w_oihw, bn_sb, flat):
        scale, bias = bn_sb
        cout, cin = w_oihw.shape[0], w_oihw.shape[1]
        w = jnp.transpose(w_oihw, (2, 3, 1, 0)) * scale[None, None, None, :]
        w = w.reshape(9 * cin, cout) if flat else w.reshape(9, cin, cout)
        return w.astype(jnp.bfloat16), bias.reshape(1, cout).astype(jnp.float32)

    p = {}
    # conv stack: Cin -> 128 -> 256 -> 512 (BN scale folded into bf16 weights)
    p['conv1_w'], p['conv1_b'] = conv_folded(
        nrm((128, in_channels, 3, 3), 1.0 / jnp.sqrt(9.0 * in_channels)), bn(128), True)
    p['conv2_w'], p['conv2_b'] = conv_folded(
        nrm((256, 128, 3, 3), 1.0 / jnp.sqrt(9.0 * 128)), bn(256), False)
    p['conv3_w'], p['conv3_b'] = conv_folded(
        nrm((512, 256, 3, 3), 1.0 / jnp.sqrt(9.0 * 256)), bn(512), False)

    # classifier: Linear(512, E) + BN1d(E) + ReLU + Linear(E, 2); E lane-padded
    E = embed_size
    EP = max(128, _round8(E) if E <= 128 else ((E + 127) // 128) * 128)
    w1 = nrm((E, 512), 1.0 / jnp.sqrt(512.0))
    b1 = nrm((E,), 0.05)
    s_bn, b_bn = bn(E)
    hw1 = jnp.zeros((512, EP), jnp.float32).at[:, :E].set(jnp.transpose(w1) * s_bn[None, :])
    hb1 = jnp.zeros((1, EP), jnp.float32).at[0, :E].set(b1 * s_bn + b_bn)
    w2 = nrm((2, E), 1.0 / jnp.sqrt(float(E)))
    b2 = nrm((2,), 0.05)
    hw2 = jnp.zeros((EP, 128), jnp.float32).at[:E, :2].set(jnp.transpose(w2))
    hb2 = jnp.zeros((1, 128), jnp.float32).at[0, :2].set(b2)

    p['head_w1'] = hw1.astype(jnp.bfloat16)
    p['head_b1'] = hb1
    p['head_w2'] = hw2.astype(jnp.bfloat16)
    p['head_b2'] = hb2
    return p


if __name__ == "__main__":
    # Small shapes consistent with FeatEmbedder(embed_size=32, in_channels=16)
    B, Cin, H, W = 2, 16, 16, 16
    embed_size = 32

    key = jax.random.PRNGKey(0)
    kx, kp = jax.random.split(key)
    x = jax.random.normal(kx, (B, Cin, H, W), jnp.float32)      # PyTorch-style NCHW
    params = make_params(kp, Cin, embed_size)

    feat, pred = feat_embedder_forward(x, params)
    jax.block_until_ready((feat, pred))

    assert feat.shape == (B, 512) and pred.shape == (B, 2)
    assert bool(jnp.all(jnp.isfinite(feat))) and bool(jnp.all(jnp.isfinite(pred)))
    # feat rows should be unit-norm (L2-normalized)
    assert bool(jnp.all(jnp.abs(jnp.sum(feat.astype(jnp.float32) ** 2, axis=1) - 1.0) < 1e-2))
    print("KERNEL_OK")
</pallas_src>

<mosaic_0001>
module attributes {stable_mosaic.version = 11 : i64} {
  func.func @_fused_kernel(%arg0: i32, %arg1: memref<1x256x144xbf16, #tpu.memory_space<vmem>>, %arg2: memref<144x128xbf16, #tpu.memory_space<vmem>>, %arg3: memref<1x128xf32, #tpu.memory_space<vmem>>, %arg4: memref<9x128x256xbf16, #tpu.memory_space<vmem>>, %arg5: memref<1x256xf32, #tpu.memory_space<vmem>>, %arg6: memref<9x256x512xbf16, #tpu.memory_space<vmem>>, %arg7: memref<1x512xf32, #tpu.memory_space<vmem>>, %arg8: memref<512x128xbf16, #tpu.memory_space<vmem>>, %arg9: memref<1x128xf32, #tpu.memory_space<vmem>>, %arg10: memref<128x128xbf16, #tpu.memory_space<vmem>>, %arg11: memref<1x128xf32, #tpu.memory_space<vmem>>, %arg12: memref<1x24xf32, #tpu.memory_space<vmem>>, %arg13: memref<1x1x512xf32, #tpu.memory_space<vmem>>, %arg14: memref<1x1x128xf32, #tpu.memory_space<vmem>>, %arg15: memref<112x128xf32, #tpu.memory_space<vmem>>, %arg16: memref<80x256xf32, #tpu.memory_space<vmem>>, %arg17: memref<48x256xf32, #tpu.memory_space<vmem>>) attributes {dimension_semantics = [#tpu.dimension_semantics<parallel>], iteration_bounds = array<i64: 2>, scalar_prefetch = 0 : i64, scratch_operands = 3 : i64, tpu.core_type = #tpu.core_type<tc>, window_params = [{transform_indices = @transform_0, window_bounds = array<i64: 1, 256, 144>}, {pipeline_mode = #tpu.pipeline_mode<synchronous>, transform_indices = @transform_1, window_bounds = array<i64: 144, 128>}, {pipeline_mode = #tpu.pipeline_mode<synchronous>, transform_indices = @transform_2, window_bounds = array<i64: 1, 128>}, {pipeline_mode = #tpu.pipeline_mode<synchronous>, transform_indices = @transform_3, window_bounds = array<i64: 9, 128, 256>}, {pipeline_mode = #tpu.pipeline_mode<synchronous>, transform_indices = @transform_4, window_bounds = array<i64: 1, 256>}, {pipeline_mode = #tpu.pipeline_mode<synchronous>, transform_indices = @transform_5, window_bounds = array<i64: 9, 256, 512>}, {pipeline_mode = #tpu.pipeline_mode<synchronous>, transform_indices = @transform_6, window_bounds = array<i64: 1, 512>}, {pipeline_mode = #tpu.pipeline_mode<synchronous>, transform_indices = @transform_7, window_bounds = array<i64: 512, 128>}, {pipeline_mode = #tpu.pipeline_mode<synchronous>, transform_indices = @transform_8, window_bounds = array<i64: 1, 128>}, {pipeline_mode = #tpu.pipeline_mode<synchronous>, transform_indices = @transform_9, window_bounds = array<i64: 128, 128>}, {pipeline_mode = #tpu.pipeline_mode<synchronous>, transform_indices = @transform_10, window_bounds = array<i64: 1, 128>}, {pipeline_mode = #tpu.pipeline_mode<synchronous>, transform_indices = @transform_11, window_bounds = array<i64: 1, 24>}, {transform_indices = @transform_12, window_bounds = array<i64: 1, 1, 512>}, {transform_indices = @transform_13, window_bounds = array<i64: 1, 1, 128>}]} {
    %cst = arith.constant 0.000000e+00 : f32
    %0 = vector.broadcast %cst : f32 to vector<112x128xf32>
    %c0 = arith.constant 0 : index
    %c0_0 = arith.constant 0 : index
    %1 = vector.load %arg15[%c0, %c0_0] : memref<112x128xf32, #tpu.memory_space<vmem>>, vector<112x128xf32>
    tpu.vector_store %arg15[%c0, %c0_0], %0 {strides = array<i32>} : memref<112x128xf32, #tpu.memory_space<vmem>>, vector<112x128xf32>,
    %cst_1 = arith.constant 0.000000e+00 : f32
    %2 = vector.broadcast %cst_1 : f32 to vector<48x256xf32>
    %c0_2 = arith.constant 0 : index
    %c0_3 = arith.constant 0 : index
    %3 = vector.load %arg17[%c0_2, %c0_3] : memref<48x256xf32, #tpu.memory_space<vmem>>, vector<48x256xf32>
    tpu.vector_store %arg17[%c0_2, %c0_3], %2 {strides = array<i32>} : memref<48x256xf32, #tpu.memory_space<vmem>>, vector<48x256xf32>,
    %c0_4 = arith.constant 0 : index
    %c0_5 = arith.constant 0 : index
    %4 = vector.load %arg2[%c0_4, %c0_5] : memref<144x128xbf16, #tpu.memory_space<vmem>>, vector<144x128xbf16>
    %c0_6 = arith.constant 0 : index
    %c0_7 = arith.constant 0 : index
    %5 = vector.load %arg3[%c0_6, %c0_7] : memref<1x128xf32, #tpu.memory_space<vmem>>, vector<1x128xf32>
    %c0_8 = arith.constant 0 : index
    %c0_9 = arith.constant 0 : index
    %c0_10 = arith.constant 0 : index
    %6 = vector.load %arg1[%c0_8, %c0_9, %c0_10] : memref<1x256x144xbf16, #tpu.memory_space<vmem>>, vector<1x32x144xbf16>
    %7 = vector.shape_cast %6 : vector<1x32x144xbf16> to vector<32x144xbf16>
    %cst_11 = arith.constant dense<0.000000e+00> : vector<32x128xf32>
    %8 = tpu.matmul %7, %4, %cst_11 {dimension_numbers = #tpu.dot_dimension_numbers<[1], [0], [0], [1], [0, 0, 1, 1], [], []>} : vector<32x144xbf16>, vector<144x128xbf16>, vector<32x128xf32> -> vector<32x128xf32>
    %9 = vector.broadcast %5 : vector<1x128xf32> to vector<32x128xf32>
    %10 = arith.addf %8, %9 : vector<32x128xf32>
    %cst_12 = arith.constant 0.000000e+00 : f32
    %11 = vector.broadcast %cst_12 : f32 to vector<32x128xf32>
    %12 = arith.maximumf %10, %11 : vector<32x128xf32>
    %13 = vector.extract_strided_slice %12 {offsets = [0, 0], sizes = [8, 128], strides = [1, 1]} : vector<32x128xf32> to vector<8x128xf32>
    %14 = vector.extract_strided_slice %12 {offsets = [8, 0], sizes = [8, 128], strides = [1, 1]} : vector<32x128xf32> to vector<8x128xf32>
    %15 = arith.maximumf %13, %14 : vector<8x128xf32>
    %16 = vector.extract_strided_slice %12 {offsets = [16, 0], sizes = [8, 128], strides = [1, 1]} : vector<32x128xf32> to vector<8x128xf32>
    %17 = vector.extract_strided_slice %12 {offsets = [24, 0], sizes = [8, 128], strides = [1, 1]} : vector<32x128xf32> to vector<8x128xf32>
    %18 = arith.maximumf %16, %17 : vector<8x128xf32>
    %19 = arith.maximumf %15, %18 : vector<8x128xf32>
    %c11 = arith.constant 11 : index
    %c0_13 = arith.constant 0 : index
    %20 = vector.load %arg15[%c11, %c0_13] : memref<112x128xf32, #tpu.memory_space<vmem>>, vector<8x128xf32>
    tpu.vector_store %arg15[%c11, %c0_13], %19 {strides = array<i32>} : memref<112x128xf32, #tpu.memory_space<vmem>>, vector<8x128xf32>,
    %c0_14 = arith.constant 0 : index
    %c32 = arith.constant 32 : index
    %c0_15 = arith.constant 0 : index
    %21 = vector.load %arg1[%c0_14, %c32, %c0_15] : memref<1x256x144xbf16, #tpu.memory_space<vmem>>, vector<1x32x144xbf16>
    %22 = vector.shape_cast %21 : vector<1x32x144xbf16> to vector<32x144xbf16>
    %cst_16 = arith.constant dense<0.000000e+00> : vector<32x128xf32>
    %23 = tpu.matmul %22, %4, %cst_16 {dimension_numbers = #tpu.dot_dimension_numbers<[1], [0], [0], [1], [0, 0, 1, 1], [], []>} : vector<32x144xbf16>, vector<144x128xbf16>, vector<32x128xf32> -> vector<32x128xf32>
    %24 = vector.broadcast %5 : vector<1x128xf32> to vector<32x128xf32>
    %25 = arith.addf %23, %24 : vector<32x128xf32>
    %cst_17 = arith.constant 0.000000e+00 : f32
    %26 = vector.broadcast %cst_17 : f32 to vector<32x128xf32>
    %27 = arith.maximumf %25, %26 : vector<32x128xf32>
    %28 = vector.extract_strided_slice %27 {offsets = [0, 0], sizes = [8, 128], strides = [1, 1]} : vector<32x128xf32> to vector<8x128xf32>
    %29 = vector.extract_strided_slice %27 {offsets = [8, 0], sizes = [8, 128], strides = [1, 1]} : vector<32x128xf32> to vector<8x128xf32>
    %30 = arith.maximumf %28, %29 : vector<8x128xf32>
    %31 = vector.extract_strided_slice %27 {offsets = [16, 0], sizes = [8, 128], strides = [1, 1]} : vector<32x128xf32> to vector<8x128xf32>
    %32 = vector.extract_strided_slice %27 {offsets = [24, 0], sizes = [8, 128], strides = [1, 1]} : vector<32x128xf32> to vector<8x128xf32>
    %33 = arith.maximumf %31, %32 : vector<8x128xf32>
    %34 = arith.maximumf %30, %33 : vector<8x128xf32>
    %c21 = arith.constant 21 : index
    %c0_18 = arith.constant 0 : index
    %35 = vector.load %arg15[%c21, %c0_18] : memref<112x128xf32, #tpu.memory_space<vmem>>, vector<8x128xf32>
    tpu.vector_store %arg15[%c21, %c0_18], %34 {strides = array<i32>} : memref<112x128xf32, #tpu.memory_space<vmem>>, vector<8x128xf32>,
    %c0_19 = arith.constant 0 : index
    %c64 = arith.constant 64 : index
    %c0_20 = arith.constant 0 : index
    %36 = vector.load %arg1[%c0_19, %c64, %c0_20] : memref<1x256x144xbf16, #tpu.memory_space<vmem>>, vector<1x32x144xbf16>
    %37 = vector.shape_cast %36 : vector<1x32x144xbf16> to vector<32x144xbf16>
    %cst_21 = arith.constant dense<0.000000e+00> : vector<32x128xf32>
    %38 = tpu.matmul %37, %4, %cst_21 {dimension_numbers = #tpu.dot_dimension_numbers<[1], [0], [0], [1], [0, 0, 1, 1], [], []>} : vector<32x144xbf16>, vector<144x128xbf16>, vector<32x128xf32> -> vector<32x128xf32>
    %39 = vector.broadcast %5 : vector<1x128xf32> to vector<32x128xf32>
    %40 = arith.addf %38, %39 : vector<32x128xf32>
    %cst_22 = arith.constant 0.000000e+00 : f32
    %41 = vector.broadcast %cst_22 : f32 to vector<32x128xf32>
    %42 = arith.maximumf %40, %41 : vector<32x128xf32>
    %43 = vector.extract_strided_slice %42 {offsets = [0, 0], sizes = [8, 128], strides = [1, 1]} : vector<32x128xf32> to vector<8x128xf32>
    %44 = vector.extract_strided_slice %42 {offsets = [8, 0], sizes = [8, 128], strides = [1, 1]} : vector<32x128xf32> to vector<8x128xf32>
    %45 = arith.maximumf %43, %44 : vector<8x128xf32>
    %46 = vector.extract_strided_slice %42 {offsets = [16, 0], sizes = [8, 128], strides = [1, 1]} : vector<32x128xf32> to vector<8x128xf32>
    %47 = vector.extract_strided_slice %42 {offsets = [24, 0], sizes = [8, 128], strides = [1, 1]} : vector<32x128xf32> to vector<8x128xf32>
    %48 = arith.maximumf %46, %47 : vector<8x128xf32>
    %49 = arith.maximumf %45, %48 : vector<8x128xf32>
    %c31 = arith.constant 31 : index
    %c0_23 = arith.constant 0 : index
    %50 = vector.load %arg15[%c31, %c0_23] : memref<112x128xf32, #tpu.memory_space<vmem>>, vector<8x128xf32>
    tpu.vector_store %arg15[%c31, %c0_23], %49 {strides = array<i32>} : memref<112x128xf32, #tpu.memory_space<vmem>>, vector<8x128xf32>,
    %c0_24 = arith.constant 0 : index
    %c96 = arith.constant 96 : index
    %c0_25 = arith.constant 0 : index
    %51 = vector.load %arg1[%c0_24, %c96, %c0_25] : memref<1x256x144xbf16, #tpu.memory_space<vmem>>, vector<1x32x144xbf16>
    %52 = vector.shape_cast %51 : vector<1x32x144xbf16> to vector<32x144xbf16>
    %cst_26 = arith.constant dense<0.000000e+00> : vector<32x128xf32>
    %53 = tpu.matmul %52, %4, %cst_26 {dimension_numbers = #tpu.dot_dimension_numbers<[1], [0], [0], [1], [0, 0, 1, 1], [], []>} : vector<32x144xbf16>, vector<144x128xbf16>, vector<32x128xf32> -> vector<32x128xf32>
    %54 = vector.broadcast %5 : vector<1x128xf32> to vector<32x128xf32>
    %55 = arith.addf %53, %54 : vector<32x128xf32>
    %cst_27 = arith.constant 0.000000e+00 : f32
    %56 = vector.broadcast %cst_27 : f32 to vector<32x128xf32>
    %57 = arith.maximumf %55, %56 : vector<32x128xf32>
    %58 = vector.extract_strided_slice %57 {offsets = [0, 0], sizes = [8, 128], strides = [1, 1]} : vector<32x128xf32> to vector<8x128xf32>
    %59 = vector.extract_strided_slice %57 {offsets = [8, 0], sizes = [8, 128], strides = [1, 1]} : vector<32x128xf32> to vector<8x128xf32>
    %60 = arith.maximumf %58, %59 : vector<8x128xf32>
    %61 = vector.extract_strided_slice %57 {offsets = [16, 0], sizes = [8, 128], strides = [1, 1]} : vector<32x128xf32> to vector<8x128xf32>
    %62 = vector.extract_strided_slice %57 {offsets = [24, 0], sizes = [8, 128], strides = [1, 1]} : vector<32x128xf32> to vector<8x128xf32>
    %63 = arith.maximumf %61, %62 : vector<8x128xf32>
    %64 = arith.maximumf %60, %63 : vector<8x128xf32>
    %c41 = arith.constant 41 : index
    %c0_28 = arith.constant 0 : index
    %65 = vector.load %arg15[%c41, %c0_28] : memref<112x128xf32, #tpu.memory_space<vmem>>, vector<8x128xf32>
    tpu.vector_store %arg15[%c41, %c0_28], %64 {strides = array<i32>} : memref<112x128xf32, #tpu.memory_space<vmem>>, vector<8x128xf32>,
    %c0_29 = arith.constant 0 : index
    %c128 = arith.constant 128 : index
    %c0_30 = arith.constant 0 : index
    %66 = vector.load %arg1[%c0_29, %c128, %c0_30] : memref<1x256x144xbf16, #tpu.memory_space<vmem>>, vector<1x32x144xbf16>
    %67 = vector.shape_cast %66 : vector<1x32x144xbf16> to vector<32x144xbf16>
    %cst_31 = arith.constant dense<0.000000e+00> : vector<32x128xf32>
    %68 = tpu.matmul %67, %4, %cst_31 {dimension_numbers = #tpu.dot_dimension_numbers<[1], [0], [0], [1], [0, 0, 1, 1], [], []>} : vector<32x144xbf16>, vector<144x128xbf16>, vector<32x128xf32> -> vector<32x128xf32>
    %69 = vector.broadcast %5 : vector<1x128xf32> to vector<32x128xf32>
    %70 = arith.addf %68, %69 : vector<32x128xf32>
    %cst_32 = arith.constant 0.000000e+00 : f32
    %71 = vector.broadcast %cst_32 : f32 to vector<32x128xf32>
    %72 = arith.maximumf %70, %71 : vector<32x128xf32>
    %73 = vector.extract_strided_slice %72 {offsets = [0, 0], sizes = [8, 128], strides = [1, 1]} : vector<32x128xf32> to vector<8x128xf32>
    %74 = vector.extract_strided_slice %72 {offsets = [8, 0], sizes = [8, 128], strides = [1, 1]} : vector<32x128xf32> to vector<8x128xf32>
    %75 = arith.maximumf %73, %74 : vector<8x128xf32>
    %76 = vector.extract_strided_slice %72 {offsets = [16, 0], sizes = [8, 128], strides = [1, 1]} : vector<32x128xf32> to vector<8x128xf32>
    %77 = vector.extract_strided_slice %72 {offsets = [24, 0], sizes = [8, 128], strides = [1, 1]} : vector<32x128xf32> to vector<8x128xf32>
    %78 = arith.maximumf %76, %77 : vector<8x128xf32>
    %79 = arith.maximumf %75, %78 : vector<8x128xf32>
    %c51 = arith.constant 51 : index
    %c0_33 = arith.constant 0 : index
    %80 = vector.load %arg15[%c51, %c0_33] : memref<112x128xf32, #tpu.memory_space<vmem>>, vector<8x128xf32>
    tpu.vector_store %arg15[%c51, %c0_33], %79 {strides = array<i32>} : memref<112x128xf32, #tpu.memory_space<vmem>>, vector<8x128xf32>,
    %c0_34 = arith.constant 0 : index
    %c160 = arith.constant 160 : index
    %c0_35 = arith.constant 0 : index
    %81 = vector.load %arg1[%c0_34, %c160, %c0_35] : memref<1x256x144xbf16, #tpu.memory_space<vmem>>, vector<1x32x144xbf16>
    %82 = vector.shape_cast %81 : vector<1x32x144xbf16> to vector<32x144xbf16>
    %cst_36 = arith.constant dense<0.000000e+00> : vector<32x128xf32>
    %83 = tpu.matmul %82, %4, %cst_36 {dimension_numbers = #tpu.dot_dimension_numbers<[1], [0], [0], [1], [0, 0, 1, 1], [], []>} : vector<32x144xbf16>, vector<144x128xbf16>, vector<32x128xf32> -> vector<32x128xf32>
    %84 = vector.broadcast %5 : vector<1x128xf32> to vector<32x128xf32>
    %85 = arith.addf %83, %84 : vector<32x128xf32>
    %cst_37 = arith.constant 0.000000e+00 : f32
    %86 = vector.broadcast %cst_37 : f32 to vector<32x128xf32>
    %87 = arith.maximumf %85, %86 : vector<32x128xf32>
    %88 = vector.extract_strided_slice %87 {offsets = [0, 0], sizes = [8, 128], strides = [1, 1]} : vector<32x128xf32> to vector<8x128xf32>
    %89 = vector.extract_strided_slice %87 {offsets = [8, 0], sizes = [8, 128], strides = [1, 1]} : vector<32x128xf32> to vector<8x128xf32>
    %90 = arith.maximumf %88, %89 : vector<8x128xf32>
    %91 = vector.extract_strided_slice %87 {offsets = [16, 0], sizes = [8, 128], strides = [1, 1]} : vector<32x128xf32> to vector<8x128xf32>
    %92 = vector.extract_strided_slice %87 {offsets = [24, 0], sizes = [8, 128], strides = [1, 1]} : vector<32x128xf32> to vector<8x128xf32>
    %93 = arith.maximumf %91, %92 : vector<8x128xf32>
    %94 = arith.maximumf %90, %93 : vector<8x128xf32>
    %c61 = arith.constant 61 : index
    %c0_38 = arith.constant 0 : index
    %95 = vector.load %arg15[%c61, %c0_38] : memref<112x128xf32, #tpu.memory_space<vmem>>, vector<8x128xf32>
    tpu.vector_store %arg15[%c61, %c0_38], %94 {strides = array<i32>} : memref<112x128xf32, #tpu.memory_space<vmem>>, vector<8x128xf32>,
    %c0_39 = arith.constant 0 : index
    %c192 = arith.constant 192 : index
    %c0_40 = arith.constant 0 : index
    %96 = vector.load %arg1[%c0_39, %c192, %c0_40] : memref<1x256x144xbf16, #tpu.memory_space<vmem>>, vector<1x32x144xbf16>
    %97 = vector.shape_cast %96 : vector<1x32x144xbf16> to vector<32x144xbf16>
    %cst_41 = arith.constant dense<0.000000e+00> : vector<32x128xf32>
    %98 = tpu.matmul %97, %4, %cst_41 {dimension_numbers = #tpu.dot_dimension_numbers<[1], [0], [0], [1], [0, 0, 1, 1], [], []>} : vector<32x144xbf16>, vector<144x128xbf16>, vector<32x128xf32> -> vector<32x128xf32>
    %99 = vector.broadcast %5 : vector<1x128xf32> to vector<32x128xf32>
    %100 = arith.addf %98, %99 : vector<32x128xf32>
    %cst_42 = arith.constant 0.000000e+00 : f32
    %101 = vector.broadcast %cst_42 : f32 to vector<32x128xf32>
    %102 = arith.maximumf %100, %101 : vector<32x128xf32>
    %103 = vector.extract_strided_slice %102 {offsets = [0, 0], sizes = [8, 128], strides = [1, 1]} : vector<32x128xf32> to vector<8x128xf32>
    %104 = vector.extract_strided_slice %102 {offsets = [8, 0], sizes = [8, 128], strides = [1, 1]} : vector<32x128xf32> to vector<8x128xf32>
    %105 = arith.maximumf %103, %104 : vector<8x128xf32>
    %106 = vector.extract_strided_slice %102 {offsets = [16, 0], sizes = [8, 128], strides = [1, 1]} : vector<32x128xf32> to vector<8x128xf32>
    %107 = vector.extract_strided_slice %102 {offsets = [24, 0], sizes = [8, 128], strides = [1, 1]} : vector<32x128xf32> to vector<8x128xf32>
    %108 = arith.maximumf %106, %107 : vector<8x128xf32>
    %109 = arith.maximumf %105, %108 : vector<8x128xf32>
    %c71 = arith.constant 71 : index
    %c0_43 = arith.constant 0 : index
    %110 = vector.load %arg15[%c71, %c0_43] : memref<112x128xf32, #tpu.memory_space<vmem>>, vector<8x128xf32>
    tpu.vector_store %arg15[%c71, %c0_43], %109 {strides = array<i32>} : memref<112x128xf32, #tpu.memory_space<vmem>>, vector<8x128xf32>,
    %c0_44 = arith.constant 0 : index
    %c224 = arith.constant 224 : index
    %c0_45 = arith.constant 0 : index
    %111 = vector.load %arg1[%c0_44, %c224, %c0_45] : memref<1x256x144xbf16, #tpu.memory_space<vmem>>, vector<1x32x144xbf16>
    %112 = vector.shape_cast %111 : vector<1x32x144xbf16> to vector<32x144xbf16>
    %cst_46 = arith.constant dense<0.000000e+00> : vector<32x128xf32>
    %113 = tpu.matmul %112, %4, %cst_46 {dimension_numbers = #tpu.dot_dimension_numbers<[1], [0], [0], [1], [0, 0, 1, 1], [], []>} : vector<32x144xbf16>, vector<144x128xbf16>, vector<32x128xf32> -> vector<32x128xf32>
    %114 = vector.broadcast %5 : vector<1x128xf32> to vector<32x128xf32>
    %115 = arith.addf %113, %114 : vector<32x128xf32>
    %cst_47 = arith.constant 0.000000e+00 : f32
    %116 = vector.broadcast %cst_47 : f32 to vector<32x128xf32>
    %117 = arith.maximumf %115, %116 : vector<32x128xf32>
    %118 = vector.extract_strided_slice %117 {offsets = [0, 0], sizes = [8, 128], strides = [1, 1]} : vector<32x128xf32> to vector<8x128xf32>
    %119 = vector.extract_strided_slice %117 {offsets = [8, 0], sizes = [8, 128], strides = [1, 1]} : vector<32x128xf32> to vector<8x128xf32>
    %120 = arith.maximumf %118, %119 : vector<8x128xf32>
    %121 = vector.extract_strided_slice %117 {offsets = [16, 0], sizes = [8, 128], strides = [1, 1]} : vector<32x128xf32> to vector<8x128xf32>
    %122 = vector.extract_strided_slice %117 {offsets = [24, 0], sizes = [8, 128], strides = [1, 1]} : vector<32x128xf32> to vector<8x128xf32>
    %123 = arith.maximumf %121, %122 : vector<8x128xf32>
    %124 = arith.maximumf %120, %123 : vector<8x128xf32>
    %c81 = arith.constant 81 : index
    %c0_48 = arith.constant 0 : index
    %125 = vector.load %arg15[%c81, %c0_48] : memref<112x128xf32, #tpu.memory_space<vmem>>, vector<8x128xf32>
    tpu.vector_store %arg15[%c81, %c0_48], %124 {strides = array<i32>} : memref<112x128xf32, #tpu.memory_space<vmem>>, vector<8x128xf32>,
    %cst_49 = arith.constant 0.000000e+00 : f32
    %126 = vector.broadcast %cst_49 : f32 to vector<80x256xf32>
    %c0_50 = arith.constant 0 : index
    %c0_51 = arith.constant 0 : index
    %127 = vector.load %arg15[%c0_50, %c0_51] : memref<112x128xf32, #tpu.memory_space<vmem>>, vector<80x128xf32>
    %128 = arith.truncf %127 : vector<80x128xf32> to vector<80x128xbf16>
    %c0_52 = arith.constant 0 : index
    %c0_53 = arith.constant 0 : index
    %c0_54 = arith.constant 0 : index
    %129 = vector.load %arg4[%c0_52, %c0_53, %c0_54] : memref<9x128x256xbf16, #tpu.memory_space<vmem>>, vector<1x128x256xbf16>
    %130 = vector.shape_cast %129 : vector<1x128x256xbf16> to vector<128x256xbf16>
    %cst_55 = arith.constant dense<0.000000e+00> : vector<80x256xf32>
    %131 = tpu.matmul %128, %130, %cst_55 {dimension_numbers = #tpu.dot_dimension_numbers<[1], [0], [0], [1], [0, 0, 1, 1], [], []>} : vector<80x128xbf16>, vector<128x256xbf16>, vector<80x256xf32> -> vector<80x256xf32>
    %132 = arith.addf %126, %131 : vector<80x256xf32>
    %c1 = arith.constant 1 : index
    %c0_56 = arith.constant 0 : index
    %133 = vector.load %arg15[%c1, %c0_56] : memref<112x128xf32, #tpu.memory_space<vmem>>, vector<80x128xf32>
    %134 = arith.truncf %133 : vector<80x128xf32> to vector<80x128xbf16>
    %c1_57 = arith.constant 1 : index
    %c0_58 = arith.constant 0 : index
    %c0_59 = arith.constant 0 : index
    %135 = vector.load %arg4[%c1_57, %c0_58, %c0_59] : memref<9x128x256xbf16, #tpu.memory_space<vmem>>, vector<1x128x256xbf16>
    %136 = vector.shape_cast %135 : vector<1x128x256xbf16> to vector<128x256xbf16>
    %cst_60 = arith.constant dense<0.000000e+00> : vector<80x256xf32>
    %137 = tpu.matmul %134, %136, %cst_60 {dimension_numbers = #tpu.dot_dimension_numbers<[1], [0], [0], [1], [0, 0, 1, 1], [], []>} : vector<80x128xbf16>, vector<128x256xbf16>, vector<80x256xf32> -> vector<80x256xf32>
    %138 = arith.addf %132, %137 : vector<80x256xf32>
    %c2 = arith.constant 2 : index
    %c0_61 = arith.constant 0 : index
    %139 = vector.load %arg15[%c2, %c0_61] : memref<112x128xf32, #tpu.memory_space<vmem>>, vector<80x128xf32>
    %140 = arith.truncf %139 : vector<80x128xf32> to vector<80x128xbf16>
    %c2_62 = arith.constant 2 : index
    %c0_63 = arith.constant 0 : index
    %c0_64 = arith.constant 0 : index
    %141 = vector.load %arg4[%c2_62, %c0_63, %c0_64] : memref<9x128x256xbf16, #tpu.memory_space<vmem>>, vector<1x128x256xbf16>
    %142 = vector.shape_cast %141 : vector<1x128x256xbf16> to vector<128x256xbf16>
    %cst_65 = arith.constant dense<0.000000e+00> : vector<80x256xf32>
    %143 = tpu.matmul %140, %142, %cst_65 {dimension_numbers = #tpu.dot_dimension_numbers<[1], [0], [0], [1], [0, 0, 1, 1], [], []>} : vector<80x128xbf16>, vector<128x256xbf16>, vector<80x256xf32> -> vector<80x256xf32>
    %144 = arith.addf %138, %143 : vector<80x256xf32>
    %c10 = arith.constant 10 : index
    %c0_66 = arith.constant 0 : index
    %145 = vector.load %arg15[%c10, %c0_66] : memref<112x128xf32, #tpu.memory_space<vmem>>, vector<80x128xf32>
    %146 = arith.truncf %145 : vector<80x128xf32> to vector<80x128xbf16>
    %c3 = arith.constant 3 : index
    %c0_67 = arith.constant 0 : index
    %c0_68 = arith.constant 0 : index
    %147 = vector.load %arg4[%c3, %c0_67, %c0_68] : memref<9x128x256xbf16, #tpu.memory_space<vmem>>, vector<1x128x256xbf16>
    %148 = vector.shape_cast %147 : vector<1x128x256xbf16> to vector<128x256xbf16>
    %cst_69 = arith.constant dense<0.000000e+00> : vector<80x256xf32>
    %149 = tpu.matmul %146, %148, %cst_69 {dimension_numbers = #tpu.dot_dimension_numbers<[1], [0], [0], [1], [0, 0, 1, 1], [], []>} : vector<80x128xbf16>, vector<128x256xbf16>, vector<80x256xf32> -> vector<80x256xf32>
    %150 = arith.addf %144, %149 : vector<80x256xf32>
    %c11_70 = arith.constant 11 : index
    %c0_71 = arith.constant 0 : index
    %151 = vector.load %arg15[%c11_70, %c0_71] : memref<112x128xf32, #tpu.memory_space<vmem>>, vector<80x128xf32>
    %152 = arith.truncf %151 : vector<80x128xf32> to vector<80x128xbf16>
    %c4 = arith.constant 4 : index
    %c0_72 = arith.constant 0 : index
    %c0_73 = arith.constant 0 : index
    %153 = vector.load %arg4[%c4, %c0_72, %c0_73] : memref<9x128x256xbf16, #tpu.memory_space<vmem>>, vector<1x128x256xbf16>
    %154 = vector.shape_cast %153 : vector<1x128x256xbf16> to vector<128x256xbf16>
    %cst_74 = arith.constant dense<0.000000e+00> : vector<80x256xf32>
    %155 = tpu.matmul %152, %154, %cst_74 {dimension_numbers = #tpu.dot_dimension_numbers<[1], [0], [0], [1], [0, 0, 1, 1], [], []>} : vector<80x128xbf16>, vector<128x256xbf16>, vector<80x256xf32> -> vector<80x256xf32>
    %156 = arith.addf %150, %155 : vector<80x256xf32>
    %c12 = arith.constant 12 : index
    %c0_75 = arith.constant 0 : index
    %157 = vector.load %arg15[%c12, %c0_75] : memref<112x128xf32, #tpu.memory_space<vmem>>, vector<80x128xf32>
    %158 = arith.truncf %157 : vector<80x128xf32> to vector<80x128xbf16>
    %c5 = arith.constant 5 : index
    %c0_76 = arith.constant 0 : index
    %c0_77 = arith.constant 0 : index
    %159 = vector.load %arg4[%c5, %c0_76, %c0_77] : memref<9x128x256xbf16, #tpu.memory_space<vmem>>, vector<1x128x256xbf16>
    %160 = vector.shape_cast %159 : vector<1x128x256xbf16> to vector<128x256xbf16>
    %cst_78 = arith.constant dense<0.000000e+00> : vector<80x256xf32>
    %161 = tpu.matmul %158, %160, %cst_78 {dimension_numbers = #tpu.dot_dimension_numbers<[1], [0], [0], [1], [0, 0, 1, 1], [], []>} : vector<80x128xbf16>, vector<128x256xbf16>, vector<80x256xf32> -> vector<80x256xf32>
    %162 = arith.addf %156, %161 : vector<80x256xf32>
    %c20 = arith.constant 20 : index
    %c0_79 = arith.constant 0 : index
    %163 = vector.load %arg15[%c20, %c0_79] : memref<112x128xf32, #tpu.memory_space<vmem>>, vector<80x128xf32>
    %164 = arith.truncf %163 : vector<80x128xf32> to vector<80x128xbf16>
    %c6 = arith.constant 6 : index
    %c0_80 = arith.constant 0 : index
    %c0_81 = arith.constant 0 : index
    %165 = vector.load %arg4[%c6, %c0_80, %c0_81] : memref<9x128x256xbf16, #tpu.memory_space<vmem>>, vector<1x128x256xbf16>
    %166 = vector.shape_cast %165 : vector<1x128x256xbf16> to vector<128x256xbf16>
    %cst_82 = arith.constant dense<0.000000e+00> : vector<80x256xf32>
    %167 = tpu.matmul %164, %166, %cst_82 {dimension_numbers = #tpu.dot_dimension_numbers<[1], [0], [0], [1], [0, 0, 1, 1], [], []>} : vector<80x128xbf16>, vector<128x256xbf16>, vector<80x256xf32> -> vector<80x256xf32>
    %168 = arith.addf %162, %167 : vector<80x256xf32>
    %c21_83 = arith.constant 21 : index
    %c0_84 = arith.constant 0 : index
    %169 = vector.load %arg15[%c21_83, %c0_84] : memref<112x128xf32, #tpu.memory_space<vmem>>, vector<80x128xf32>
    %170 = arith.truncf %169 : vector<80x128xf32> to vector<80x128xbf16>
    %c7 = arith.constant 7 : index
    %c0_85 = arith.constant 0 : index
    %c0_86 = arith.constant 0 : index
    %171 = vector.load %arg4[%c7, %c0_85, %c0_86] : memref<9x128x256xbf16, #tpu.memory_space<vmem>>, vector<1x128x256xbf16>
    %172 = vector.shape_cast %171 : vector<1x128x256xbf16> to vector<128x256xbf16>
    %cst_87 = arith.constant dense<0.000000e+00> : vector<80x256xf32>
    %173 = tpu.matmul %170, %172, %cst_87 {dimension_numbers = #tpu.dot_dimension_numbers<[1], [0], [0], [1], [0, 0, 1, 1], [], []>} : vector<80x128xbf16>, vector<128x256xbf16>, vector<80x256xf32> -> vector<80x256xf32>
    %174 = arith.addf %168, %173 : vector<80x256xf32>
    %c22 = arith.constant 22 : index
    %c0_88 = arith.constant 0 : index
    %175 = vector.load %arg15[%c22, %c0_88] : memref<112x128xf32, #tpu.memory_space<vmem>>, vector<80x128xf32>
    %176 = arith.truncf %175 : vector<80x128xf32> to vector<80x128xbf16>
    %c8 = arith.constant 8 : index
    %c0_89 = arith.constant 0 : index
    %c0_90 = arith.constant 0 : index
    %177 = vector.load %arg4[%c8, %c0_89, %c0_90] : memref<9x128x256xbf16, #tpu.memory_space<vmem>>, vector<1x128x256xbf16>
    %178 = vector.shape_cast %177 : vector<1x128x256xbf16> to vector<128x256xbf16>
    %cst_91 = arith.constant dense<0.000000e+00> : vector<80x256xf32>
    %179 = tpu.matmul %176, %178, %cst_91 {dimension_numbers = #tpu.dot_dimension_numbers<[1], [0], [0], [1], [0, 0, 1, 1], [], []>} : vector<80x128xbf16>, vector<128x256xbf16>, vector<80x256xf32> -> vector<80x256xf32>
    %180 = arith.addf %174, %179 : vector<80x256xf32>
    %c0_92 = arith.constant 0 : index
    %c0_93 = arith.constant 0 : index
    %181 = vector.load %arg5[%c0_92, %c0_93] : memref<1x256xf32, #tpu.memory_space<vmem>>, vector<1x256xf32>
    %182 = vector.broadcast %181 : vector<1x256xf32> to vector<80x256xf32>
    %183 = arith.addf %180, %182 : vector<80x256xf32>
    %cst_94 = arith.constant 0.000000e+00 : f32
    %184 = vector.broadcast %cst_94 : f32 to vector<80x256xf32>
    %185 = arith.maximumf %183, %184 : vector<80x256xf32>
    %c0_95 = arith.constant 0 : index
    %c0_96 = arith.constant 0 : index
    %186 = vector.load %arg16[%c0_95, %c0_96] : memref<80x256xf32, #tpu.memory_space<vmem>>, vector<80x256xf32>
    tpu.vector_store %arg16[%c0_95, %c0_96], %185 {strides = array<i32>} : memref<80x256xf32, #tpu.memory_space<vmem>>, vector<80x256xf32>,
    %187 = tpu.iota {dimensions = array<i32: 0>} : vector<4x8xi32>
    %188 = tpu.iota {dimensions = array<i32: 1>} : vector<4x8xi32>
    %c2_i32 = arith.constant 2 : i32
    %189 = vector.broadcast %c2_i32 : i32 to vector<4x8xi32>
    %190 = arith.muli %189, %187 : vector<4x8xi32>
    %191 = arith.cmpi eq, %188, %190 : vector<4x8xi32>
    %192 = arith.extui %191 : vector<4x8xi1> to vector<4x8xi32>
    %193 = arith.sitofp %192 : vector<4x8xi32> to vector<4x8xf32>
    %c2_i32_97 = arith.constant 2 : i32
    %194 = vector.broadcast %c2_i32_97 : i32 to vector<4x8xi32>
    %195 = arith.muli %194, %187 : vector<4x8xi32>
    %c1_i32 = arith.constant 1 : i32
    %196 = vector.broadcast %c1_i32 : i32 to vector<4x8xi32>
    %197 = arith.addi %195, %196 : vector<4x8xi32>
    %198 = arith.cmpi eq, %188, %197 : vector<4x8xi32>
    %199 = arith.extui %198 : vector<4x8xi1> to vector<4x8xi32>
    %200 = arith.sitofp %199 : vector<4x8xi32> to vector<4x8xf32>
    %c0_98 = arith.constant 0 : index
    %c0_99 = arith.constant 0 : index
    %201 = vector.load %arg16[%c0_98, %c0_99] : memref<80x256xf32, #tpu.memory_space<vmem>>, vector<8x256xf32>
    %c10_100 = arith.constant 10 : index
    %c0_101 = arith.constant 0 : index
    %202 = vector.load %arg16[%c10_100, %c0_101] : memref<80x256xf32, #tpu.memory_space<vmem>>, vector<8x256xf32>
    %203 = arith.maximumf %201, %202 : vector<8x256xf32>
    %cst_102 = arith.constant dense<0.000000e+00> : vector<4x256xf32>
    %204 = tpu.matmul %193, %203, %cst_102 {dimension_numbers = #tpu.dot_dimension_numbers<[1], [0], [0], [1], [0, 0, 1, 1], [], []>} : vector<4x8xf32>, vector<8x256xf32>, vector<4x256xf32> -> vector<4x256xf32>
    %cst_103 = arith.constant dense<0.000000e+00> : vector<4x256xf32>
    %205 = tpu.matmul %200, %203, %cst_103 {dimension_numbers = #tpu.dot_dimension_numbers<[1], [0], [0], [1], [0, 0, 1, 1], [], []>} : vector<4x8xf32>, vector<8x256xf32>, vector<4x256xf32> -> vector<4x256xf32>
    %206 = arith.maximumf %204, %205 : vector<4x256xf32>
    %c7_104 = arith.constant 7 : index
    %c0_105 = arith.constant 0 : index
    %207 = vector.load %arg17[%c7_104, %c0_105] : memref<48x256xf32, #tpu.memory_space<vmem>>, vector<4x256xf32>
    tpu.vector_store %arg17[%c7_104, %c0_105], %206 {strides = array<i32>} : memref<48x256xf32, #tpu.memory_space<vmem>>, vector<4x256xf32>,
    %c20_106 = arith.constant 20 : index
    %c0_107 = arith.constant 0 : index
    %208 = vector.load %arg16[%c20_106, %c0_107] : memref<80x256xf32, #tpu.memory_space<vmem>>, vector<8x256xf32>
    %c30 = arith.constant 30 : index
    %c0_108 = arith.constant 0 : index
    %209 = vector.load %arg16[%c30, %c0_108] : memref<80x256xf32, #tpu.memory_space<vmem>>, vector<8x256xf32>
    %210 = arith.maximumf %208, %209 : vector<8x256xf32>
    %cst_109 = arith.constant dense<0.000000e+00> : vector<4x256xf32>
    %211 = tpu.matmul %193, %210, %cst_109 {dimension_numbers = #tpu.dot_dimension_numbers<[1], [0], [0], [1], [0, 0, 1, 1], [], []>} : vector<4x8xf32>, vector<8x256xf32>, vector<4x256xf32> -> vector<4x256xf32>
    %cst_110 = arith.constant dense<0.000000e+00> : vector<4x256xf32>
    %212 = tpu.matmul %200, %210, %cst_110 {dimension_numbers = #tpu.dot_dimension_numbers<[1], [0], [0], [1], [0, 0, 1, 1], [], []>} : vector<4x8xf32>, vector<8x256xf32>, vector<4x256xf32> -> vector<4x256xf32>
    %213 = arith.maximumf %211, %212 : vector<4x256xf32>
    %c13 = arith.constant 13 : index
    %c0_111 = arith.constant 0 : index
    %214 = vector.load %arg17[%c13, %c0_111] : memref<48x256xf32, #tpu.memory_space<vmem>>, vector<4x256xf32>
    tpu.vector_store %arg17[%c13, %c0_111], %213 {strides = array<i32>} : memref<48x256xf32, #tpu.memory_space<vmem>>, vector<4x256xf32>,
    %c40 = arith.constant 40 : index
    %c0_112 = arith.constant 0 : index
    %215 = vector.load %arg16[%c40, %c0_112] : memref<80x256xf32, #tpu.memory_space<vmem>>, vector<8x256xf32>
    %c50 = arith.constant 50 : index
    %c0_113 = arith.constant 0 : index
    %216 = vector.load %arg16[%c50, %c0_113] : memref<80x256xf32, #tpu.memory_space<vmem>>, vector<8x256xf32>
    %217 = arith.maximumf %215, %216 : vector<8x256xf32>
    %cst_114 = arith.constant dense<0.000000e+00> : vector<4x256xf32>
    %218 = tpu.matmul %193, %217, %cst_114 {dimension_numbers = #tpu.dot_dimension_numbers<[1], [0], [0], [1], [0, 0, 1, 1], [], []>} : vector<4x8xf32>, vector<8x256xf32>, vector<4x256xf32> -> vector<4x256xf32>
    %cst_115 = arith.constant dense<0.000000e+00> : vector<4x256xf32>
    %219 = tpu.matmul %200, %217, %cst_115 {dimension_numbers = #tpu.dot_dimension_numbers<[1], [0], [0], [1], [0, 0, 1, 1], [], []>} : vector<4x8xf32>, vector<8x256xf32>, vector<4x256xf32> -> vector<4x256xf32>
    %220 = arith.maximumf %218, %219 : vector<4x256xf32>
    %c19 = arith.constant 19 : index
    %c0_116 = arith.constant 0 : index
    %221 = vector.load %arg17[%c19, %c0_116] : memref<48x256xf32, #tpu.memory_space<vmem>>, vector<4x256xf32>
    tpu.vector_store %arg17[%c19, %c0_116], %220 {strides = array<i32>} : memref<48x256xf32, #tpu.memory_space<vmem>>, vector<4x256xf32>,
    %c60 = arith.constant 60 : index
    %c0_117 = arith.constant 0 : index
    %222 = vector.load %arg16[%c60, %c0_117] : memref<80x256xf32, #tpu.memory_space<vmem>>, vector<8x256xf32>
    %c70 = arith.constant 70 : index
    %c0_118 = arith.constant 0 : index
    %223 = vector.load %arg16[%c70, %c0_118] : memref<80x256xf32, #tpu.memory_space<vmem>>, vector<8x256xf32>
    %224 = arith.maximumf %222, %223 : vector<8x256xf32>
    %cst_119 = arith.constant dense<0.000000e+00> : vector<4x256xf32>
    %225 = tpu.matmul %193, %224, %cst_119 {dimension_numbers = #tpu.dot_dimension_numbers<[1], [0], [0], [1], [0, 0, 1, 1], [], []>} : vector<4x8xf32>, vector<8x256xf32>, vector<4x256xf32> -> vector<4x256xf32>
    %cst_120 = arith.constant dense<0.000000e+00> : vector<4x256xf32>
    %226 = tpu.matmul %200, %224, %cst_120 {dimension_numbers = #tpu.dot_dimension_numbers<[1], [0], [0], [1], [0, 0, 1, 1], [], []>} : vector<4x8xf32>, vector<8x256xf32>, vector<4x256xf32> -> vector<4x256xf32>
    %227 = arith.maximumf %225, %226 : vector<4x256xf32>
    %c25 = arith.constant 25 : index
    %c0_121 = arith.constant 0 : index
    %228 = vector.load %arg17[%c25, %c0_121] : memref<48x256xf32, #tpu.memory_space<vmem>>, vector<4x256xf32>
    tpu.vector_store %arg17[%c25, %c0_121], %227 {strides = array<i32>} : memref<48x256xf32, #tpu.memory_space<vmem>>, vector<4x256xf32>,
    %cst_122 = arith.constant 0.000000e+00 : f32
    %229 = vector.broadcast %cst_122 : f32 to vector<24x512xf32>
    %c0_123 = arith.constant 0 : index
    %c0_124 = arith.constant 0 : index
    %230 = vector.load %arg17[%c0_123, %c0_124] : memref<48x256xf32, #tpu.memory_space<vmem>>, vector<24x256xf32>
    %231 = arith.truncf %230 : vector<24x256xf32> to vector<24x256xbf16>
    %c0_125 = arith.constant 0 : index
    %c0_126 = arith.constant 0 : index
    %c0_127 = arith.constant 0 : index
    %232 = vector.load %arg6[%c0_125, %c0_126, %c0_127] : memref<9x256x512xbf16, #tpu.memory_space<vmem>>, vector<1x256x512xbf16>
    %233 = vector.shape_cast %232 : vector<1x256x512xbf16> to vector<256x512xbf16>
    %cst_128 = arith.constant dense<0.000000e+00> : vector<24x512xf32>
    %234 = tpu.matmul %231, %233, %cst_128 {dimension_numbers = #tpu.dot_dimension_numbers<[1], [0], [0], [1], [0, 0, 1, 1], [], []>} : vector<24x256xbf16>, vector<256x512xbf16>, vector<24x512xf32> -> vector<24x512xf32>
    %235 = arith.addf %229, %234 : vector<24x512xf32>
    %c1_129 = arith.constant 1 : index
    %c0_130 = arith.constant 0 : index
    %236 = vector.load %arg17[%c1_129, %c0_130] : memref<48x256xf32, #tpu.memory_space<vmem>>, vector<24x256xf32>
    %237 = arith.truncf %236 : vector<24x256xf32> to vector<24x256xbf16>
    %c1_131 = arith.constant 1 : index
    %c0_132 = arith.constant 0 : index
    %c0_133 = arith.constant 0 : index
    %238 = vector.load %arg6[%c1_131, %c0_132, %c0_133] : memref<9x256x512xbf16, #tpu.memory_space<vmem>>, vector<1x256x512xbf16>
    %239 = vector.shape_cast %238 : vector<1x256x512xbf16> to vector<256x512xbf16>
    %cst_134 = arith.constant dense<0.000000e+00> : vector<24x512xf32>
    %240 = tpu.matmul %237, %239, %cst_134 {dimension_numbers = #tpu.dot_dimension_numbers<[1], [0], [0], [1], [0, 0, 1, 1], [], []>} : vector<24x256xbf16>, vector<256x512xbf16>, vector<24x512xf32> -> vector<24x512xf32>
    %241 = arith.addf %235, %240 : vector<24x512xf32>
    %c2_135 = arith.constant 2 : index
    %c0_136 = arith.constant 0 : index
    %242 = vector.load %arg17[%c2_135, %c0_136] : memref<48x256xf32, #tpu.memory_space<vmem>>, vector<24x256xf32>
    %243 = arith.truncf %242 : vector<24x256xf32> to vector<24x256xbf16>
    %c2_137 = arith.constant 2 : index
    %c0_138 = arith.constant 0 : index
    %c0_139 = arith.constant 0 : index
    %244 = vector.load %arg6[%c2_137, %c0_138, %c0_139] : memref<9x256x512xbf16, #tpu.memory_space<vmem>>, vector<1x256x512xbf16>
    %245 = vector.shape_cast %244 : vector<1x256x512xbf16> to vector<256x512xbf16>
    %cst_140 = arith.constant dense<0.000000e+00> : vector<24x512xf32>
    %246 = tpu.matmul %243, %245, %cst_140 {dimension_numbers = #tpu.dot_dimension_numbers<[1], [0], [0], [1], [0, 0, 1, 1], [], []>} : vector<24x256xbf16>, vector<256x512xbf16>, vector<24x512xf32> -> vector<24x512xf32>
    %247 = arith.addf %241, %246 : vector<24x512xf32>
    %c6_141 = arith.constant 6 : index
    %c0_142 = arith.constant 0 : index
    %248 = vector.load %arg17[%c6_141, %c0_142] : memref<48x256xf32, #tpu.memory_space<vmem>>, vector<24x256xf32>
    %249 = arith.truncf %248 : vector<24x256xf32> to vector<24x256xbf16>
    %c3_143 = arith.constant 3 : index
    %c0_144 = arith.constant 0 : index
    %c0_145 = arith.constant 0 : index
    %250 = vector.load %arg6[%c3_143, %c0_144, %c0_145] : memref<9x256x512xbf16, #tpu.memory_space<vmem>>, vector<1x256x512xbf16>
    %251 = vector.shape_cast %250 : vector<1x256x512xbf16> to vector<256x512xbf16>
    %cst_146 = arith.constant dense<0.000000e+00> : vector<24x512xf32>
    %252 = tpu.matmul %249, %251, %cst_146 {dimension_numbers = #tpu.dot_dimension_numbers<[1], [0], [0], [1], [0, 0, 1, 1], [], []>} : vector<24x256xbf16>, vector<256x512xbf16>, vector<24x512xf32> -> vector<24x512xf32>
    %253 = arith.addf %247, %252 : vector<24x512xf32>
    %c7_147 = arith.constant 7 : index
    %c0_148 = arith.constant 0 : index
    %254 = vector.load %arg17[%c7_147, %c0_148] : memref<48x256xf32, #tpu.memory_space<vmem>>, vector<24x256xf32>
    %255 = arith.truncf %254 : vector<24x256xf32> to vector<24x256xbf16>
    %c4_149 = arith.constant 4 : index
    %c0_150 = arith.constant 0 : index
    %c0_151 = arith.constant 0 : index
    %256 = vector.load %arg6[%c4_149, %c0_150, %c0_151] : memref<9x256x512xbf16, #tpu.memory_space<vmem>>, vector<1x256x512xbf16>
    %257 = vector.shape_cast %256 : vector<1x256x512xbf16> to vector<256x512xbf16>
    %cst_152 = arith.constant dense<0.000000e+00> : vector<24x512xf32>
    %258 = tpu.matmul %255, %257, %cst_152 {dimension_numbers = #tpu.dot_dimension_numbers<[1], [0], [0], [1], [0, 0, 1, 1], [], []>} : vector<24x256xbf16>, vector<256x512xbf16>, vector<24x512xf32> -> vector<24x512xf32>
    %259 = arith.addf %253, %258 : vector<24x512xf32>
    %c8_153 = arith.constant 8 : index
    %c0_154 = arith.constant 0 : index
    %260 = vector.load %arg17[%c8_153, %c0_154] : memref<48x256xf32, #tpu.memory_space<vmem>>, vector<24x256xf32>
    %261 = arith.truncf %260 : vector<24x256xf32> to vector<24x256xbf16>
    %c5_155 = arith.constant 5 : index
    %c0_156 = arith.constant 0 : index
    %c0_157 = arith.constant 0 : index
    %262 = vector.load %arg6[%c5_155, %c0_156, %c0_157] : memref<9x256x512xbf16, #tpu.memory_space<vmem>>, vector<1x256x512xbf16>
    %263 = vector.shape_cast %262 : vector<1x256x512xbf16> to vector<256x512xbf16>
    %cst_158 = arith.constant dense<0.000000e+00> : vector<24x512xf32>
    %264 = tpu.matmul %261, %263, %cst_158 {dimension_numbers = #tpu.dot_dimension_numbers<[1], [0], [0], [1], [0, 0, 1, 1], [], []>} : vector<24x256xbf16>, vector<256x512xbf16>, vector<24x512xf32> -> vector<24x512xf32>
    %265 = arith.addf %259, %264 : vector<24x512xf32>
    %c12_159 = arith.constant 12 : index
    %c0_160 = arith.constant 0 : index
    %266 = vector.load %arg17[%c12_159, %c0_160] : memref<48x256xf32, #tpu.memory_space<vmem>>, vector<24x256xf32>
    %267 = arith.truncf %266 : vector<24x256xf32> to vector<24x256xbf16>
    %c6_161 = arith.constant 6 : index
    %c0_162 = arith.constant 0 : index
    %c0_163 = arith.constant 0 : index
    %268 = vector.load %arg6[%c6_161, %c0_162, %c0_163] : memref<9x256x512xbf16, #tpu.memory_space<vmem>>, vector<1x256x512xbf16>
    %269 = vector.shape_cast %268 : vector<1x256x512xbf16> to vector<256x512xbf16>
    %cst_164 = arith.constant dense<0.000000e+00> : vector<24x512xf32>
    %270 = tpu.matmul %267, %269, %cst_164 {dimension_numbers = #tpu.dot_dimension_numbers<[1], [0], [0], [1], [0, 0, 1, 1], [], []>} : vector<24x256xbf16>, vector<256x512xbf16>, vector<24x512xf32> -> vector<24x512xf32>
    %271 = arith.addf %265, %270 : vector<24x512xf32>
    %c13_165 = arith.constant 13 : index
    %c0_166 = arith.constant 0 : index
    %272 = vector.load %arg17[%c13_165, %c0_166] : memref<48x256xf32, #tpu.memory_space<vmem>>, vector<24x256xf32>
    %273 = arith.truncf %272 : vector<24x256xf32> to vector<24x256xbf16>
    %c7_167 = arith.constant 7 : index
    %c0_168 = arith.constant 0 : index
    %c0_169 = arith.constant 0 : index
    %274 = vector.load %arg6[%c7_167, %c0_168, %c0_169] : memref<9x256x512xbf16, #tpu.memory_space<vmem>>, vector<1x256x512xbf16>
    %275 = vector.shape_cast %274 : vector<1x256x512xbf16> to vector<256x512xbf16>
    %cst_170 = arith.constant dense<0.000000e+00> : vector<24x512xf32>
    %276 = tpu.matmul %273, %275, %cst_170 {dimension_numbers = #tpu.dot_dimension_numbers<[1], [0], [0], [1], [0, 0, 1, 1], [], []>} : vector<24x256xbf16>, vector<256x512xbf16>, vector<24x512xf32> -> vector<24x512xf32>
    %277 = arith.addf %271, %276 : vector<24x512xf32>
    %c14 = arith.constant 14 : index
    %c0_171 = arith.constant 0 : index
    %278 = vector.load %arg17[%c14, %c0_171] : memref<48x256xf32, #tpu.memory_space<vmem>>, vector<24x256xf32>
    %279 = arith.truncf %278 : vector<24x256xf32> to vector<24x256xbf16>
    %c8_172 = arith.constant 8 : index
    %c0_173 = arith.constant 0 : index
    %c0_174 = arith.constant 0 : index
    %280 = vector.load %arg6[%c8_172, %c0_173, %c0_174] : memref<9x256x512xbf16, #tpu.memory_space<vmem>>, vector<1x256x512xbf16>
    %281 = vector.shape_cast %280 : vector<1x256x512xbf16> to vector<256x512xbf16>
    %cst_175 = arith.constant dense<0.000000e+00> : vector<24x512xf32>
    %282 = tpu.matmul %279, %281, %cst_175 {dimension_numbers = #tpu.dot_dimension_numbers<[1], [0], [0], [1], [0, 0, 1, 1], [], []>} : vector<24x256xbf16>, vector<256x512xbf16>, vector<24x512xf32> -> vector<24x512xf32>
    %283 = arith.addf %277, %282 : vector<24x512xf32>
    %c0_176 = arith.constant 0 : index
    %c0_177 = arith.constant 0 : index
    %284 = vector.load %arg7[%c0_176, %c0_177] : memref<1x512xf32, #tpu.memory_space<vmem>>, vector<1x512xf32>
    %285 = vector.broadcast %284 : vector<1x512xf32> to vector<24x512xf32>
    %286 = arith.addf %283, %285 : vector<24x512xf32>
    %cst_178 = arith.constant 0.000000e+00 : f32
    %287 = vector.broadcast %cst_178 : f32 to vector<24x512xf32>
    %288 = arith.maximumf %286, %287 : vector<24x512xf32>
    %c0_179 = arith.constant 0 : index
    %c0_180 = arith.constant 0 : index
    %289 = vector.load %arg12[%c0_179, %c0_180] : memref<1x24xf32, #tpu.memory_space<vmem>>, vector<1x24xf32>
    %cst_181 = arith.constant dense<0.000000e+00> : vector<1x512xf32>
    %290 = tpu.matmul %289, %288, %cst_181 {dimension_numbers = #tpu.dot_dimension_numbers<[1], [0], [0], [1], [0, 0, 1, 1], [], []>} : vector<1x24xf32>, vector<24x512xf32>, vector<1x512xf32> -> vector<1x512xf32>
    %291 = arith.mulf %290, %290 : vector<1x512xf32>
    %cst_182 = arith.constant dense<0.000000e+00> : vector<1xf32>
    %292 = vector.multi_reduction <add>, %291, %cst_182 [1] : vector<1x512xf32> to vector<1xf32>
    %293 = vector.shape_cast %292 : vector<1xf32> to vector<1x1xf32>
    %294 = math.sqrt %293 : vector<1x1xf32>
    %cst_183 = arith.constant 9.99999996E-13 : f32
    %295 = vector.broadcast %cst_183 : f32 to vector<1x1xf32>
    %296 = arith.maximumf %294, %295 : vector<1x1xf32>
    %297 = vector.broadcast %296 : vector<1x1xf32> to vector<1x512xf32>
    %298 = arith.divf %290, %297 : vector<1x512xf32>
    %c0_184 = arith.constant 0 : index
    %c0_185 = arith.constant 0 : index
    %c0_186 = arith.constant 0 : index
    %299 = vector.load %arg13[%c0_184, %c0_185, %c0_186] : memref<1x1x512xf32, #tpu.memory_space<vmem>>, vector<1x1x512xf32>
    %300 = vector.shape_cast %299 : vector<1x1x512xf32> to vector<1x512xf32>
    %301 = vector.shape_cast %298 : vector<1x512xf32> to vector<1x1x512xf32>
    tpu.vector_store %arg13[%c0_184, %c0_185, %c0_186], %301 {strides = array<i32>} : memref<1x1x512xf32, #tpu.memory_space<vmem>>, vector<1x1x512xf32>,
    %302 = arith.truncf %290 : vector<1x512xf32> to vector<1x512xbf16>
    %c0_187 = arith.constant 0 : index
    %c0_188 = arith.constant 0 : index
    %303 = vector.load %arg8[%c0_187, %c0_188] : memref<512x128xbf16, #tpu.memory_space<vmem>>, vector<512x128xbf16>
    %cst_189 = arith.constant dense<0.000000e+00> : vector<1x128xf32>
    %304 = tpu.matmul %302, %303, %cst_189 {dimension_numbers = #tpu.dot_dimension_numbers<[1], [0], [0], [1], [0, 0, 1, 1], [], []>} : vector<1x512xbf16>, vector<512x128xbf16>, vector<1x128xf32> -> vector<1x128xf32>
    %c0_190 = arith.constant 0 : index
    %c0_191 = arith.constant 0 : index
    %305 = vector.load %arg9[%c0_190, %c0_191] : memref<1x128xf32, #tpu.memory_space<vmem>>, vector<1x128xf32>
    %306 = arith.addf %304, %305 : vector<1x128xf32>
    %cst_192 = arith.constant 0.000000e+00 : f32
    %307 = vector.broadcast %cst_192 : f32 to vector<1x128xf32>
    %308 = arith.maximumf %306, %307 : vector<1x128xf32>
    %309 = arith.truncf %308 : vector<1x128xf32> to vector<1x128xbf16>
    %c0_193 = arith.constant 0 : index
    %c0_194 = arith.constant 0 : index
    %310 = vector.load %arg10[%c0_193, %c0_194] : memref<128x128xbf16, #tpu.memory_space<vmem>>, vector<128x128xbf16>
    %cst_195 = arith.constant dense<0.000000e+00> : vector<1x128xf32>
    %311 = tpu.matmul %309, %310, %cst_195 {dimension_numbers = #tpu.dot_dimension_numbers<[1], [0], [0], [1], [0, 0, 1, 1], [], []>} : vector<1x128xbf16>, vector<128x128xbf16>, vector<1x128xf32> -> vector<1x128xf32>
    %c0_196 = arith.constant 0 : index
    %c0_197 = arith.constant 0 : index
    %312 = vector.load %arg11[%c0_196, %c0_197] : memref<1x128xf32, #tpu.memory_space<vmem>>, vector<1x128xf32>
    %313 = arith.addf %311, %312 : vector<1x128xf32>
    %c0_198 = arith.constant 0 : index
    %c0_199 = arith.constant 0 : index
    %c0_200 = arith.constant 0 : index
    %314 = vector.load %arg14[%c0_198, %c0_199, %c0_200] : memref<1x1x128xf32, #tpu.memory_space<vmem>>, vector<1x1x128xf32>
    %315 = vector.shape_cast %314 : vector<1x1x128xf32> to vector<1x128xf32>
    %316 = vector.shape_cast %313 : vector<1x128xf32> to vector<1x1x128xf32>
    tpu.vector_store %arg14[%c0_198, %c0_199, %c0_200], %316 {strides = array<i32>} : memref<1x1x128xf32, #tpu.memory_space<vmem>>, vector<1x1x128xf32>,
    return
  }
  func.func @transform_0(%arg0: i32) -> (i32, i32, i32) {
    %c0_i32 = arith.constant 0 : i32
    %c0_i32_0 = arith.constant 0 : i32
    %c0_i32_1 = arith.constant 0 : i32
    return %arg0, %c0_i32, %c0_i32_0 : i32, i32, i32
  }
  func.func @transform_1(%arg0: i32) -> (i32, i32) {
    %c0_i32 = arith.constant 0 : i32
    %c0_i32_0 = arith.constant 0 : i32
    %c0_i32_1 = arith.constant 0 : i32
    return %c0_i32, %c0_i32_0 : i32, i32
  }
  func.func @transform_2(%arg0: i32) -> (i32, i32) {
    %c0_i32 = arith.constant 0 : i32
    %c0_i32_0 = arith.constant 0 : i32
    %c0_i32_1 = arith.constant 0 : i32
    return %c0_i32, %c0_i32_0 : i32, i32
  }
  func.func @transform_3(%arg0: i32) -> (i32, i32, i32) {
    %c0_i32 = arith.constant 0 : i32
    %c0_i32_0 = arith.constant 0 : i32
    %c0_i32_1 = arith.constant 0 : i32
    %c0_i32_2 = arith.constant 0 : i32
    return %c0_i32, %c0_i32_0, %c0_i32_1 : i32, i32, i32
  }
  func.func @transform_4(%arg0: i32) -> (i32, i32) {
    %c0_i32 = arith.constant 0 : i32
    %c0_i32_0 = arith.constant 0 : i32
    %c0_i32_1 = arith.constant 0 : i32
    return %c0_i32, %c0_i32_0 : i32, i32
  }
  func.func @transform_5(%arg0: i32) -> (i32, i32, i32) {
    %c0_i32 = arith.constant 0 : i32
    %c0_i32_0 = arith.constant 0 : i32
    %c0_i32_1 = arith.constant 0 : i32
    %c0_i32_2 = arith.constant 0 : i32
    return %c0_i32, %c0_i32_0, %c0_i32_1 : i32, i32, i32
  }
  func.func @transform_6(%arg0: i32) -> (i32, i32) {
    %c0_i32 = arith.constant 0 : i32
    %c0_i32_0 = arith.constant 0 : i32
    %c0_i32_1 = arith.constant 0 : i32
    return %c0_i32, %c0_i32_0 : i32, i32
  }
  func.func @transform_7(%arg0: i32) -> (i32, i32) {
    %c0_i32 = arith.constant 0 : i32
    %c0_i32_0 = arith.constant 0 : i32
    %c0_i32_1 = arith.constant 0 : i32
    return %c0_i32, %c0_i32_0 : i32, i32
  }
  func.func @transform_8(%arg0: i32) -> (i32, i32) {
    %c0_i32 = arith.constant 0 : i32
    %c0_i32_0 = arith.constant 0 : i32
    %c0_i32_1 = arith.constant 0 : i32
    return %c0_i32, %c0_i32_0 : i32, i32
  }
  func.func @transform_9(%arg0: i32) -> (i32, i32) {
    %c0_i32 = arith.constant 0 : i32
    %c0_i32_0 = arith.constant 0 : i32
    %c0_i32_1 = arith.constant 0 : i32
    return %c0_i32, %c0_i32_0 : i32, i32
  }
  func.func @transform_10(%arg0: i32) -> (i32, i32) {
    %c0_i32 = arith.constant 0 : i32
    %c0_i32_0 = arith.constant 0 : i32
    %c0_i32_1 = arith.constant 0 : i32
    return %c0_i32, %c0_i32_0 : i32, i32
  }
  func.func @transform_11(%arg0: i32) -> (i32, i32) {
    %c0_i32 = arith.constant 0 : i32
    %c0_i32_0 = arith.constant 0 : i32
    %c0_i32_1 = arith.constant 0 : i32
    return %c0_i32, %c0_i32_0 : i32, i32
  }
  func.func @transform_12(%arg0: i32) -> (i32, i32, i32) {
    %c0_i32 = arith.constant 0 : i32
    %c0_i32_0 = arith.constant 0 : i32
    %c0_i32_1 = arith.constant 0 : i32
    return %arg0, %c0_i32, %c0_i32_0 : i32, i32, i32
  }
  func.func @transform_13(%arg0: i32) -> (i32, i32, i32) {
    %c0_i32 = arith.constant 0 : i32
    %c0_i32_0 = arith.constant 0 : i32
    %c0_i32_1 = arith.constant 0 : i32
    return %arg0, %c0_i32, %c0_i32_0 : i32, i32, i32
  }
}

</mosaic_0001>

<bundles_post_ra>
// kernel: feat_embedder_forward.1
= control target key start
LH: loop header
LB: loop body
LE: loop exit
PB: predicated region body
PF: predicated region fallthrough
CT: control target
= control target key end

     0   :  { %s15845_s0 = inlined_call_operand.vmem [shape: bf16[2,256,144], index: 0, kind: input, shape index: {}]   ;;  %s15846_s1 = inlined_call_operand.vmem [shape: bf16[144,128], index: 1, kind: input, shape index: {}]   ;;  %s15847_s2 = inlined_call_operand.vmem [shape: f32[1,128], index: 2, kind: input, shape index: {}]   ;;  %s15848_s3 = inlined_call_operand.vmem [shape: bf16[9,128,256], index: 3, kind: input, shape index: {}]   ;;  %s15849_s4 = inlined_call_operand.vmem [shape: f32[1,256], index: 4, kind: input, shape index: {}]   ;;  %s15850_s5 = inlined_call_operand.vmem [shape: bf16[9,256,512], index: 5, kind: input, shape index: {}]   ;;  %s15851_s6 = inlined_call_operand.vmem [shape: f32[1,512], index: 6, kind: input, shape index: {}]   ;;  %s15852_s7 = inlined_call_operand.vmem [shape: bf16[512,128], index: 7, kind: input, shape index: {}]   ;;  %s15853_s8 = inlined_call_operand.vmem [shape: f32[1,128], index: 8, kind: input, shape index: {}]   ;;  %s15854_s9 = inlined_call_operand.vmem [shape: bf16[128,128], index: 9, kind: input, shape index: {}]   ;;  %s15855_s10 = inlined_call_operand.vmem [shape: f32[1,128], index: 10, kind: input, shape index: {}]   ;;  %s15856_s11 = inlined_call_operand.vmem [shape: f32[1,24], index: 11, kind: input, shape index: {}]   ;;  %s15857_s12 = inlined_call_operand.vmem [shape: f32[2,1,512], index: 12, kind: output, shape index: {0}]   ;;  %s15858_s13 = inlined_call_operand.hbm [shape: f32[2,1,128], index: 13, kind: output, shape index: {1}]  }
   0x1   :  { %15862 = sst [smem:[#allocation11_spill]] %s15845_s0 }
   0x2   :  { %19 = vsyncpa [#allocation6], 0 }
   0x3   :  { %21 = vsyncpa [#allocation6 + $0x1], 0  ;;  %s12634_s25 = smov 0   ;;  %s12636_s26 = smov 0  }
   0x4   :  { %s12638_s27 = smov 0   ;;  %s12640_s28 = smov 0  }
   0x5 LB: > { %15863 = sst [smem:[#allocation8_spill]] %s12553_s27  ;;  %s12655_s29 = sadd.s32 4294967295, %s12557_s28   ;;  %s12557_s28 = sphi %s12640_s28, %s15869_s28   ;;  %s12553_s27 = sphi %s12638_s27, %s15871_s27   ;;  %s12549_s26 = sphi %s12636_s26, %s15873_s26   ;;  %s12545_s25 = sphi %s12634_s25, %s15872_s25  }
   0x6   : > { %s9467_s30 = sadd.s32 4294967294, %s12557_s28   ;;  %s12659_s14 = sadd.s32 1, %s12557_s28  }
   0x7   : > { %15864 = sst [smem:[#allocation9_spill]] %s12659_s14  ;;  %s317_s15 = sadd.s32 1, %s12553_s27 }
   0x8   : > { %s314_s16 = ssub.s32 %s12557_s28, %s12659_s14  ;;  %p327_p0 = scmp.ne.s32.totalorder %s12553_s27, %s12549_s26 }
   0x9   : > { %p315_p1 = scmp.eq.s32.totalorder %s314_s16, 0  ;;  %p328_p2 = scmp.eq.s32.totalorder %s12655_s29, 1 }
   0xa   : > { %p333_p3 = scmp.ne.s32.totalorder %s12549_s26, %s12545_s25  ;;  %p334_p4 = scmp.eq.s32.totalorder %s9467_s30, 1 }
   0xb   : > { %s12670_s17 = scalar_select %p315_p1, %s12553_s27, %s317_s15  }
   0xc   : > { %p12672_p5 = por %p328_p2, %p327_p0  ;;  %p12676_p6 = por %p334_p4, %p333_p3 }
   0xd   : > { %15865 = sst [smem:[#allocation10_spill]] %s12670_s17  ;;  %p9470_p7 = scmp.ge.s32.totalorder %s12557_s28, 1 }
   0xe   : > { %p393_p8 = scmp.lt.s32.totalorder %s12557_s28, 3 }
  0x10   : > { %p394_p9 = pnand %p9470_p7, %p393_p8 }
  0x11   : > { %v12685_v0 = vld [vmem:[%s15846_s1] sm:$0xff] (!%p394_p9)   ;;  %v12559_v1 = vmov (!%p394_p9), 0   ;;  %p440_p10 = scmp.lt.s32.totalorder (!%p394_p9), %s12655_s29, 1  ;;  %v12694_v2 = vld [vmem:[%s15846_s1 + $0x8] sm:$0xff] (!%p394_p9)   ;;  %v12707_v3 = vld [vmem:[%s15846_s1 + $0x10] sm:$0xff] (!%p394_p9)   ;;  %s15868_s0 = sld [smem:[#allocation11_spill]] (!%p394_p9) }
  0x12   : > { %397 = sbr.rel (%p394_p9) target bundleno = 2894 (0xb4e), region = 68  ;;  %584 = vmatprep.subr.bf16.mxu0 (!%p394_p9), %v12559_v1  ;;  %839 = vmatprep.subr.bf16.mxu1 (!%p394_p9), %v12559_v1  ;;  %v12720_v4 = vld [vmem:[%s15846_s1 + $0x18] sm:$0xff] (!%p394_p9)   ;;  %vm577_vm0 = vcmask (!%p394_p9), 130048   ;;  %v12732_v6 = vld [vmem:[%s15846_s1 + $0x20] sm:$0xff] (!%p394_p9)   ;;  %v12742_v8 = vld [vmem:[%s15846_s1 + $0x28] sm:$0xff] (!%p394_p9)   ;;  %v12560_v35 = vmov (!%p394_p9), 0.0  }
  0x13   : > { %585 = vmatpush1.bf16.msra.mxu0 (!%p394_p9), %v12685_v0  ;;  %840 = vmatpush1.bf16.msra.mxu1 (!%p394_p9), %v12685_v0  ;;  %v12752_v9 = vld [vmem:[%s15846_s1 + $0x30] sm:$0xff] (!%p394_p9)   ;;  %v12760_v10 = vld [vmem:[%s15846_s1 + $0x38] sm:$0xff] (!%p394_p9)   ;;  %v12769_v11 = vld [vmem:[%s15846_s1 + $0x40] sm:$0xff] (!%p394_p9)   ;;  %451 = vst [vmem:[#allocation2 + $0x8] sm:$0xff] (!%p394_p9), %v12560_v35  ;;  %vm3224_vm1 = vcmask (!%p394_p9), 1045504   ;;  %vm3235_vm3 = vcmask (!%p394_p9), 64512  }
  0x14   : > { %586 = vmatprep.subr.bf16.mxu0 (!%p394_p9), %v12559_v1  ;;  %841 = vmatprep.subr.bf16.mxu1 (!%p394_p9), %v12559_v1  ;;  %452 = vst [vmem:[#allocation2 + $0x10] sm:$0xff] (!%p394_p9), %v12560_v35  ;;  %463 = vst [vmem:[#allocation2 + $0x68] sm:$0xff] (!%p394_p9), %v12560_v35  ;;  %v12477_v38 = vld [vmem:[%s15846_s1] sm:$0xff] (!%p394_p9)   ;;  %v12478_v41 = vld [vmem:[%s15846_s1 + $0x8] sm:$0xff] (!%p394_p9)   ;;  %vm3426_vm5 = vcmask (!%p394_p9), 1043456   ;;  %vm5054_vm7 = vcmask (!%p394_p9), 1046528  }
  0x15   : > { %450 = vst [vmem:[#allocation2] sm:$0xff] (!%p394_p9), %v12560_v35  ;;  %453 = vst [vmem:[#allocation2 + $0x18] sm:$0xff] (!%p394_p9), %v12560_v35  ;;  %v12479_v42 = vld [vmem:[%s15846_s1 + $0x10] sm:$0xff] (!%p394_p9)   ;;  %v12480_v43 = vld [vmem:[%s15846_s1 + $0x18] sm:$0xff] (!%p394_p9)   ;;  %vm4098_vm6 = vsmask.f32 (!%p394_p9), 7424 }
  0x16   : > { %454 = vst [vmem:[#allocation2 + $0x20] sm:$0xff] (!%p394_p9), %v12560_v35  ;;  %455 = vst [vmem:[#allocation2 + $0x28] sm:$0xff] (!%p394_p9), %v12560_v35  ;;  %v12481_v44 = vld [vmem:[%s15846_s1 + $0x20] sm:$0xff] (!%p394_p9)   ;;  %v12482_v45 = vld [vmem:[%s15846_s1 + $0x28] sm:$0xff] (!%p394_p9)   ;;  %vm5576_vm8 = vcmask (!%p394_p9), 1044480   ;;  %vm8712_vm11 = vcmask (!%p394_p9), 195584  }
  0x17   : > { %587 = vmatpush1.bf16.msra.mxu0 (!%p394_p9), %v12694_v2  ;;  %842 = vmatpush1.bf16.msra.mxu1 (!%p394_p9), %v12694_v2  ;;  %456 = vst [vmem:[#allocation2 + $0x30] sm:$0xff] (!%p394_p9), %v12560_v35  ;;  %457 = vst [vmem:[#allocation2 + $0x38] sm:$0xff] (!%p394_p9), %v12560_v35  ;;  %v12483_v46 = vld [vmem:[%s15846_s1 + $0x30] sm:$0xff] (!%p394_p9)   ;;  %v11355_v47 = vld [vmem:[%s15848_s3 + $0x84] ss:$8 sps:$4 sm:$0xff] (!%p394_p9)   ;;  %vm8862_vm12 = vcmask (!%p394_p9), 1040384  }
  0x18   : > { %588 = vmatprep.subr.bf16.mxu0 (!%p394_p9), %v12559_v1  ;;  %843 = vmatprep.subr.bf16.mxu1 (!%p394_p9), %v12559_v1  ;;  %458 = vst [vmem:[#allocation2 + $0x40] sm:$0xff] (!%p394_p9), %v12560_v35  ;;  %459 = vst [vmem:[#allocation2 + $0x48] sm:$0xff] (!%p394_p9), %v12560_v35  ;;  %v12484_v48 = vld [vmem:[%s15846_s1 + $0x38] sm:$0xff] (!%p394_p9)   ;;  %v11353_v51 = vld [vmem:[%s15848_s3 + $0x80] ss:$8 sps:$4 sm:$0xff] (!%p394_p9)   ;;  %vm12561_vm13 = vmmov (!%p394_p9), 0  }
  0x19   : > { %s12699_s24 = scalar_select %p440_p10, %s12655_s29, 1  ;;  %460 = vst [vmem:[#allocation2 + $0x50] sm:$0xff] %v12560_v35  ;;  %461 = vst [vmem:[#allocation2 + $0x58] sm:$0xff] %v12560_v35  ;;  %v11358_v52 = vld [vmem:[%s15848_s3 + $0x94] ss:$8 sps:$4 sm:$0xff]   ;;  %v12485_v53 = vld [vmem:[%s15846_s1 + $0x40] sm:$0xff]  }
  0x1a   : > { %462 = vst [vmem:[#allocation2 + $0x60] sm:$0xff] %v12560_v35  ;;  %464 = vst [vmem:[#allocation4] sm:$0xff] %v12560_v35  ;;  %v11356_v54 = vld [vmem:[%s15848_s3 + $0x90] ss:$8 sps:$4 sm:$0xff]   ;;  %v11361_v55 = vld [vmem:[%s15848_s3 + $0xa4] ss:$8 sps:$4 sm:$0xff]  }
  0x1b   : > { %s10947_s30 = sshll.u32 %s12699_s24, 8  ;;  %589 = vmatpush1.bf16.msra.mxu0 %v12707_v3  ;;  %844 = vmatpush1.bf16.msra.mxu1 %v12707_v3  ;;  %465 = vst [vmem:[#allocation4 + $0x8] sm:$0xff] %v12560_v35  ;;  %466 = vst [vmem:[#allocation4 + $0x10] sm:$0xff] %v12560_v35  ;;  %v11359_v57 = vld [vmem:[%s15848_s3 + $0xa0] ss:$8 sps:$4 sm:$0xff]   ;;  %s9473_s23 = sshll.u32 %s12699_s24, 2 }
  0x1c   : > { %s12714_s22 = scalar_lea.vmem %s15868_s0, %s10947_s30  ;;  %590 = vmatprep.subr.bf16.mxu0 %v12559_v1  ;;  %845 = vmatprep.subr.bf16.mxu1 %v12559_v1  ;;  %467 = vst [vmem:[#allocation4 + $0x18] sm:$0xff] %v12560_v35  ;;  %468 = vst [vmem:[#allocation4 + $0x20] sm:$0xff] %v12560_v35  ;;  %v11364_v58 = vld [vmem:[%s15848_s3 + $0xb4] ss:$8 sps:$4 sm:$0xff]   ;;  %v11362_v59 = vld [vmem:[%s15848_s3 + $0xb0] ss:$8 sps:$4 sm:$0xff]   ;;  %s448_s17 = scalar_lea.vmem %s15857_s12, %s9473_s23 }
  0x1d   : > { %v11307_v5 = vld [vmem:[%s12714_s22 + $0x4] ss:$8 sps:$4 sm:$0xff]   ;;  %v11305_v12 = vld [vmem:[%s12714_s22] ss:$8 sps:$4 sm:$0xff]   ;;  %v11308_v14 = vld [vmem:[%s12714_s22 + $0x14] ss:$8 sps:$4 sm:$0xff]  }
  0x1e   : > { %9488 = vmatprep.mubr.msk.bf16.mxu0 %vm577_vm0, %v11307_v5  ;;  %v11322_v7 = vld [vmem:[%s12714_s22 + $0x64] ss:$8 sps:$4 sm:$0xff]   ;;  %v11320_v13 = vld [vmem:[%s12714_s22 + $0x60] ss:$8 sps:$4 sm:$0xff]   ;;  %v11325_v15 = vld [vmem:[%s12714_s22 + $0x74] ss:$8 sps:$4 sm:$0xff]  }
  0x1f   : > { %591 = vmatpush1.bf16.msra.mxu0 %v12720_v4  ;;  %846 = vmatpush1.bf16.msra.mxu1 %v12720_v4  ;;  %v11310_v16 = vld [vmem:[%s12714_s22 + $0x10] ss:$8 sps:$4 sm:$0xff]   ;;  %v11313_v18 = vld [vmem:[%s12714_s22 + $0x24] ss:$8 sps:$4 sm:$0xff]   ;;  %v11311_v20 = vld [vmem:[%s12714_s22 + $0x20] ss:$8 sps:$4 sm:$0xff]  }
  0x20   : > { %592 = vmatprep.subr.bf16.mxu0 %v12559_v1  ;;  %847 = vmatprep.subr.bf16.mxu1 %v12559_v1  ;;  %v11328_v17 = vld [vmem:[%s12714_s22 + $0x70] ss:$8 sps:$4 sm:$0xff]   ;;  %v11334_v19 = vld [vmem:[%s12714_s22 + $0xa4] ss:$8 sps:$4 sm:$0xff]   ;;  %v11314_v21 = vld [vmem:[%s12714_s22 + $0x34] ss:$8 sps:$4 sm:$0xff]  }
  0x21   : > { %9506 = vmatprep.mubr.msk.bf16.mxu1 %vm577_vm0, %v11322_v7  ;;  %v11332_v22 = vld [vmem:[%s12714_s22 + $0xa0] ss:$8 sps:$4 sm:$0xff]   ;;  %v11337_v23 = vld [vmem:[%s12714_s22 + $0xb4] ss:$8 sps:$4 sm:$0xff]   ;;  %v11316_v24 = vld [vmem:[%s12714_s22 + $0x30] ss:$8 sps:$4 sm:$0xff]  }
  0x22   : > { %v11319_v25 = vld [vmem:[%s12714_s22 + $0x44] ss:$8 sps:$4 sm:$0xff]   ;;  %v11340_v26 = vld [vmem:[%s12714_s22 + $0xb0] ss:$8 sps:$4 sm:$0xff]   ;;  %v11317_v28 = vld [vmem:[%s12714_s22 + $0x40] ss:$8 sps:$4 sm:$0xff]  }
  0x23   : > { %593 = vmatpush1.bf16.msra.mxu0 %v12732_v6  ;;  %848 = vmatpush1.bf16.msra.mxu1 %v12732_v6  ;;  %v11346_v27 = vld [vmem:[%s12714_s22 + $0xe4] ss:$8 sps:$4 sm:$0xff]   ;;  %v11323_v29 = vld [vmem:[%s12714_s22 + $0x54] ss:$8 sps:$4 sm:$0xff]   ;;  %v11344_v30 = vld [vmem:[%s12714_s22 + $0xe0] ss:$8 sps:$4 sm:$0xff]  }
  0x24   : > { %594 = vmatprep.subr.bf16.mxu0 %v12559_v1  ;;  %849 = vmatprep.subr.bf16.mxu1 %v12559_v1  ;;  %v11349_v31 = vld [vmem:[%s12714_s22 + $0xf4] ss:$8 sps:$4 sm:$0xff]   ;;  %v11327_v32 = vld [vmem:[%s12714_s22 + $0x50] ss:$8 sps:$4 sm:$0xff]   ;;  %v11331_v33 = vld [vmem:[%s12714_s22 + $0x84] ss:$8 sps:$4 sm:$0xff]  }
  0x25   : > { %v11352_v34 = vld [vmem:[%s12714_s22 + $0xf0] ss:$8 sps:$4 sm:$0xff]   ;;  %469 = vst [vmem:[#allocation4 + $0x28] sm:$0xff] %v12560_v35  ;;  %470 = vst [vmem:[#allocation4 + $0x30] sm:$0xff] %v12560_v35  ;;  %v11329_v36 = vld [vmem:[%s12714_s22 + $0x80] ss:$8 sps:$4 sm:$0xff]  }
  0x26   : > { %471 = vst [vmem:[#allocation4 + $0x38] sm:$0xff] %v12560_v35  ;;  %472 = vst [vmem:[#allocation4 + $0x40] sm:$0xff] %v12560_v35  ;;  %v11335_v37 = vld [vmem:[%s12714_s22 + $0x94] ss:$8 sps:$4 sm:$0xff]   ;;  %v11339_v39 = vld [vmem:[%s12714_s22 + $0x90] ss:$8 sps:$4 sm:$0xff]  }
  0x27   : > { %595 = vmatpush1.bf16.msra.mxu0 %v12742_v8  ;;  %850 = vmatpush1.bf16.msra.mxu1 %v12742_v8  ;;  %473 = vst [vmem:[#allocation4 + $0x48] sm:$0xff] %v12560_v35  ;;  %v11343_v40 = vld [vmem:[%s12714_s22 + $0xc4] ss:$8 sps:$4 sm:$0xff]   ;;  %v11341_v49 = vld [vmem:[%s12714_s22 + $0xc0] ss:$8 sps:$4 sm:$0xff]   ;;  %s438_s24 = sand.u32 1, %s12549_s26  }
  0x28   : > { %596 = vmatprep.subr.bf16.mxu0 %v12559_v1  ;;  %851 = vmatprep.subr.bf16.mxu1 %v12559_v1  ;;  %v11347_v50 = vld [vmem:[%s12714_s22 + $0xd4] ss:$8 sps:$4 sm:$0xff]   ;;  %v11351_v56 = vld [vmem:[%s12714_s22 + $0xd0] ss:$8 sps:$4 sm:$0xff]   ;;  %v11367_v60 = vld [vmem:[%s15848_s3 + $0xc4] ss:$8 sps:$4 sm:$0xff]  }
  0x29   : > { %v11365_v61 = vld [vmem:[%s15848_s3 + $0xc0] ss:$8 sps:$4 sm:$0xff]   ;;  %v11370_v62 = vld [vmem:[%s15848_s3 + $0xd4] ss:$8 sps:$4 sm:$0xff]   ;;  %v11368_v63 = vld [vmem:[%s15848_s3 + $0xd0] ss:$8 sps:$4 sm:$0xff]  }
  0x2a   : > { %v12999_v5 = vld [vmem:[%s15847_s2] ss:$0 sm:$0xff]  ;;  %vm6094_vm9 = vsmask.f32 4352  ;;  %vm7671_vm10 = vsmask.f32 5376 }
  0x2b   : > { %597 = vmatpush1.bf16.msra.mxu0 %v12752_v9  ;;  %852 = vmatpush1.bf16.msra.mxu1 %v12752_v9  ;;  %s10944_s22 = sshll.u32 %s12655_s29, 4  ;;  %s439_s0 = scalar_lea.vmem [#allocation5], %s438_s24 }
  0x2c   : > { %598 = vmatprep.subr.bf16.mxu0 %v12559_v1  ;;  %853 = vmatprep.subr.bf16.mxu1 %v12559_v1  ;;  %s9388_s21 = sshll.u32 %s439_s0, 4  ;;  %s15803_s15 = scalar_lea.hbm %s15858_s13, %s10944_s22  ;;  %s15805_s21 = int_to_ptr.vmem [resolvable:$true] %s9388_s21 }
  0x2d   : > { %s12495_s29 = scalar_lea.vmem %s15805_s21, 16  ;;  %s12563_s16 = smov [#allocation5]  }
  0x2e   : > { %p12496_p11 = scmp.ne.s32.totalorder %s15805_s21, %s12495_s29  ;;  %s12499_s20 = sshll.u32 %s12563_s16, 4  ;;  %s12500_s20 = int_to_ptr.vmem [resolvable:$false] %s12499_s20 }
  0x2f   : > { %599 = vmatpush1.bf16.msra.mxu0 %v12760_v10  ;;  %854 = vmatpush1.bf16.msra.mxu1 %v12760_v10  ;;  %s12501_s27 = scalar_lea.vmem %s12500_s20, 32  ;;  %p12502_p0 = scmp.lt.s32.totalorder %s15805_s21, %s12500_s20 }
  0x30   : > { %600 = vmatprep.subr.bf16.mxu0 %v12559_v1  ;;  %855 = vmatprep.subr.bf16.mxu1 %v12559_v1  ;;  %p12497_p12 = pnand %p12496_p11, %p12672_p5  ;;  %p12503_p1 = scmp.lt.s32.totalorder %s12501_s27, %s12495_s29 }
  0x32   : > { %p12498_p13 = pneg %p12497_p12  ;;  %p12504_p2 = por %p12503_p1, %p12502_p0 }
  0x33   : > { %601 = vmatpush1.bf16.msra.mxu0 %v12769_v11  ;;  %856 = vmatpush1.bf16.msra.mxu1 %v12769_v11 }
  0x34   : > { %669 = vmatprep.subr.bf16.mxu0 %v12559_v1  ;;  %1009 = vmatprep.subr.bf16.mxu1 %v12559_v1  ;;  %p12505_p3 = pnand %p12504_p2, %p12498_p13 }
  0x36   : > { %617 = vmatmul.mubr.bf16.vlgmr.msra.gmra.mrb[0].mxu0 %v11305_v12  ;;  %872 = vmatmul.mubr.bf16.vlgmr.msra.gmra.mrb[0].mxu1 %v11320_v13 }
  0x37   : > { %670 = vmatpush1.bf16.msra.mxu0 %v12685_v0  ;;  %9489 = vmatprep.mubr.msk.bf16.mxu0 %vm577_vm0, %v11308_v14 }
  0x38   : > { %671 = vmatprep.subr.bf16.mxu0 %v12559_v1  ;;  %1010 = vmatpush1.bf16.msra.mxu1 %v12685_v0 }
  0x39   : > { %1011 = vmatprep.subr.bf16.mxu1 %v12559_v1  ;;  %9507 = vmatprep.mubr.msk.bf16.mxu1 %vm577_vm0, %v11325_v15 }
  0x3b   : > { %672 = vmatpush1.bf16.msra.mxu0 %v12694_v2 }
  0x3c   : > { %673 = vmatprep.subr.bf16.mxu0 %v12559_v1  ;;  %1012 = vmatpush1.bf16.msra.mxu1 %v12694_v2 }
  0x3d   : > { %1013 = vmatprep.subr.bf16.mxu1 %v12559_v1 }
  0x3e   : > { %625 = vmatmul.mubr.bf16.gmra.mrb[4].mxu0 %v11310_v16  ;;  %880 = vmatmul.mubr.bf16.gmra.mrb[4].mxu1 %v11328_v17 }
  0x3f   : > { %674 = vmatpush1.bf16.msra.mxu0 %v12707_v3  ;;  %9494 = vmatprep.mubr.msk.bf16.mxu0 %vm577_vm0, %v11313_v18 }
  0x40   : > { %675 = vmatprep.subr.bf16.mxu0 %v12559_v1  ;;  %1014 = vmatpush1.bf16.msra.mxu1 %v12707_v3 }
  0x41   : > { %1015 = vmatprep.subr.bf16.mxu1 %v12559_v1  ;;  %9518 = vmatprep.mubr.msk.bf16.mxu1 %vm577_vm0, %v11334_v19 }
  0x43   : > { %676 = vmatpush1.bf16.msra.mxu0 %v12720_v4 }
  0x44   : > { %677 = vmatprep.subr.bf16.mxu0 %v12559_v1  ;;  %1016 = vmatpush1.bf16.msra.mxu1 %v12720_v4 }
  0x45   : > { %1017 = vmatprep.subr.bf16.mxu1 %v12559_v1 }
  0x47   : > { %678 = vmatpush1.bf16.msra.mxu0 %v12732_v6 }
  0x48   : > { %679 = vmatprep.subr.bf16.mxu0 %v12559_v1  ;;  %1018 = vmatpush1.bf16.msra.mxu1 %v12732_v6 }
  0x49   : > { %1019 = vmatprep.subr.bf16.mxu1 %v12559_v1 }
  0x4b   : > { %680 = vmatpush1.bf16.msra.mxu0 %v12742_v8 }
  0x4c   : > { %681 = vmatprep.subr.bf16.mxu0 %v12559_v1  ;;  %1020 = vmatpush1.bf16.msra.mxu1 %v12742_v8 }
  0x4d   : > { %1021 = vmatprep.subr.bf16.mxu1 %v12559_v1 }
  0x4f   : > { %682 = vmatpush1.bf16.msra.mxu0 %v12752_v9 }
  0x50   : > { %683 = vmatprep.subr.bf16.mxu0 %v12559_v1  ;;  %1022 = vmatpush1.bf16.msra.mxu1 %v12752_v9 }
  0x51   : > { %1023 = vmatprep.subr.bf16.mxu1 %v12559_v1 }
  0x53   : > { %684 = vmatpush1.bf16.msra.mxu0 %v12760_v10 }
  0x54   : > { %685 = vmatprep.subr.bf16.mxu0 %v12559_v1  ;;  %1024 = vmatpush1.bf16.msra.mxu1 %v12760_v10 }
  0x55   : > { %1025 = vmatprep.subr.bf16.mxu1 %v12559_v1 }
  0x57   : > { %686 = vmatpush1.bf16.msra.mxu0 %v12769_v11 }
  0x58   : > { %754 = vmatprep.subr.bf16.mxu0 %v12559_v1  ;;  %1026 = vmatpush1.bf16.msra.mxu1 %v12769_v11 }
  0x59   : > { %1179 = vmatprep.subr.bf16.mxu1 %v12559_v1 }
  0x5a   : > { %702 = vmatmul.mubr.bf16.vlgmr.msra.gmra.mrb[8].mxu0 %v11311_v20 }
  0x5b   : > { %755 = vmatpush1.bf16.msra.mxu0 %v12685_v0  ;;  %9495 = vmatprep.mubr.msk.bf16.mxu0 %vm577_vm0, %v11314_v21 }
  0x5c   : > { %756 = vmatprep.subr.bf16.mxu0 %v12559_v1  ;;  %1042 = vmatmul.mubr.bf16.vlgmr.msra.gmra.mrb[8].mxu1 %v11332_v22 }
  0x5d   : > { %1180 = vmatpush1.bf16.msra.mxu1 %v12685_v0  ;;  %9519 = vmatprep.mubr.msk.bf16.mxu1 %vm577_vm0, %v11337_v23 }
  0x5e   : > { %1181 = vmatprep.subr.bf16.mxu1 %v12559_v1 }
  0x5f   : > { %757 = vmatpush1.bf16.msra.mxu0 %v12694_v2 }
  0x60   : > { %758 = vmatprep.subr.bf16.mxu0 %v12559_v1 }
  0x61   : > { %1182 = vmatpush1.bf16.msra.mxu1 %v12694_v2 }
  0x62   : > { %710 = vmatmul.mubr.bf16.gmra.mrb[12].mxu0 %v11316_v24  ;;  %1183 = vmatprep.subr.bf16.mxu1 %v12559_v1 }
  0x63   : > { %759 = vmatpush1.bf16.msra.mxu0 %v12707_v3  ;;  %9500 = vmatprep.mubr.msk.bf16.mxu0 %vm577_vm0, %v11319_v25 }
  0x64   : > { %760 = vmatprep.subr.bf16.mxu0 %v12559_v1  ;;  %1050 = vmatmul.mubr.bf16.gmra.mrb[12].mxu1 %v11340_v26 }
  0x65   : > { %1184 = vmatpush1.bf16.msra.mxu1 %v12707_v3  ;;  %9530 = vmatprep.mubr.msk.bf16.mxu1 %vm577_vm0, %v11346_v27 }
  0x66   : > { %1185 = vmatprep.subr.bf16.mxu1 %v12559_v1 }
  0x67   : > { %761 = vmatpush1.bf16.msra.mxu0 %v12720_v4 }
  0x68   : > { %762 = vmatprep.subr.bf16.mxu0 %v12559_v1 }
  0x69   : > { %1186 = vmatpush1.bf16.msra.mxu1 %v12720_v4 }
  0x6a   : > { %1187 = vmatprep.subr.bf16.mxu1 %v12559_v1 }
  0x6b   : > { %763 = vmatpush1.bf16.msra.mxu0 %v12732_v6 }
  0x6c   : > { %764 = vmatprep.subr.bf16.mxu0 %v12559_v1 }
  0x6d   : > { %1188 = vmatpush1.bf16.msra.mxu1 %v12732_v6 }
  0x6e   : > { %1189 = vmatprep.subr.bf16.mxu1 %v12559_v1 }
  0x6f   : > { %765 = vmatpush1.bf16.msra.mxu0 %v12742_v8 }
  0x70   : > { %766 = vmatprep.subr.bf16.mxu0 %v12559_v1 }
  0x71   : > { %1190 = vmatpush1.bf16.msra.mxu1 %v12742_v8 }
  0x72   : > { %1191 = vmatprep.subr.bf16.mxu1 %v12559_v1 }
  0x73   : > { %767 = vmatpush1.bf16.msra.mxu0 %v12752_v9 }
  0x74   : > { %768 = vmatprep.subr.bf16.mxu0 %v12559_v1 }
  0x75   : > { %1192 = vmatpush1.bf16.msra.mxu1 %v12752_v9 }
  0x76   : > { %1193 = vmatprep.subr.bf16.mxu1 %v12559_v1 }
  0x77   : > { %769 = vmatpush1.bf16.msra.mxu0 %v12760_v10 }
  0x78   : > { %770 = vmatprep.subr.bf16.mxu0 %v12559_v1 }
  0x79   : > { %1194 = vmatpush1.bf16.msra.mxu1 %v12760_v10 }
  0x7a   : > { %1195 = vmatprep.subr.bf16.mxu1 %v12559_v1 }
  0x7b   : > { %771 = vmatpush1.bf16.msra.mxu0 %v12769_v11 }
  0x7c   : > { %924 = vmatprep.subr.bf16.mxu0 %v12559_v1 }
  0x7d   : > { %1196 = vmatpush1.bf16.msra.mxu1 %v12769_v11 }
  0x7e   : > { %787 = vmatmul.mubr.bf16.vlgmr.msra.gmra.mrb[16].mxu0 %v11317_v28 }
  0x7f   : > { %925 = vmatpush1.bf16.msra.mxu0 %v12685_v0  ;;  %9501 = vmatprep.mubr.msk.bf16.mxu0 %vm577_vm0, %v11323_v29  ;;  %v11373_v0 = vld [vmem:[%s15848_s3 + $0xe4] ss:$8 sps:$4 sm:$0xff]  }
  0x80   : > { %926 = vmatprep.subr.bf16.mxu0 %v12559_v1  ;;  %1212 = vmatmul.mubr.bf16.vlgmr.msra.gmra.mrb[16].mxu1 %v11344_v30 }
  0x81   : > { %9531 = vmatprep.mubr.msk.bf16.mxu1 %vm577_vm0, %v11349_v31 }
  0x83   : > { %927 = vmatpush1.bf16.msra.mxu0 %v12694_v2  ;;  %v11371_v2 = vld [vmem:[%s15848_s3 + $0xe0] ss:$8 sps:$4 sm:$0xff]  }
  0x84   : > { %928 = vmatprep.subr.bf16.mxu0 %v12559_v1 }
  0x86   : > { %795 = vmatmul.mubr.bf16.gmra.mrb[20].mxu0 %v11327_v32 }
  0x87   : > { %929 = vmatpush1.bf16.msra.mxu0 %v12707_v3  ;;  %9512 = vmatprep.mubr.msk.bf16.mxu0 %vm577_vm0, %v11331_v33  ;;  %v11376_v3 = vld [vmem:[%s15848_s3 + $0xf4] ss:$8 sps:$4 sm:$0xff]  }
  0x88   : > { %930 = vmatprep.subr.bf16.mxu0 %v12559_v1  ;;  %1220 = vmatmul.mubr.bf16.gmra.mrb[20].mxu1 %v11352_v34 }
  0x89   : > { %3303 = vmatprep.mubr.f32.mxu1 %v12560_v35 }
  0x8b   : > { %931 = vmatpush1.bf16.msra.mxu0 %v12720_v4  ;;  %v11374_v4 = vld [vmem:[%s15848_s3 + $0xf0] ss:$8 sps:$4 sm:$0xff]  }
  0x8c   : > { %932 = vmatprep.subr.bf16.mxu0 %v12559_v1 }
  0x8f   : > { %933 = vmatpush1.bf16.msra.mxu0 %v12732_v6 }
  0x90   : > { %934 = vmatprep.subr.bf16.mxu0 %v12559_v1 }
  0x93   : > { %935 = vmatpush1.bf16.msra.mxu0 %v12742_v8 }
  0x94   : > { %936 = vmatprep.subr.bf16.mxu0 %v12559_v1 }
  0x97   : > { %937 = vmatpush1.bf16.msra.mxu0 %v12752_v9 }
  0x98   : > { %938 = vmatprep.subr.bf16.mxu0 %v12559_v1 }
  0x9b   : > { %939 = vmatpush1.bf16.msra.mxu0 %v12760_v10 }
  0x9c   : > { %940 = vmatprep.subr.bf16.mxu0 %v12559_v1 }
  0x9f   : > { %941 = vmatpush1.bf16.msra.mxu0 %v12769_v11 }
  0xa0   : > { %1094 = vmatprep.subr.bf16.mxu0 %v12559_v1 }
  0xa2   : > { %957 = vmatmul.mubr.bf16.vlgmr.msra.gmra.mrb[24].mxu0 %v11329_v36 }
  0xa3   : > { %1095 = vmatpush1.bf16.msra.mxu0 %v12477_v38  ;;  %9513 = vmatprep.mubr.msk.bf16.mxu0 %vm577_vm0, %v11335_v37 }
  0xa4   : > { %1096 = vmatprep.subr.bf16.mxu0 %v12559_v1 }
  0xa7   : > { %1097 = vmatpush1.bf16.msra.mxu0 %v12478_v41 }
  0xa8   : > { %1098 = vmatprep.subr.bf16.mxu0 %v12559_v1 }
  0xaa   : > { %965 = vmatmul.mubr.bf16.gmra.mrb[28].mxu0 %v11339_v39 }
  0xab   : > { %1099 = vmatpush1.bf16.msra.mxu0 %v12479_v42  ;;  %9524 = vmatprep.mubr.msk.bf16.mxu0 %vm577_vm0, %v11343_v40 }
  0xac   : > { %1100 = vmatprep.subr.bf16.mxu0 %v12559_v1 }
  0xaf   : > { %1101 = vmatpush1.bf16.msra.mxu0 %v12480_v43 }
  0xb0   : > { %1102 = vmatprep.subr.bf16.mxu0 %v12559_v1 }
  0xb3   : > { %1103 = vmatpush1.bf16.msra.mxu0 %v12481_v44  ;;  %v11379_v44 = vld [vmem:[%s15848_s3 + $0x4] ss:$8 sps:$4 sm:$0xff]  }
  0xb4   : > { %1104 = vmatprep.subr.bf16.mxu0 %v12559_v1 }
  0xb7   : > { %1105 = vmatpush1.bf16.msra.mxu0 %v12482_v45  ;;  %v1267_v45 = vld [vmem:[#allocation2 + $0x1] sm:$0xff] }
  0xb8   : > { %1106 = vmatprep.subr.bf16.mxu0 %v12559_v1 }
  0xbb   : > { %1107 = vmatpush1.bf16.msra.mxu0 %v12483_v46 }
  0xbc   : > { %1108 = vmatprep.subr.bf16.mxu0 %v12559_v1 }
  0xbf   : > { %1109 = vmatpush1.bf16.msra.mxu0 %v12484_v48 }
  0xc0   : > { %1110 = vmatprep.subr.bf16.mxu0 %v12559_v1 }
  0xc3   : > { %1111 = vmatpush1.bf16.msra.mxu0 %v12485_v53  ;;  %v11388_v53 = vld [vmem:[%s15848_s3 + $0x34] ss:$8 sps:$4 sm:$0xff]  }
  0xc4   : > { %1379 = vmatprep.subr.bf16.mxu0 %v11355_v47  ;;  %v11377_v47 = vld [vmem:[%s15848_s3] ss:$8 sps:$4 sm:$0xff]  }
  0xc6   : > { %1127 = vmatmul.mubr.bf16.vlgmr.msra.gmra.mrb[32].mxu0 %v11341_v49  ;;  %v11382_v49 = vld [vmem:[%s15848_s3 + $0x14] ss:$8 sps:$4 sm:$0xff]  }
  0xc7   : > { %9525 = vmatprep.mubr.msk.bf16.mxu0 %vm577_vm0, %v11347_v50  ;;  %1380 = vmatpush1.bf16.msra.mxu0 %v11353_v51  ;;  %v11380_v50 = vld [vmem:[%s15848_s3 + $0x10] ss:$8 sps:$4 sm:$0xff]   ;;  %v11385_v51 = vld [vmem:[%s15848_s3 + $0x24] ss:$8 sps:$4 sm:$0xff]  }
  0xc8   : > { %1381 = vmatprep.subr.bf16.mxu0 %v11358_v52  ;;  %v11383_v52 = vld [vmem:[%s15848_s3 + $0x20] ss:$8 sps:$4 sm:$0xff]  }
  0xcb   : > { %1382 = vmatpush1.bf16.msra.mxu0 %v11356_v54 }
  0xcc   : > { %1383 = vmatprep.subr.bf16.mxu0 %v11361_v55  ;;  %v11386_v55 = vld [vmem:[%s15848_s3 + $0x30] ss:$8 sps:$4 sm:$0xff]  }
  0xce   : > { %1135 = vmatmul.mubr.bf16.gmra.mrb[36].mxu0 %v11351_v56 }
  0xcf   : > { %1384 = vmatpush1.bf16.msra.mxu0 %v11359_v57  ;;  %1411 = vmatprep.mubr.bf16.mxu0 %v12559_v1 }
  0xd0   : > { %1385 = vmatprep.subr.bf16.mxu0 %v11364_v58  ;;  %v11391_v58 = vld [vmem:[%s15848_s3 + $0x44] ss:$8 sps:$4 sm:$0xff]  }
  0xd3   : > { %1386 = vmatpush1.bf16.msra.mxu0 %v11362_v59 }
  0xd4   : > { %1387 = vmatprep.subr.bf16.mxu0 %v11367_v60 }
  0xd7   : > { %1388 = vmatpush1.bf16.msra.mxu0 %v11365_v61 }
  0xd8   : > { %1389 = vmatprep.subr.bf16.mxu0 %v11370_v62 }
  0xdb   : > { %1390 = vmatpush1.bf16.msra.mxu0 %v11368_v63 }
  0xdc   : > { %1391 = vmatprep.subr.bf16.mxu0 %v11373_v0 }
  0xdf   : > { %1392 = vmatpush1.bf16.msra.mxu0 %v11371_v2 }
  0xe0   : > { %1393 = vmatprep.subr.bf16.mxu0 %v11376_v3 }
  0xe3   : > { %1394 = vmatpush1.bf16.msra.mxu0 %v11374_v4  ;;  %v11389_v4 = vld [vmem:[%s15848_s3 + $0x40] ss:$8 sps:$4 sm:$0xff]  }
  0xe4   : > { %1542 = vmatprep.subr.bf16.mxu0 %v11379_v44 }
 0x109   : > { %v618_v6 = vpop.f32.mrb[0].mxu0  ;;  %v873_v7 = vpop.f32.mrb[0].mxu1 }
 0x10a   : > { %v619_v8 = vadd.f32 %v12999_v5, %v618_v6  ;;  %v620_v9 = vpop.f32.mrb[1].mxu0  ;;  %v874_v10 = vadd.f32 %v12999_v5, %v873_v7  ;;  %v875_v11 = vpop.f32.mrb[1].mxu1 }
 0x10b   : > { %v621_v12 = vpop.f32.mrb[2].mxu0  ;;  %v876_v13 = vpop.f32.mrb[2].mxu1 }
 0x10c   : > { %v633_v14 = vmax.f32 %v619_v8, 0.0  ;;  %v622_v15 = vadd.f32 %v12999_v5, %v621_v12  ;;  %v623_v16 = vpop.f32.mrb[3].mxu0  ;;  %v888_v17 = vmax.f32 %v874_v10, 0.0  ;;  %v877_v18 = vadd.f32 %v12999_v5, %v876_v13  ;;  %v878_v19 = vpop.f32.mrb[3].mxu1  ;;  %v11394_v12 = vld [vmem:[%s15848_s3 + $0x54] ss:$8 sps:$4 sm:$0xff]  }
 0x10e   : > { %v634_v20 = vmax.f32 %v622_v15, 0.0  ;;  %v889_v21 = vmax.f32 %v877_v18, 0.0  ;;  %v11397_v18 = vld [vmem:[%s15848_s3 + $0x64] ss:$8 sps:$4 sm:$0xff]  }
 0x110   : > { %v637_v22 = vmax.f32 %v633_v14, %v634_v20  ;;  %v892_v23 = vmax.f32 %v888_v17, %v889_v21  ;;  %v11392_v17 = vld [vmem:[%s15848_s3 + $0x50] ss:$8 sps:$4 sm:$0xff]  }
 0x111   : > { %v626_v24 = vpop.f32.mrb[4].mxu0  ;;  %v881_v25 = vpop.f32.mrb[4].mxu1 }
 0x112   : > { %v627_v26 = vadd.f32 %v12999_v5, %v626_v24  ;;  %v628_v27 = vpop.f32.mrb[5].mxu0  ;;  %v882_v28 = vadd.f32 %v12999_v5, %v881_v25  ;;  %v883_v29 = vpop.f32.mrb[5].mxu1 }
 0x113   : > { %v629_v30 = vpop.f32.mrb[6].mxu0  ;;  %v884_v31 = vpop.f32.mrb[6].mxu1  ;;  %v11395_v27 = vld [vmem:[%s15848_s3 + $0x60] ss:$8 sps:$4 sm:$0xff]  }
 0x114   : > { %v635_v32 = vmax.f32 %v627_v26, 0.0  ;;  %v630_v33 = vadd.f32 %v12999_v5, %v629_v30  ;;  %v631_v34 = vpop.f32.mrb[7].mxu0  ;;  %v890_v35 = vmax.f32 %v882_v28, 0.0  ;;  %v885_v36 = vadd.f32 %v12999_v5, %v884_v31  ;;  %v886_v37 = vpop.f32.mrb[7].mxu1 }
 0x116   : > { %v636_v38 = vmax.f32 %v630_v33, 0.0  ;;  %v891_v39 = vmax.f32 %v885_v36, 0.0 }
 0x118   : > { %v638_v40 = vmax.f32 %v635_v32, %v636_v38  ;;  %v893_v41 = vmax.f32 %v890_v35, %v891_v39  ;;  %v11400_v32 = vld [vmem:[%s15848_s3 + $0x74] ss:$8 sps:$4 sm:$0xff]   ;;  %v11398_v35 = vld [vmem:[%s15848_s3 + $0x70] ss:$8 sps:$4 sm:$0xff]   ;;  %v11403_v39 = vld [vmem:[%s15848_s3 + $0x104] ss:$8 sps:$4 sm:$0xff]  }
 0x11a   : > { %v13009_v42 = vmax.f32 %v637_v22, %v638_v40  ;;  %v13011_v43 = vmax.f32 %v892_v23, %v893_v41 }
 0x11c   : > { %640 = vst [vmem:[#allocation2 + $0xb] sm:$0xff] %v13009_v42  ;;  %895 = vst [vmem:[#allocation2 + $0x29] sm:$0xff] %v13011_v43 }
 0x123   : > { %v1268_v46 = vld [vmem:[#allocation2 + $0x9] sm:$0xff] }
 0x124   : > { %v1277_v48 = vpack.c.bf16 %v1268_v46, %v1267_v45 }
 0x126   : > { %1412 = vmatmul.mubr.bf16.vlgmr.msra.gmra.mrb[40].mxu0 %v1277_v48 }
 0x127   : > { %1421 = vmatprep.mubr.bf16.mxu0 %v12559_v1  ;;  %1543 = vmatpush1.bf16.msra.mxu0 %v11377_v47 }
 0x128   : > { %1544 = vmatprep.subr.bf16.mxu0 %v11382_v49 }
 0x12b   : > { %1545 = vmatpush1.bf16.msra.mxu0 %v11380_v50 }
 0x12c   : > { %1546 = vmatprep.subr.bf16.mxu0 %v11385_v51 }
 0x12d   : > { %v703_v54 = vpop.f32.mrb[8].mxu0 }
 0x12e   : > { %v704_v56 = vadd.f32 %v12999_v5, %v703_v54  ;;  %v705_v57 = vpop.f32.mrb[9].mxu0 }
 0x12f   : > { %v706_v59 = vpop.f32.mrb[10].mxu0  ;;  %v1043_v60 = vpop.f32.mrb[8].mxu1  ;;  %1547 = vmatpush1.bf16.msra.mxu0 %v11383_v52 }
 0x130   : > { %v718_v61 = vmax.f32 %v704_v56, 0.0  ;;  %v707_v62 = vadd.f32 %v12999_v5, %v706_v59  ;;  %v708_v63 = vpop.f32.mrb[11].mxu0  ;;  %v1044_v0 = vadd.f32 %v12999_v5, %v1043_v60  ;;  %v1045_v2 = vpop.f32.mrb[9].mxu1  ;;  %1548 = vmatprep.subr.bf16.mxu0 %v11388_v53 }
 0x131   : > { %v1046_v3 = vpop.f32.mrb[10].mxu1 }
 0x132   : > { %v719_v6 = vmax.f32 %v707_v62, 0.0  ;;  %v1058_v7 = vmax.f32 %v1044_v0, 0.0  ;;  %v1047_v8 = vadd.f32 %v12999_v5, %v1046_v3  ;;  %v1048_v9 = vpop.f32.mrb[11].mxu1 }
 0x133   : > { %1549 = vmatpush1.bf16.msra.mxu0 %v11386_v55 }
 0x134   : > { %v722_v10 = vmax.f32 %v718_v61, %v719_v6  ;;  %v1059_v11 = vmax.f32 %v1047_v8, 0.0  ;;  %1550 = vmatprep.subr.bf16.mxu0 %v11391_v58 }
 0x135   : > { %v711_v13 = vpop.f32.mrb[12].mxu0 }
 0x136   : > { %v712_v14 = vadd.f32 %v12999_v5, %v711_v13  ;;  %v713_v15 = vpop.f32.mrb[13].mxu0  ;;  %v1062_v16 = vmax.f32 %v1058_v7, %v1059_v11 }
 0x137   : > { %v714_v19 = vpop.f32.mrb[14].mxu0  ;;  %v1051_v20 = vpop.f32.mrb[12].mxu1  ;;  %1551 = vmatpush1.bf16.msra.mxu0 %v11389_v4 }
 0x138   : > { %v720_v21 = vmax.f32 %v712_v14, 0.0  ;;  %v715_v22 = vadd.f32 %v12999_v5, %v714_v19  ;;  %v716_v23 = vpop.f32.mrb[15].mxu0  ;;  %v1052_v24 = vadd.f32 %v12999_v5, %v1051_v20  ;;  %v1053_v25 = vpop.f32.mrb[13].mxu1  ;;  %1552 = vmatprep.subr.bf16.mxu0 %v11394_v12 }
 0x139   : > { %v1054_v26 = vpop.f32.mrb[14].mxu1 }
 0x13a   : > { %v721_v28 = vmax.f32 %v715_v22, 0.0  ;;  %v1060_v29 = vmax.f32 %v1052_v24, 0.0  ;;  %v1055_v30 = vadd.f32 %v12999_v5, %v1054_v26  ;;  %v1056_v31 = vpop.f32.mrb[15].mxu1 }
 0x13b   : > { %1553 = vmatpush1.bf16.msra.mxu0 %v11392_v17 }
 0x13c   : > { %v723_v33 = vmax.f32 %v720_v21, %v721_v28  ;;  %v1061_v34 = vmax.f32 %v1055_v30, 0.0  ;;  %1554 = vmatprep.subr.bf16.mxu0 %v11397_v18 }
 0x13e   : > { %v724_v36 = vmax.f32 %v722_v10, %v723_v33  ;;  %v1063_v37 = vmax.f32 %v1060_v29, %v1061_v34 }
 0x13f   : > { %1555 = vmatpush1.bf16.msra.mxu0 %v11395_v27 }
 0x140   : > { %725 = vst [vmem:[#allocation2 + $0x15] sm:$0xff] %v724_v36  ;;  %v1064_v38 = vmax.f32 %v1062_v16, %v1063_v37  ;;  %1556 = vmatprep.subr.bf16.mxu0 %v11400_v32 }
 0x142   : > { %1065 = vst [vmem:[#allocation2 + $0x3d] sm:$0xff] %v1064_v38 }
 0x143   : > { %1557 = vmatpush1.bf16.msra.mxu0 %v11398_v35 }
 0x144   : > { %1737 = vmatprep.subr.bf16.mxu0 %v11403_v39 }
 0x147   : > { %v1269_v18 = vld [vmem:[#allocation2 + $0x11] sm:$0xff] }
 0x151   : > { %v788_v40 = vpop.f32.mrb[16].mxu0 }
 0x152   : > { %v789_v41 = vadd.f32 %v12999_v5, %v788_v40  ;;  %v790_v44 = vpop.f32.mrb[17].mxu0 }
 0x153   : > { %v791_v45 = vpop.f32.mrb[18].mxu0  ;;  %v1213_v46 = vpop.f32.mrb[16].mxu1 }
 0x154   : > { %v803_v47 = vmax.f32 %v789_v41, 0.0  ;;  %v792_v48 = vadd.f32 %v12999_v5, %v791_v45  ;;  %v793_v49 = vpop.f32.mrb[19].mxu0  ;;  %v1214_v50 = vadd.f32 %v12999_v5, %v1213_v46  ;;  %v1215_v51 = vpop.f32.mrb[17].mxu1 }
 0x155   : > { %v1216_v52 = vpop.f32.mrb[18].mxu1 }
 0x156   : > { %v804_v53 = vmax.f32 %v792_v48, 0.0  ;;  %v1228_v54 = vmax.f32 %v1214_v50, 0.0  ;;  %v1217_v55 = vadd.f32 %v12999_v5, %v1216_v52  ;;  %v1218_v56 = vpop.f32.mrb[19].mxu1 }
 0x158   : > { %v807_v57 = vmax.f32 %v803_v47, %v804_v53  ;;  %v1229_v58 = vmax.f32 %v1217_v55, 0.0 }
 0x159   : > { %v796_v59 = vpop.f32.mrb[20].mxu0 }
 0x15a   : > { %v797_v60 = vadd.f32 %v12999_v5, %v796_v59  ;;  %v798_v61 = vpop.f32.mrb[21].mxu0  ;;  %v1232_v62 = vmax.f32 %v1228_v54, %v1229_v58 }
 0x15b   : > { %v799_v63 = vpop.f32.mrb[22].mxu0  ;;  %v1221_v0 = vpop.f32.mrb[20].mxu1 }
 0x15c   : > { %v805_v2 = vmax.f32 %v797_v60, 0.0  ;;  %v800_v3 = vadd.f32 %v12999_v5, %v799_v63  ;;  %v801_v4 = vpop.f32.mrb[23].mxu0  ;;  %v1222_v6 = vadd.f32 %v12999_v5, %v1221_v0  ;;  %v1223_v7 = vpop.f32.mrb[21].mxu1 }
 0x15d   : > { %v1224_v8 = vpop.f32.mrb[22].mxu1  ;;  %v11401_v7 = vld [vmem:[%s15848_s3 + $0x100] ss:$8 sps:$4 sm:$0xff]  }
 0x15e   : > { %v806_v9 = vmax.f32 %v800_v3, 0.0  ;;  %v1230_v10 = vmax.f32 %v1222_v6, 0.0  ;;  %v1225_v11 = vadd.f32 %v12999_v5, %v1224_v8  ;;  %v1226_v12 = vpop.f32.mrb[23].mxu1  ;;  %v1237_v6 = vld [vmem:[#allocation2 + $0x8] sm:$0xff] }
 0x15f   : > { %v13102_v8 = vld [vmem:[#allocation2 + $0x68] sm:$0xff] }
 0x160   : > { %v808_v13 = vmax.f32 %v805_v2, %v806_v9  ;;  %v1231_v14 = vmax.f32 %v1225_v11, 0.0  ;;  %v11406_v9 = vld [vmem:[%s15848_s3 + $0x114] ss:$8 sps:$4 sm:$0xff]   ;;  %v11409_v11 = vld [vmem:[%s15848_s3 + $0x124] ss:$8 sps:$4 sm:$0xff]  }
 0x162   : > { %v809_v15 = vmax.f32 %v807_v57, %v808_v13  ;;  %v1233_v16 = vmax.f32 %v1230_v10, %v1231_v14  ;;  %v11404_v10 = vld [vmem:[%s15848_s3 + $0x110] ss:$8 sps:$4 sm:$0xff]   ;;  %v11407_v14 = vld [vmem:[%s15848_s3 + $0x120] ss:$8 sps:$4 sm:$0xff]  }
 0x163   : > { %v1238_v13 = vld [vmem:[#allocation2 + $0x10] sm:$0xff] }
 0x164   : > { %810 = vst [vmem:[#allocation2 + $0x1f] sm:$0xff] %v809_v15  ;;  %v1234_v17 = vmax.f32 %v1232_v62, %v1233_v16  ;;  %v11412_v16 = vld [vmem:[%s15848_s3 + $0x134] ss:$8 sps:$4 sm:$0xff]  }
 0x166   : > { %1235 = vst [vmem:[#allocation2 + $0x51] sm:$0xff] %v1234_v17  ;;  %v11410_v17 = vld [vmem:[%s15848_s3 + $0x130] ss:$8 sps:$4 sm:$0xff]  }
 0x16b   : > { %v1270_v19 = vld [vmem:[#allocation2 + $0x19] sm:$0xff]  ;;  %v1271_v21 = vld [vmem:[#allocation2 + $0x21] sm:$0xff] }
 0x16c   : > { %v1278_v20 = vpack.c.bf16 %v1270_v19, %v1269_v18  ;;  %v1279_v22 = vpack.c.bf16 %v13011_v43, %v1271_v21  ;;  %v1239_v12 = vld [vmem:[#allocation2 + $0x18] sm:$0xff]  ;;  %v11415_v18 = vld [vmem:[%s15848_s3 + $0x144] ss:$8 sps:$4 sm:$0xff]   ;;  %v11413_v21 = vld [vmem:[%s15848_s3 + $0x140] ss:$8 sps:$4 sm:$0xff]  }
 0x16d   : > { %v1247_v15 = vpack.c.bf16 %v1239_v12, %v1238_v13  ;;  %v1240_v19 = vld [vmem:[#allocation2 + $0x20] sm:$0xff] }
 0x16e   : > { %1422 = vmatmul.mubr.bf16.gmra.mrb[44].mxu0 %v1278_v20  ;;  %v1241_v20 = vld [vmem:[#allocation2 + $0x28] sm:$0xff] }
 0x16f   : > { %1431 = vmatprep.mubr.bf16.mxu0 %v12559_v1  ;;  %v11455_v12 = vld [vmem:[%s15848_s3 + $0x220] ss:$8 sps:$4 sm:$0xff]  }
 0x175   : > { %v958_v23 = vpop.f32.mrb[24].mxu0 }
 0x176   : > { %v959_v24 = vadd.f32 %v12999_v5, %v958_v23  ;;  %v960_v25 = vpop.f32.mrb[25].mxu0  ;;  %1432 = vmatmul.mubr.bf16.gmra.mrb[48].mxu0 %v1279_v22  ;;  %v1248_v22 = vpack.c.bf16 %v1241_v20, %v1240_v19  ;;  %v11418_v23 = vld [vmem:[%s15848_s3 + $0x154] ss:$8 sps:$4 sm:$0xff]   ;;  %v11464_v20 = vld [vmem:[%s15848_s3 + $0x250] ss:$8 sps:$4 sm:$0xff]  }
 0x177   : > { %v961_v26 = vpop.f32.mrb[26].mxu0  ;;  %1441 = vmatprep.mubr.bf16.mxu0 %v12559_v1  ;;  %v11421_v25 = vld [vmem:[%s15848_s3 + $0x164] ss:$8 sps:$4 sm:$0xff]   ;;  %v11466_v19 = vld [vmem:[%s15848_s3 + $0x254] ss:$8 sps:$4 sm:$0xff]  }
 0x178   : > { %v973_v27 = vmax.f32 %v959_v24, 0.0  ;;  %v962_v28 = vadd.f32 %v12999_v5, %v961_v26  ;;  %v963_v29 = vpop.f32.mrb[27].mxu0  ;;  %v11416_v24 = vld [vmem:[%s15848_s3 + $0x150] ss:$8 sps:$4 sm:$0xff]  }
 0x17a   : > { %v974_v30 = vmax.f32 %v962_v28, 0.0  ;;  %v11419_v28 = vld [vmem:[%s15848_s3 + $0x160] ss:$8 sps:$4 sm:$0xff]  }
 0x17c   : > { %v977_v31 = vmax.f32 %v973_v27, %v974_v30  ;;  %v11424_v30 = vld [vmem:[%s15848_s3 + $0x174] ss:$8 sps:$4 sm:$0xff]  }
 0x17d   : > { %v966_v32 = vpop.f32.mrb[28].mxu0 }
 0x17e   : > { %v967_v33 = vadd.f32 %v12999_v5, %v966_v32  ;;  %v968_v34 = vpop.f32.mrb[29].mxu0  ;;  %v11427_v32 = vld [vmem:[%s15848_s3 + $0x184] ss:$8 sps:$4 sm:$0xff]  }
 0x17f   : > { %v969_v35 = vpop.f32.mrb[30].mxu0 }
 0x180   : > { %v975_v43 = vmax.f32 %v967_v33, 0.0  ;;  %v970_v36 = vadd.f32 %v12999_v5, %v969_v35  ;;  %v971_v37 = vpop.f32.mrb[31].mxu0 }
 0x181   : > { %v11425_v37 = vld [vmem:[%s15848_s3 + $0x180] ss:$8 sps:$4 sm:$0xff]  }
 0x182   : > { %v976_v38 = vmax.f32 %v970_v36, 0.0  ;;  %v1626_v36 = vld [vmem:[#allocation2 + $0xa] sm:$0xff] }
 0x184   : > { %v978_v39 = vmax.f32 %v975_v43, %v976_v38  ;;  %v1625_v43 = vld [vmem:[#allocation2 + $0x2] sm:$0xff] }
 0x185   : > { %v1635_v38 = vpack.c.bf16 %v1626_v36, %v1625_v43  ;;  %v2058_v43 = vld [vmem:[#allocation2 + $0x23] sm:$0xff] }
 0x186   : > { %v13090_v40 = vmax.f32 %v977_v31, %v978_v39  ;;  %v11422_v31 = vld [vmem:[%s15848_s3 + $0x170] ss:$8 sps:$4 sm:$0xff]   ;;  %v11430_v39 = vld [vmem:[%s15848_s3 + $0x194] ss:$8 sps:$4 sm:$0xff]  }
 0x188   : > { %980 = vst [vmem:[#allocation2 + $0x33] sm:$0xff] %v13090_v40 }
 0x18f   : > { %v1273_v41 = vld [vmem:[#allocation2 + $0x31] sm:$0xff]  ;;  %v1274_v44 = vld [vmem:[#allocation2 + $0x39] sm:$0xff] }
 0x190   : > { %v1280_v45 = vpack.c.bf16 %v1274_v44, %v1273_v41  ;;  %v1242_v26 = vld [vmem:[#allocation2 + $0x30] sm:$0xff]  ;;  %v1243_v27 = vld [vmem:[#allocation2 + $0x38] sm:$0xff]  ;;  %v11433_v44 = vld [vmem:[%s15848_s3 + $0x1a4] ss:$8 sps:$4 sm:$0xff]  }
 0x191   : > { %v1249_v29 = vpack.c.bf16 %v1243_v27, %v1242_v26  ;;  %v11428_v41 = vld [vmem:[%s15848_s3 + $0x190] ss:$8 sps:$4 sm:$0xff]   ;;  %v11475_v26 = vld [vmem:[%s15848_s3 + $0x284] ss:$8 sps:$4 sm:$0xff]  }
 0x192   : > { %1442 = vmatmul.mubr.bf16.gmra.mrb[52].mxu0 %v1280_v45  ;;  %v1628_v45 = vld [vmem:[#allocation2 + $0x1a] sm:$0xff]  ;;  %v1849_v27 = vld [vmem:[#allocation2 + $0x52] sm:$0xff] }
 0x193   : > { %1451 = vmatprep.mubr.bf16.mxu0 %v12559_v1 }
 0x199   : > { %v1128_v46 = vpop.f32.mrb[32].mxu0 }
 0x19a   : > { %v1129_v47 = vadd.f32 %v12999_v5, %v1128_v46  ;;  %v1130_v48 = vpop.f32.mrb[33].mxu0  ;;  %v1627_v46 = vld [vmem:[#allocation2 + $0x12] sm:$0xff] }
 0x19b   : > { %v1131_v49 = vpop.f32.mrb[34].mxu0  ;;  %v1636_v48 = vpack.c.bf16 %v1628_v45, %v1627_v46 }
 0x19c   : > { %v1132_v50 = vadd.f32 %v12999_v5, %v1131_v49  ;;  %v1133_v51 = vpop.f32.mrb[35].mxu0  ;;  %v1143_v52 = vmax.f32 %v1129_v47, 0.0  ;;  %v11431_v47 = vld [vmem:[%s15848_s3 + $0x1a0] ss:$8 sps:$4 sm:$0xff]   ;;  %v11436_v49 = vld [vmem:[%s15848_s3 + $0x1b4] ss:$8 sps:$4 sm:$0xff]  }
 0x19d   : > { %v11439_v51 = vld [vmem:[%s15848_s3 + $0x1c4] ss:$8 sps:$4 sm:$0xff]  }
 0x19e   : > { %v1144_v53 = vmax.f32 %v1132_v50, 0.0  ;;  %v11434_v50 = vld [vmem:[%s15848_s3 + $0x1b0] ss:$8 sps:$4 sm:$0xff]  }
 0x1a0   : > { %v1147_v54 = vmax.f32 %v1143_v52, %v1144_v53  ;;  %v1629_v52 = vld [vmem:[#allocation2 + $0x22] sm:$0xff]  ;;  %v1630_v53 = vld [vmem:[#allocation2 + $0x2a] sm:$0xff] }
 0x1a1   : > { %v1136_v55 = vpop.f32.mrb[36].mxu0  ;;  %v1851_v13 = vpack.c.bf16 %v1629_v52, %v1628_v45 }
 0x1a2   : > { %v1137_v56 = vadd.f32 %v12999_v5, %v1136_v55  ;;  %v1138_v57 = vpop.f32.mrb[37].mxu0  ;;  %v1637_v55 = vpack.c.bf16 %v1630_v53, %v1629_v52  ;;  %v11496_v52 = vld [vmem:[%s15848_s3 + $0x2f4] ss:$8 sps:$4 sm:$0xff]  }
 0x1a3   : > { %v1139_v58 = vpop.f32.mrb[38].mxu0  ;;  %v11440_v57 = vld [vmem:[%s15848_s3 + $0x1d0] ss:$8 sps:$4 sm:$0xff]  }
 0x1a4   : > { %v1140_v59 = vadd.f32 %v12999_v5, %v1139_v58  ;;  %v1141_v60 = vpop.f32.mrb[39].mxu0  ;;  %v1145_v61 = vmax.f32 %v1137_v56, 0.0  ;;  %v1246_v5 = vpack.c.bf16 %v1237_v6, %v13102_v8  ;;  %v11442_v56 = vld [vmem:[%s15848_s3 + $0x1d4] ss:$8 sps:$4 sm:$0xff]   ;;  %v11445_v58 = vld [vmem:[%s15848_s3 + $0x1e4] ss:$8 sps:$4 sm:$0xff]  }
 0x1a5   : > { %v1632_v60 = vld [vmem:[#allocation2 + $0x3a] sm:$0xff] }
 0x1a6   : > { %v1146_v62 = vmax.f32 %v1140_v59, 0.0  ;;  %v1631_v59 = vld [vmem:[#allocation2 + $0x32] sm:$0xff] }
 0x1a8   : > { %v1148_v63 = vmax.f32 %v1145_v61, %v1146_v62  ;;  %v11443_v61 = vld [vmem:[%s15848_s3 + $0x1e0] ss:$8 sps:$4 sm:$0xff]   ;;  %v1638_v62 = vpack.c.bf16 %v1632_v60, %v1631_v59 }
 0x1aa   : > { %v1149_v0 = vmax.f32 %v1147_v54, %v1148_v63  ;;  %v11437_v54 = vld [vmem:[%s15848_s3 + $0x1c0] ss:$8 sps:$4 sm:$0xff]   ;;  %v11448_v63 = vld [vmem:[%s15848_s3 + $0x1f4] ss:$8 sps:$4 sm:$0xff]  }
 0x1ac   : > { %1150 = vst [vmem:[#allocation2 + $0x47] sm:$0xff] %v1149_v0  ;;  %v11446_v0 = vld [vmem:[%s15848_s3 + $0x1f0] ss:$8 sps:$4 sm:$0xff]  }
 0x1b3   : > { %v1275_v2 = vld [vmem:[#allocation2 + $0x41] sm:$0xff]  ;;  %v1276_v3 = vld [vmem:[#allocation2 + $0x49] sm:$0xff] }
 0x1b4   : > { %v1281_v4 = vpack.c.bf16 %v1276_v3, %v1275_v2  ;;  %v1244_v33 = vld [vmem:[#allocation2 + $0x40] sm:$0xff]  ;;  %v1245_v34 = vld [vmem:[#allocation2 + $0x48] sm:$0xff] }
 0x1b5   : > { %v1250_v35 = vpack.c.bf16 %v1245_v34, %v1244_v33  ;;  %v11451_v2 = vld [vmem:[%s15848_s3 + $0x204] ss:$8 sps:$4 sm:$0xff]   ;;  %v11476_v33 = vld [vmem:[%s15848_s3 + $0x290] ss:$8 sps:$4 sm:$0xff]  }
 0x1b6   : > { %1452 = vmatmul.mubr.bf16.gmra.mrb[56].mxu0 %v1281_v4  ;;  %v1633_v3 = vld [vmem:[#allocation2 + $0x42] sm:$0xff]  ;;  %v1634_v4 = vld [vmem:[#allocation2 + $0x4a] sm:$0xff] }
 0x1b7   : > { %1574 = vmatprep.mubr.bf16.mxu0 %v12559_v1  ;;  %v1639_v6 = vpack.c.bf16 %v1634_v4, %v1633_v3  ;;  %v11481_v34 = vld [vmem:[%s15848_s3 + $0x2a4] ss:$8 sps:$4 sm:$0xff]  }
 0x1be   : > { %1575 = vmatmul.mubr.bf16.vlgmr.msra.gmra.mrb[40].mxu0 %v1246_v5  ;;  %v1850_v5 = vpack.c.bf16 %v1627_v46, %v1626_v36  ;;  %v11490_v46 = vld [vmem:[%s15848_s3 + $0x2d4] ss:$8 sps:$4 sm:$0xff]  }
 0x1bf   : > { %1584 = vmatprep.mubr.bf16.mxu0 %v12559_v1  ;;  %1738 = vmatpush1.bf16.msra.mxu0 %v11401_v7  ;;  %v11449_v7 = vld [vmem:[%s15848_s3 + $0x200] ss:$8 sps:$4 sm:$0xff]  }
 0x1c0   : > { %1739 = vmatprep.subr.bf16.mxu0 %v11406_v9  ;;  %v11454_v9 = vld [vmem:[%s15848_s3 + $0x214] ss:$8 sps:$4 sm:$0xff]  }
 0x1c3   : > { %1740 = vmatpush1.bf16.msra.mxu0 %v11404_v10  ;;  %v11452_v10 = vld [vmem:[%s15848_s3 + $0x210] ss:$8 sps:$4 sm:$0xff]  }
 0x1c4   : > { %1741 = vmatprep.subr.bf16.mxu0 %v11409_v11  ;;  %v11457_v11 = vld [vmem:[%s15848_s3 + $0x224] ss:$8 sps:$4 sm:$0xff]  }
 0x1c6   : > { %1585 = vmatmul.mubr.bf16.gmra.mrb[44].mxu0 %v1247_v15  ;;  %v11458_v15 = vld [vmem:[%s15848_s3 + $0x230] ss:$8 sps:$4 sm:$0xff]  }
 0x1c7   : > { %1594 = vmatprep.mubr.bf16.mxu0 %v12559_v1  ;;  %1742 = vmatpush1.bf16.msra.mxu0 %v11407_v14  ;;  %v11460_v14 = vld [vmem:[%s15848_s3 + $0x234] ss:$8 sps:$4 sm:$0xff]  }
 0x1c8   : > { %1743 = vmatprep.subr.bf16.mxu0 %v11412_v16  ;;  %v11463_v16 = vld [vmem:[%s15848_s3 + $0x244] ss:$8 sps:$4 sm:$0xff]  }
 0x1cb   : > { %1744 = vmatpush1.bf16.msra.mxu0 %v11410_v17  ;;  %v11461_v17 = vld [vmem:[%s15848_s3 + $0x240] ss:$8 sps:$4 sm:$0xff]  }
 0x1cc   : > { %1745 = vmatprep.subr.bf16.mxu0 %v11415_v18  ;;  %v1852_v18 = vpack.c.bf16 %v1631_v59, %v1630_v53  ;;  %v11494_v53 = vld [vmem:[%s15848_s3 + $0x2f0] ss:$8 sps:$4 sm:$0xff]  }
 0x1cd   : > { %v2270_v59 = vld [vmem:[#allocation2 + $0xc] sm:$0xff] }
 0x1ce   : > { %1595 = vmatmul.mubr.bf16.gmra.mrb[48].mxu0 %v1248_v22  ;;  %v11467_v22 = vld [vmem:[%s15848_s3 + $0x260] ss:$8 sps:$4 sm:$0xff]  }
 0x1cf   : > { %1604 = vmatprep.mubr.bf16.mxu0 %v12559_v1  ;;  %1746 = vmatpush1.bf16.msra.mxu0 %v11413_v21  ;;  %v11469_v21 = vld [vmem:[%s15848_s3 + $0x264] ss:$8 sps:$4 sm:$0xff]  }
 0x1d0   : > { %1747 = vmatprep.subr.bf16.mxu0 %v11418_v23  ;;  %v1853_v23 = vpack.c.bf16 %v1633_v3, %v1632_v60  ;;  %v11497_v60 = vld [vmem:[%s15848_s3 + $0x300] ss:$8 sps:$4 sm:$0xff]  }
 0x1d1   : > { %v2273_v3 = vld [vmem:[#allocation2 + $0x24] sm:$0xff] }
 0x1d3   : > { %1748 = vmatpush1.bf16.msra.mxu0 %v11416_v24  ;;  %v11472_v24 = vld [vmem:[%s15848_s3 + $0x274] ss:$8 sps:$4 sm:$0xff]  }
 0x1d4   : > { %1749 = vmatprep.subr.bf16.mxu0 %v11421_v25  ;;  %v11470_v25 = vld [vmem:[%s15848_s3 + $0x270] ss:$8 sps:$4 sm:$0xff]  }
 0x1d6   : > { %1605 = vmatmul.mubr.bf16.gmra.mrb[52].mxu0 %v1249_v29  ;;  %v2056_v29 = vld [vmem:[#allocation2 + $0x13] sm:$0xff] }
 0x1d7   : > { %1614 = vmatprep.mubr.bf16.mxu0 %v12559_v1  ;;  %1750 = vmatpush1.bf16.msra.mxu0 %v11419_v28  ;;  %v1854_v28 = vpack.c.bf16 %v1849_v27, %v1634_v4  ;;  %v11503_v4 = vld [vmem:[%s15848_s3 + $0x320] ss:$8 sps:$4 sm:$0xff]  }
 0x1d8   : > { %1751 = vmatprep.subr.bf16.mxu0 %v11424_v30  ;;  %v11473_v30 = vld [vmem:[%s15848_s3 + $0x280] ss:$8 sps:$4 sm:$0xff]  }
 0x1d9   : > { %v11521_v27 = vld [vmem:[%s15848_s3 + $0x380] ss:$8 sps:$4 sm:$0xff]  }
 0x1db   : > { %1752 = vmatpush1.bf16.msra.mxu0 %v11422_v31  ;;  %v2065_v31 = vpack.c.bf16 %v2056_v29, %v13009_v42  ;;  %v11479_v42 = vld [vmem:[%s15848_s3 + $0x2a0] ss:$8 sps:$4 sm:$0xff]   ;;  %v11526_v29 = vld [vmem:[%s15848_s3 + $0x394] ss:$8 sps:$4 sm:$0xff]  }
 0x1dc   : > { %1952 = vmatprep.subr.bf16.mxu0 %v11427_v32  ;;  %v11478_v32 = vld [vmem:[%s15848_s3 + $0x294] ss:$8 sps:$4 sm:$0xff]  }
 0x1de   : > { %1615 = vmatmul.mubr.bf16.gmra.mrb[56].mxu0 %v1250_v35  ;;  %v2057_v35 = vld [vmem:[#allocation2 + $0x1b] sm:$0xff] }
 0x1df   : > { %1769 = vmatprep.mubr.bf16.mxu0 %v12559_v1  ;;  %v2066_v36 = vpack.c.bf16 %v2058_v43, %v2057_v35  ;;  %v11530_v35 = vld [vmem:[%s15848_s3 + $0x3b0] ss:$8 sps:$4 sm:$0xff]   ;;  %v11535_v43 = vld [vmem:[%s15848_s3 + $0x3c4] ss:$8 sps:$4 sm:$0xff]  }
 0x1e6   : > { %1770 = vmatmul.mubr.bf16.vlgmr.msra.gmra.mrb[40].mxu0 %v1635_v38  ;;  %v11482_v38 = vld [vmem:[%s15848_s3 + $0x2b0] ss:$8 sps:$4 sm:$0xff]  }
 0x1e7   : > { %1779 = vmatprep.mubr.bf16.mxu0 %v12559_v1  ;;  %1953 = vmatpush1.bf16.msra.mxu0 %v11425_v37  ;;  %v11484_v37 = vld [vmem:[%s15848_s3 + $0x2b4] ss:$8 sps:$4 sm:$0xff]  }
 0x1e8   : > { %1954 = vmatprep.subr.bf16.mxu0 %v11430_v39  ;;  %v11487_v39 = vld [vmem:[%s15848_s3 + $0x2c4] ss:$8 sps:$4 sm:$0xff]  }
 0x1eb   : > { %1955 = vmatpush1.bf16.msra.mxu0 %v11428_v41  ;;  %v2059_v41 = vld [vmem:[#allocation2 + $0x2b] sm:$0xff] }
 0x1ec   : > { %1956 = vmatprep.subr.bf16.mxu0 %v11433_v44  ;;  %v11485_v44 = vld [vmem:[%s15848_s3 + $0x2c0] ss:$8 sps:$4 sm:$0xff]   ;;  %v2067_v45 = vpack.c.bf16 %v13090_v40, %v2059_v41 }
 0x1ed   : > { %v2061_v40 = vld [vmem:[#allocation2 + $0x3b] sm:$0xff] }
 0x1ee   : > { %1780 = vmatmul.mubr.bf16.gmra.mrb[44].mxu0 %v1636_v48  ;;  %v11493_v48 = vld [vmem:[%s15848_s3 + $0x2e4] ss:$8 sps:$4 sm:$0xff]   ;;  %v11539_v41 = vld [vmem:[%s15848_s3 + $0x3e0] ss:$8 sps:$4 sm:$0xff]  }
 0x1ef   : > { %1789 = vmatprep.mubr.bf16.mxu0 %v12559_v1  ;;  %1957 = vmatpush1.bf16.msra.mxu0 %v11431_v47  ;;  %v11488_v47 = vld [vmem:[%s15848_s3 + $0x2d0] ss:$8 sps:$4 sm:$0xff]  }
 0x1f0   : > { %1958 = vmatprep.subr.bf16.mxu0 %v11436_v49  ;;  %v2062_v49 = vld [vmem:[#allocation2 + $0x43] sm:$0xff] }
 0x1f3   : > { %1959 = vmatpush1.bf16.msra.mxu0 %v11434_v50  ;;  %v11491_v50 = vld [vmem:[%s15848_s3 + $0x2e0] ss:$8 sps:$4 sm:$0xff]  }
 0x1f4   : > { %1960 = vmatprep.subr.bf16.mxu0 %v11439_v51  ;;  %v2068_v51 = vpack.c.bf16 %v2062_v49, %v2061_v40  ;;  %v2701_v40 = vld [vmem:[#allocation2 + $0x1d] sm:$0xff] }
 0x1f6   : > { %1790 = vmatmul.mubr.bf16.gmra.mrb[48].mxu0 %v1637_v55  ;;  %v2063_v55 = vld [vmem:[#allocation2 + $0x4b] sm:$0xff] }
 0x1f7   : > { %1799 = vmatprep.mubr.bf16.mxu0 %v12559_v1  ;;  %1961 = vmatpush1.bf16.msra.mxu0 %v11437_v54  ;;  %v11499_v54 = vld [vmem:[%s15848_s3 + $0x304] ss:$8 sps:$4 sm:$0xff]  }
 0x1f8   : > { %1962 = vmatprep.subr.bf16.mxu0 %v11442_v56  ;;  %v2064_v56 = vld [vmem:[#allocation2 + $0x53] sm:$0xff] }
 0x1fb   : > { %1963 = vmatpush1.bf16.msra.mxu0 %v11440_v57  ;;  %v2069_v57 = vpack.c.bf16 %v2064_v56, %v2063_v55  ;;  %v11553_v55 = vld [vmem:[%s15848_s3 + $0x424] ss:$8 sps:$4 sm:$0xff]  }
 0x1fc   : > { %1964 = vmatprep.subr.bf16.mxu0 %v11445_v58  ;;  %v2271_v58 = vld [vmem:[#allocation2 + $0x14] sm:$0xff] }
 0x1fd   : > { %v2703_v56 = vld [vmem:[#allocation2 + $0x2d] sm:$0xff] }
 0x1fe   : > { %1800 = vmatmul.mubr.bf16.gmra.mrb[52].mxu0 %v1638_v62  ;;  %v11502_v62 = vld [vmem:[%s15848_s3 + $0x314] ss:$8 sps:$4 sm:$0xff]  }
 0x1ff   : > { %1809 = vmatprep.mubr.bf16.mxu0 %v12559_v1  ;;  %1965 = vmatpush1.bf16.msra.mxu0 %v11443_v61  ;;  %v2280_v61 = vpack.c.bf16 %v2271_v58, %v2270_v59 }
 0x200   : > { %1966 = vmatprep.subr.bf16.mxu0 %v11448_v63  ;;  %v11500_v63 = vld [vmem:[%s15848_s3 + $0x310] ss:$8 sps:$4 sm:$0xff]  }
 0x203   : > { %1967 = vmatpush1.bf16.msra.mxu0 %v11446_v0  ;;  %v11505_v0 = vld [vmem:[%s15848_s3 + $0x324] ss:$8 sps:$4 sm:$0xff]  }
 0x204   : > { %2167 = vmatprep.subr.bf16.mxu0 %v11451_v2  ;;  %v2272_v2 = vld [vmem:[#allocation2 + $0x1c] sm:$0xff] }
 0x206   : > { %1810 = vmatmul.mubr.bf16.gmra.mrb[56].mxu0 %v1639_v6  ;;  %v2281_v6 = vpack.c.bf16 %v2273_v3, %v2272_v2 }
 0x207   : > { %1984 = vmatprep.mubr.bf16.mxu0 %v12559_v1 }
 0x20e   : > { %1985 = vmatmul.mubr.bf16.vlgmr.msra.gmra.mrb[40].mxu0 %v1850_v5  ;;  %v11506_v5 = vld [vmem:[%s15848_s3 + $0x330] ss:$8 sps:$4 sm:$0xff]  }
 0x20f   : > { %1994 = vmatprep.mubr.bf16.mxu0 %v12559_v1  ;;  %2168 = vmatpush1.bf16.msra.mxu0 %v11449_v7  ;;  %v11508_v7 = vld [vmem:[%s15848_s3 + $0x334] ss:$8 sps:$4 sm:$0xff]  }
 0x210   : > { %2169 = vmatprep.subr.bf16.mxu0 %v11454_v9  ;;  %v11511_v9 = vld [vmem:[%s15848_s3 + $0x344] ss:$8 sps:$4 sm:$0xff]  }
 0x213   : > { %2170 = vmatpush1.bf16.msra.mxu0 %v11452_v10  ;;  %v2274_v10 = vld [vmem:[#allocation2 + $0x2c] sm:$0xff] }
 0x214   : > { %2171 = vmatprep.subr.bf16.mxu0 %v11457_v11  ;;  %v2275_v11 = vld [vmem:[#allocation2 + $0x34] sm:$0xff] }
 0x216   : > { %1995 = vmatmul.mubr.bf16.gmra.mrb[44].mxu0 %v1851_v13  ;;  %v2282_v13 = vpack.c.bf16 %v2275_v11, %v2274_v10 }
 0x217   : > { %2004 = vmatprep.mubr.bf16.mxu0 %v12559_v1  ;;  %2172 = vmatpush1.bf16.msra.mxu0 %v11455_v12  ;;  %v11509_v12 = vld [vmem:[%s15848_s3 + $0x340] ss:$8 sps:$4 sm:$0xff]  }
 0x218   : > { %2173 = vmatprep.subr.bf16.mxu0 %v11460_v14  ;;  %v11514_v14 = vld [vmem:[%s15848_s3 + $0x354] ss:$8 sps:$4 sm:$0xff]  }
 0x21b   : > { %2174 = vmatpush1.bf16.msra.mxu0 %v11458_v15  ;;  %v11512_v15 = vld [vmem:[%s15848_s3 + $0x350] ss:$8 sps:$4 sm:$0xff]  }
 0x21c   : > { %2175 = vmatprep.subr.bf16.mxu0 %v11463_v16  ;;  %v11517_v16 = vld [vmem:[%s15848_s3 + $0x364] ss:$8 sps:$4 sm:$0xff]  }
 0x21e   : > { %2005 = vmatmul.mubr.bf16.gmra.mrb[48].mxu0 %v1852_v18  ;;  %v2276_v18 = vld [vmem:[#allocation2 + $0x3c] sm:$0xff] }
 0x21f   : > { %2014 = vmatprep.mubr.bf16.mxu0 %v12559_v1  ;;  %2176 = vmatpush1.bf16.msra.mxu0 %v11461_v17  ;;  %v2277_v17 = vld [vmem:[#allocation2 + $0x44] sm:$0xff] }
 0x220   : > { %2177 = vmatprep.subr.bf16.mxu0 %v11466_v19  ;;  %v11515_v19 = vld [vmem:[%s15848_s3 + $0x360] ss:$8 sps:$4 sm:$0xff]  }
 0x223   : > { %2178 = vmatpush1.bf16.msra.mxu0 %v11464_v20  ;;  %v2283_v20 = vpack.c.bf16 %v2277_v17, %v2276_v18 }
 0x224   : > { %2179 = vmatprep.subr.bf16.mxu0 %v11469_v21  ;;  %v11520_v21 = vld [vmem:[%s15848_s3 + $0x374] ss:$8 sps:$4 sm:$0xff]  }
 0x226   : > { %2015 = vmatmul.mubr.bf16.gmra.mrb[52].mxu0 %v1853_v23  ;;  %v11523_v23 = vld [vmem:[%s15848_s3 + $0x384] ss:$8 sps:$4 sm:$0xff]  }
 0x227   : > { %2024 = vmatprep.mubr.bf16.mxu0 %v12559_v1  ;;  %2180 = vmatpush1.bf16.msra.mxu0 %v11467_v22  ;;  %v11518_v22 = vld [vmem:[%s15848_s3 + $0x370] ss:$8 sps:$4 sm:$0xff]  }
 0x228   : > { %2181 = vmatprep.subr.bf16.mxu0 %v11472_v24  ;;  %v2278_v24 = vld [vmem:[#allocation2 + $0x4c] sm:$0xff] }
 0x22b   : > { %2182 = vmatpush1.bf16.msra.mxu0 %v11470_v25  ;;  %v2279_v25 = vld [vmem:[#allocation2 + $0x54] sm:$0xff] }
 0x22c   : > { %2382 = vmatprep.subr.bf16.mxu0 %v11475_v26  ;;  %v2284_v26 = vpack.c.bf16 %v2279_v25, %v2278_v24 }
 0x22e   : > { %2025 = vmatmul.mubr.bf16.gmra.mrb[56].mxu0 %v1854_v28  ;;  %v2495_v28 = vpack.c.bf16 %v2272_v2, %v2271_v58  ;;  %v11551_v58 = vld [vmem:[%s15848_s3 + $0x420] ss:$8 sps:$4 sm:$0xff]  }
 0x22f   : > { %2199 = vmatprep.mubr.bf16.mxu0 %v12559_v1  ;;  %v11557_v2 = vld [vmem:[%s15848_s3 + $0x440] ss:$8 sps:$4 sm:$0xff]  }
 0x236   : > { %2200 = vmatmul.mubr.bf16.vlgmr.msra.gmra.mrb[40].mxu0 %v2065_v31  ;;  %v11529_v31 = vld [vmem:[%s15848_s3 + $0x3a4] ss:$8 sps:$4 sm:$0xff]  }
 0x237   : > { %2209 = vmatprep.mubr.bf16.mxu0 %v12559_v1  ;;  %2383 = vmatpush1.bf16.msra.mxu0 %v11473_v30  ;;  %v11524_v30 = vld [vmem:[%s15848_s3 + $0x390] ss:$8 sps:$4 sm:$0xff]  }
 0x238   : > { %2384 = vmatprep.subr.bf16.mxu0 %v11478_v32  ;;  %v11527_v32 = vld [vmem:[%s15848_s3 + $0x3a0] ss:$8 sps:$4 sm:$0xff]  }
 0x23b   : > { %2385 = vmatpush1.bf16.msra.mxu0 %v11476_v33  ;;  %v2496_v33 = vpack.c.bf16 %v2274_v10, %v2273_v3  ;;  %v11563_v10 = vld [vmem:[%s15848_s3 + $0x460] ss:$8 sps:$4 sm:$0xff]  }
 0x23c   : > { %2386 = vmatprep.subr.bf16.mxu0 %v11481_v34  ;;  %v11532_v34 = vld [vmem:[%s15848_s3 + $0x3b4] ss:$8 sps:$4 sm:$0xff]  }
 0x23e   : > { %2210 = vmatmul.mubr.bf16.gmra.mrb[44].mxu0 %v2066_v36  ;;  %v2497_v36 = vpack.c.bf16 %v2276_v18, %v2275_v11  ;;  %v2915_v18 = vld [vmem:[#allocation2 + $0x16] sm:$0xff] }
 0x23f   : > { %2219 = vmatprep.mubr.bf16.mxu0 %v12559_v1  ;;  %2387 = vmatpush1.bf16.msra.mxu0 %v11479_v42  ;;  %v11533_v42 = vld [vmem:[%s15848_s3 + $0x3c0] ss:$8 sps:$4 sm:$0xff]  }
 0x240   : > { %2388 = vmatprep.subr.bf16.mxu0 %v11484_v37  ;;  %v11538_v37 = vld [vmem:[%s15848_s3 + $0x3d4] ss:$8 sps:$4 sm:$0xff]  }
 0x243   : > { %2389 = vmatpush1.bf16.msra.mxu0 %v11482_v38  ;;  %v11536_v38 = vld [vmem:[%s15848_s3 + $0x3d0] ss:$8 sps:$4 sm:$0xff]  }
 0x244   : > { %2390 = vmatprep.subr.bf16.mxu0 %v11487_v39  ;;  %v11541_v39 = vld [vmem:[%s15848_s3 + $0x3e4] ss:$8 sps:$4 sm:$0xff]  }
 0x246   : > { %2220 = vmatmul.mubr.bf16.gmra.mrb[48].mxu0 %v2067_v45  ;;  %v11544_v45 = vld [vmem:[%s15848_s3 + $0x3f4] ss:$8 sps:$4 sm:$0xff]  }
 0x247   : > { %2229 = vmatprep.mubr.bf16.mxu0 %v12559_v1  ;;  %2391 = vmatpush1.bf16.msra.mxu0 %v11485_v44  ;;  %v2498_v44 = vpack.c.bf16 %v2278_v24, %v2277_v17  ;;  %v2916_v17 = vld [vmem:[#allocation2 + $0x1e] sm:$0xff] }
 0x248   : > { %2392 = vmatprep.subr.bf16.mxu0 %v11490_v46  ;;  %v11542_v46 = vld [vmem:[%s15848_s3 + $0x3f0] ss:$8 sps:$4 sm:$0xff]   ;;  %v2920_v24 = vld [vmem:[#allocation2 + $0x3e] sm:$0xff] }
 0x24b   : > { %2393 = vmatpush1.bf16.msra.mxu0 %v11488_v47  ;;  %v11547_v47 = vld [vmem:[%s15848_s3 + $0x404] ss:$8 sps:$4 sm:$0xff]  }
 0x24c   : > { %2394 = vmatprep.subr.bf16.mxu0 %v11493_v48  ;;  %v2494_v48 = vld [vmem:[#allocation2 + $0x5c] sm:$0xff] }
 0x24d   : > { %v2499_v49 = vpack.c.bf16 %v2494_v48, %v2279_v25  ;;  %v3132_v48 = vlaneseq }
 0x24e   : > { %2230 = vmatmul.mubr.bf16.gmra.mrb[52].mxu0 %v2068_v51  ;;  %v11545_v51 = vld [vmem:[%s15848_s3 + $0x400] ss:$8 sps:$4 sm:$0xff]  }
 0x24f   : > { %2239 = vmatprep.mubr.bf16.mxu0 %v12559_v1  ;;  %2395 = vmatpush1.bf16.msra.mxu0 %v11491_v50  ;;  %v2700_v50 = vld [vmem:[#allocation2 + $0x15] sm:$0xff]  ;;  %vm8916_vm0 = vcmp.lt.s32.totalorder %v3132_v48, 512 }
 0x250   : > { %2396 = vmatprep.subr.bf16.mxu0 %v11496_v52  ;;  %v2710_v52 = vpack.c.bf16 %v2701_v40, %v2700_v50  ;;  %v3130_v50 = vld [vmem:[%s15849_s4] sm:$0x3] }
 0x253   : > { %2397 = vmatpush1.bf16.msra.mxu0 %v11494_v53  ;;  %v11550_v53 = vld [vmem:[%s15848_s3 + $0x414] ss:$8 sps:$4 sm:$0xff]  }
 0x254   : > { %2597 = vmatprep.subr.bf16.mxu0 %v11499_v54  ;;  %v11548_v54 = vld [vmem:[%s15848_s3 + $0x410] ss:$8 sps:$4 sm:$0xff]  }
 0x256   : > { %2240 = vmatmul.mubr.bf16.gmra.mrb[56].mxu0 %v2069_v57  ;;  %v2702_v57 = vld [vmem:[#allocation2 + $0x25] sm:$0xff] }
 0x257   : > { %2414 = vmatprep.mubr.bf16.mxu0 %v12559_v1  ;;  %v2711_v59 = vpack.c.bf16 %v2703_v56, %v2702_v57 }
 0x25e   : > { %2415 = vmatmul.mubr.bf16.vlgmr.msra.gmra.mrb[40].mxu0 %v2280_v61  ;;  %v11554_v61 = vld [vmem:[%s15848_s3 + $0x430] ss:$8 sps:$4 sm:$0xff]  }
 0x25f   : > { %2424 = vmatprep.mubr.bf16.mxu0 %v12559_v1  ;;  %2598 = vmatpush1.bf16.msra.mxu0 %v11497_v60  ;;  %v11556_v60 = vld [vmem:[%s15848_s3 + $0x434] ss:$8 sps:$4 sm:$0xff]  }
 0x260   : > { %2599 = vmatprep.subr.bf16.mxu0 %v11502_v62  ;;  %v11559_v62 = vld [vmem:[%s15848_s3 + $0x444] ss:$8 sps:$4 sm:$0xff]  }
 0x263   : > { %2600 = vmatpush1.bf16.msra.mxu0 %v11500_v63  ;;  %v2704_v63 = vld [vmem:[#allocation2 + $0x35] sm:$0xff] }
 0x264   : > { %2601 = vmatprep.subr.bf16.mxu0 %v11505_v0  ;;  %v2705_v0 = vld [vmem:[#allocation2 + $0x3d] sm:$0xff] }
 0x265   : > { %v2712_v3 = vpack.c.bf16 %v2705_v0, %v2704_v63 }
 0x266   : > { %2425 = vmatmul.mubr.bf16.gmra.mrb[44].mxu0 %v2281_v6  ;;  %v11560_v6 = vld [vmem:[%s15848_s3 + $0x450] ss:$8 sps:$4 sm:$0xff]  }
 0x267   : > { %2434 = vmatprep.mubr.bf16.mxu0 %v12559_v1  ;;  %2602 = vmatpush1.bf16.msra.mxu0 %v11503_v4  ;;  %v11562_v4 = vld [vmem:[%s15848_s3 + $0x454] ss:$8 sps:$4 sm:$0xff]  }
 0x268   : > { %2603 = vmatprep.subr.bf16.mxu0 %v11508_v7  ;;  %v11565_v7 = vld [vmem:[%s15848_s3 + $0x464] ss:$8 sps:$4 sm:$0xff]  }
 0x26b   : > { %2604 = vmatpush1.bf16.msra.mxu0 %v11506_v5  ;;  %v2706_v5 = vld [vmem:[#allocation2 + $0x45] sm:$0xff] }
 0x26c   : > { %2605 = vmatprep.subr.bf16.mxu0 %v11511_v9  ;;  %v2707_v9 = vld [vmem:[#allocation2 + $0x4d] sm:$0xff] }
 0x26d   : > { %v2713_v11 = vpack.c.bf16 %v2707_v9, %v2706_v5 }
 0x26e   : > { %2435 = vmatmul.mubr.bf16.gmra.mrb[48].mxu0 %v2282_v13  ;;  %v11566_v13 = vld [vmem:[%s15848_s3 + $0x470] ss:$8 sps:$4 sm:$0xff]  }
 0x26f   : > { %2444 = vmatprep.mubr.bf16.mxu0 %v12559_v1  ;;  %2606 = vmatpush1.bf16.msra.mxu0 %v11509_v12  ;;  %v11568_v12 = vld [vmem:[%s15848_s3 + $0x474] ss:$8 sps:$4 sm:$0xff]  }
 0x270   : > { %2607 = vmatprep.subr.bf16.mxu0 %v11514_v14  ;;  %v2708_v14 = vld [vmem:[#allocation2 + $0x55] sm:$0xff] }
 0x273   : > { %2608 = vmatpush1.bf16.msra.mxu0 %v11512_v15  ;;  %v2709_v15 = vld [vmem:[#allocation2 + $0x5d] sm:$0xff] }
 0x274   : > { %2609 = vmatprep.subr.bf16.mxu0 %v11517_v16  ;;  %v2714_v16 = vpack.c.bf16 %v2709_v15, %v2708_v14 }
 0x276   : > { %2445 = vmatmul.mubr.bf16.gmra.mrb[52].mxu0 %v2283_v20  ;;  %v2918_v20 = vld [vmem:[#allocation2 + $0x2e] sm:$0xff] }
 0x277   : > { %2454 = vmatprep.mubr.bf16.mxu0 %v12559_v1  ;;  %2610 = vmatpush1.bf16.msra.mxu0 %v11515_v19  ;;  %v2925_v19 = vpack.c.bf16 %v2916_v17, %v2915_v18 }
 0x278   : > { %2611 = vmatprep.subr.bf16.mxu0 %v11520_v21  ;;  %v2917_v21 = vld [vmem:[#allocation2 + $0x26] sm:$0xff] }
 0x27b   : > { %2612 = vmatpush1.bf16.msra.mxu0 %v11518_v22  ;;  %v2926_v22 = vpack.c.bf16 %v2918_v20, %v2917_v21 }
 0x27c   : > { %2812 = vmatprep.subr.bf16.mxu0 %v11523_v23  ;;  %v2919_v23 = vld [vmem:[#allocation2 + $0x36] sm:$0xff] }
 0x27d   : > { %v2927_v25 = vpack.c.bf16 %v2920_v24, %v2919_v23 }
 0x27e   : > { %2455 = vmatmul.mubr.bf16.gmra.mrb[56].mxu0 %v2284_v26  ;;  %v2921_v26 = vld [vmem:[#allocation2 + $0x46] sm:$0xff] }
 0x27f   : > { %2629 = vmatprep.mubr.bf16.mxu0 %v12559_v1 }
 0x286   : > { %2630 = vmatmul.mubr.bf16.vlgmr.msra.gmra.mrb[40].mxu0 %v2495_v28 }
 0x287   : > { %2639 = vmatprep.mubr.bf16.mxu0 %v12559_v1  ;;  %2813 = vmatpush1.bf16.msra.mxu0 %v11521_v27  ;;  %v2922_v27 = vld [vmem:[#allocation2 + $0x4e] sm:$0xff] }
 0x288   : > { %2814 = vmatprep.subr.bf16.mxu0 %v11526_v29  ;;  %v2928_v28 = vpack.c.bf16 %v2922_v27, %v2921_v26  ;;  %v2923_v29 = vld [vmem:[#allocation2 + $0x56] sm:$0xff]  ;;  %v3205_v26 = vand.u32 127, %v3132_v48 }
 0x28b   : > { %2815 = vmatpush1.bf16.msra.mxu0 %v11524_v30  ;;  %v2924_v30 = vld [vmem:[#allocation2 + $0x5e] sm:$0xff] }
 0x28c   : > { %2816 = vmatprep.subr.bf16.mxu0 %v11529_v31  ;;  %v2929_v31 = vpack.c.bf16 %v2924_v30, %v2923_v29 }
 0x28e   : > { %2640 = vmatmul.mubr.bf16.gmra.mrb[44].mxu0 %v2496_v33  ;;  %v11571_v33 = vld [vmem:[%s15850_s5 + $0x204] ss:$16 sps:$4 sm:$0xff]  }
 0x28f   : > { %2649 = vmatprep.mubr.bf16.mxu0 %v12559_v1  ;;  %2817 = vmatpush1.bf16.msra.mxu0 %v11527_v32  ;;  %v11569_v32 = vld [vmem:[%s15850_s5 + $0x200] ss:$16 sps:$4 sm:$0xff]  }
 0x290   : > { %2818 = vmatprep.subr.bf16.mxu0 %v11532_v34  ;;  %v11574_v34 = vld [vmem:[%s15850_s5 + $0x224] ss:$16 sps:$4 sm:$0xff]  }
 0x293   : > { %2819 = vmatpush1.bf16.msra.mxu0 %v11530_v35  ;;  %v11577_v35 = vld [vmem:[%s15850_s5 + $0x244] ss:$16 sps:$4 sm:$0xff]  }
 0x294   : > { %2820 = vmatprep.subr.bf16.mxu0 %v11535_v43  ;;  %v11575_v43 = vld [vmem:[%s15850_s5 + $0x240] ss:$16 sps:$4 sm:$0xff]  }
 0x296   : > { %2650 = vmatmul.mubr.bf16.gmra.mrb[48].mxu0 %v2497_v36  ;;  %v11581_v36 = vld [vmem:[%s15850_s5 + $0x260] ss:$16 sps:$4 sm:$0xff]  }
 0x297   : > { %2659 = vmatprep.mubr.bf16.mxu0 %v12559_v1  ;;  %2821 = vmatpush1.bf16.msra.mxu0 %v11533_v42  ;;  %v11583_v42 = vld [vmem:[%s15850_s5 + $0x264] ss:$16 sps:$4 sm:$0xff]  }
 0x298   : > { %2822 = vmatprep.subr.bf16.mxu0 %v11538_v37  ;;  %v11589_v37 = vld [vmem:[%s15850_s5 + $0x284] ss:$16 sps:$4 sm:$0xff]  }
 0x29b   : > { %2823 = vmatpush1.bf16.msra.mxu0 %v11536_v38  ;;  %v11587_v38 = vld [vmem:[%s15850_s5 + $0x280] ss:$16 sps:$4 sm:$0xff]  }
 0x29c   : > { %2824 = vmatprep.subr.bf16.mxu0 %v11541_v39  ;;  %v11595_v39 = vld [vmem:[%s15850_s5 + $0x2a4] ss:$16 sps:$4 sm:$0xff]  }
 0x29e   : > { %2660 = vmatmul.mubr.bf16.gmra.mrb[52].mxu0 %v2498_v44  ;;  %v11601_v44 = vld [vmem:[%s15850_s5 + $0x2c4] ss:$16 sps:$4 sm:$0xff]  }
 0x29f   : > { %2669 = vmatprep.mubr.bf16.mxu0 %v12559_v1  ;;  %2825 = vmatpush1.bf16.msra.mxu0 %v11539_v41  ;;  %v11593_v41 = vld [vmem:[%s15850_s5 + $0x2a0] ss:$16 sps:$4 sm:$0xff]  }
 0x2a0   : > { %2826 = vmatprep.subr.bf16.mxu0 %v11544_v45  ;;  %v11599_v45 = vld [vmem:[%s15850_s5 + $0x2c0] ss:$16 sps:$4 sm:$0xff]  }
 0x2a3   : > { %2827 = vmatpush1.bf16.msra.mxu0 %v11542_v46  ;;  %v11607_v46 = vld [vmem:[%s15850_s5 + $0x2e4] ss:$16 sps:$4 sm:$0xff]  }
 0x2a4   : > { %3027 = vmatprep.subr.bf16.mxu0 %v11547_v47  ;;  %v11605_v47 = vld [vmem:[%s15850_s5 + $0x2e0] ss:$16 sps:$4 sm:$0xff]  }
 0x2a6   : > { %2670 = vmatmul.mubr.bf16.gmra.mrb[56].mxu0 %v2499_v49  ;;  %v13525_v49 = vshrl.u32 %v3132_v48, 7  ;;  %v9278_v48 = vld [vmem:[%s15855_s10] sm:$0x1] }
 0x2a7   : > { %2844 = vmatprep.mubr.bf16.mxu0 %v12559_v1 }
 0x2a8   : > { %v3134_v40 = vsub.s32 0, %v13525_v49  ;;  %v3206_v27 = vmul.u32 2, %v13525_v49 }
 0x2aa   : > { %vm3207_vm2 = vcmp.eq.s32.totalorder %v3205_v26, %v3206_v27 }
 0x2ae   : > { %2845 = vmatmul.mubr.bf16.vlgmr.msra.gmra.mrb[40].mxu0 %v2710_v52  ;;  %v13534_v52 = vrot.slane %v3130_v50, %v3134_v40 }
 0x2af   : > { %2854 = vmatprep.mubr.bf16.mxu0 %v12559_v1  ;;  %3028 = vmatpush1.bf16.msra.mxu0 %v11545_v51  ;;  %v3138_v51 = vsub.s32 1, %v13525_v49 }
 0x2b0   : > { %3029 = vmatprep.subr.bf16.mxu0 %v11550_v53 }
 0x2b1   : > { %v13538_v53 = vrot.slane %v3130_v50, %v3138_v51  ;;  %v13568_v50 = vsel %vm3207_vm2, 1.0, %v13102_v8 }
 0x2b3   : > { %3030 = vmatpush1.bf16.msra.mxu0 %v11548_v54 }
 0x2b4   : > { %3031 = vmatprep.subr.bf16.mxu0 %v11553_v55 }
 0x2b6   : > { %2855 = vmatmul.mubr.bf16.gmra.mrb[44].mxu0 %v2711_v59 }
 0x2b7   : > { %2864 = vmatprep.mubr.bf16.mxu0 %v12559_v1  ;;  %3032 = vmatpush1.bf16.msra.mxu0 %v11551_v58 }
 0x2b8   : > { %3033 = vmatprep.subr.bf16.mxu0 %v11556_v60 }
 0x2bb   : > { %3034 = vmatpush1.bf16.msra.mxu0 %v11554_v61 }
 0x2bc   : > { %3035 = vmatprep.subr.bf16.mxu0 %v11559_v62 }
 0x2be   : > { %2865 = vmatmul.mubr.bf16.gmra.mrb[48].mxu0 %v2712_v3 }
 0x2bf   : > { %2874 = vmatprep.mubr.bf16.mxu0 %v12559_v1  ;;  %3036 = vmatpush1.bf16.msra.mxu0 %v11557_v2 }
 0x2c0   : > { %3037 = vmatprep.subr.bf16.mxu0 %v11562_v4 }
 0x2c3   : > { %3038 = vmatpush1.bf16.msra.mxu0 %v11560_v6 }
 0x2c4   : > { %3039 = vmatprep.subr.bf16.mxu0 %v11565_v7 }
 0x2c6   : > { %2875 = vmatmul.mubr.bf16.gmra.mrb[52].mxu0 %v2713_v11 }
 0x2c7   : > { %2884 = vmatprep.mubr.bf16.mxu0 %v12559_v1  ;;  %3040 = vmatpush1.bf16.msra.mxu0 %v11563_v10 }
 0x2c8   : > { %3041 = vmatprep.subr.bf16.mxu0 %v11568_v12 }
 0x2cb   : > { %3042 = vmatpush1.bf16.msra.mxu0 %v11566_v13 }
 0x2cc   : > { %4453 = vmatprep.subr.bf16.mxu0 %v11571_v33 }
 0x2ce   : > { %2885 = vmatmul.mubr.bf16.gmra.mrb[56].mxu0 %v2714_v16 }
 0x2cf   : > { %3059 = vmatprep.mubr.bf16.mxu0 %v12559_v1 }
 0x2d6   : > { %3060 = vmatmul.mubr.bf16.vlgmr.msra.gmra.mrb[40].mxu0 %v2925_v19 }
 0x2d7   : > { %3069 = vmatprep.mubr.bf16.mxu0 %v12559_v1  ;;  %4454 = vmatpush1.bf16.msra.mxu0 %v11569_v32 }
 0x2d8   : > { %4455 = vmatprep.subr.bf16.mxu0 %v11574_v34 }
 0x2de   : > { %3070 = vmatmul.mubr.bf16.gmra.mrb[44].mxu0 %v2926_v22 }
 0x2df   : > { %3079 = vmatprep.mubr.bf16.mxu0 %v12559_v1 }
 0x2e6   : > { %3080 = vmatmul.mubr.bf16.gmra.mrb[48].mxu0 %v2927_v25 }
 0x2e7   : > { %3089 = vmatprep.mubr.bf16.mxu0 %v12559_v1 }
 0x2ee   : > { %3090 = vmatmul.mubr.bf16.gmra.mrb[52].mxu0 %v2928_v28 }
 0x2ef   : > { %3099 = vmatprep.mubr.bf16.mxu0 %v12559_v1  ;;  %v11572_v1 = vld [vmem:[%s15850_s5 + $0x220] ss:$16 sps:$4 sm:$0xff]  }
 0x2f0   : > { %4456 = vmatpush1.bf16.msra.mxu0 %v11572_v1 }
 0x2f1   : > { %4457 = vmatprep.subr.bf16.mxu0 %v11577_v35 }
 0x2f4   : > { %4458 = vmatpush1.bf16.msra.mxu0 %v11575_v43 }
 0x2f5   : > { %4459 = vmatprep.subr.bf16.mxu0 %v11583_v42 }
 0x2f6   : > { %3100 = vmatmul.mubr.bf16.gmra.mrb[56].mxu0 %v2929_v31 }
 0x2f8   : > { %4460 = vmatpush1.bf16.msra.mxu0 %v11581_v36  ;;  %v3210_v36 = vadd.s32 1, %v3206_v27 }
 0x2f9   : > { %4461 = vmatprep.subr.bf16.mxu0 %v11589_v37 }
 0x2fa   : > { %vm3211_vm4 = vcmp.eq.s32.totalorder %v3205_v26, %v3210_v36 }
 0x2fc   : > { %4462 = vmatpush1.bf16.msra.mxu0 %v11587_v38 }
 0x2fd   : > { %4463 = vmatprep.subr.bf16.mxu0 %v11595_v39 }
 0x300   : > { %4464 = vmatpush1.bf16.msra.mxu0 %v11593_v41 }
 0x301   : > { %4465 = vmatprep.subr.bf16.mxu0 %v11601_v44 }
 0x304   : > { %4466 = vmatpush1.bf16.msra.mxu0 %v11599_v45 }
 0x305   : > { %4467 = vmatprep.subr.bf16.mxu0 %v11607_v46 }
 0x308   : > { %4468 = vmatpush1.bf16.msra.mxu0 %v11605_v47 }
 0x3a9   : > { %v3061_v54 = vpop.f32.mrb[40].mxu0 }
 0x3aa   : > { %v13541_v55 = vadd.f32 %v13534_v52, %v3061_v54  ;;  %v3063_v56 = vpop.f32.mrb[41].mxu0 }
 0x3ab   : > { %v3143_v57 = vadd.f32 %v13538_v53, %v3063_v56  ;;  %v3065_v58 = vpop.f32.mrb[42].mxu0 }
 0x3ac   : > { %v3162_v59 = vmax.f32 %v13541_v55, 0.0  ;;  %v3144_v60 = vadd.f32 %v13534_v52, %v3065_v58  ;;  %v3067_v61 = vpop.f32.mrb[43].mxu0 }
 0x3ad   : > { %v3163_v62 = vmax.f32 %v3143_v57, 0.0  ;;  %v3145_v63 = vadd.f32 %v13538_v53, %v3067_v61 }
 0x3ae   : > { %v3164_v0 = vmax.f32 %v3144_v60, 0.0 }
 0x3af   : > { %v3165_v2 = vmax.f32 %v3145_v63, 0.0 }
 0x3b0   : > { %3184 = vst [vmem:[#allocation3 + $0x10] sm:$0xff] %v3164_v0 }
 0x3b1   : > { %3185 = vst [vmem:[#allocation3 + $0x18] sm:$0xff] %v3165_v2  ;;  %v3071_v3 = vpop.f32.mrb[44].mxu0 }
 0x3b2   : > { %v3146_v4 = vadd.f32 %v13534_v52, %v3071_v3  ;;  %v3073_v6 = vpop.f32.mrb[45].mxu0  ;;  %v13574_v3 = vld [vmem:[#allocation2 + $0x68] sm:$0xff] }
 0x3b3   : > { %v3147_v7 = vadd.f32 %v13538_v53, %v3073_v6  ;;  %v3075_v5 = vpop.f32.mrb[46].mxu0 }
 0x3b4   : > { %v3166_v9 = vmax.f32 %v3146_v4, 0.0  ;;  %v3148_v10 = vadd.f32 %v13534_v52, %v3075_v5  ;;  %v3077_v11 = vpop.f32.mrb[47].mxu0  ;;  %v13579_v4 = vsel %vm3211_vm4, 1.0, %v13574_v3 }
 0x3b5   : > { %v3167_v12 = vmax.f32 %v3147_v7, 0.0  ;;  %v3149_v13 = vadd.f32 %v13538_v53, %v3077_v11 }
 0x3b6   : > { %3186 = vst [vmem:[#allocation3 + $0x20] sm:$0xff] %v3166_v9  ;;  %v3168_v14 = vmax.f32 %v3148_v10, 0.0 }
 0x3b7   : > { %3187 = vst [vmem:[#allocation3 + $0x28] sm:$0xff] %v3167_v12  ;;  %v3169_v15 = vmax.f32 %v3149_v13, 0.0  ;;  %v3216_v21 = vld [vmem:[#allocation3 + $0x10] sm:$0xfc] }
 0x3b8   : > { %3188 = vst [vmem:[#allocation3 + $0x30] sm:$0xff] %v3168_v14  ;;  %v3217_v25 = vld [vmem:[#allocation3 + $0x18] sm:$0xfc]  ;;  %v3225_v33 = vrot.slane %v3216_v21, 2 }
 0x3b9   : > { %3189 = vst [vmem:[#allocation3 + $0x38] sm:$0xff] %v3169_v15  ;;  %v3081_v16 = vpop.f32.mrb[48].mxu0  ;;  %v3228_v35 = vrot.slane %v3217_v25, 2 }
 0x3ba   : > { %v3150_v17 = vadd.f32 %v13534_v52, %v3081_v16  ;;  %v3083_v18 = vpop.f32.mrb[49].mxu0 }
 0x3bb   : > { %v3151_v19 = vadd.f32 %v13538_v53, %v3083_v18  ;;  %v3085_v20 = vpop.f32.mrb[50].mxu0 }
 0x3bc   : > { %v3170_v22 = vmax.f32 %v3150_v17, 0.0  ;;  %v13554_v23 = vadd.f32 %v13534_v52, %v3085_v20  ;;  %v3087_v24 = vpop.f32.mrb[51].mxu0 }
 0x3bd   : > { %v3171_v28 = vmax.f32 %v3151_v19, 0.0  ;;  %v13559_v29 = vadd.f32 %v13538_v53, %v3087_v24  ;;  %v3218_v30 = vld [vmem:[#allocation3 + $0x20] sm:$0x3]  ;;  %v3396_v10 = vld [vmem:[#allocation3 + $0x20] sm:$0xf0] }
 0x3be   : > { %3190 = vst [vmem:[#allocation3 + $0x40] sm:$0xff] %v3170_v22  ;;  %v3172_v31 = vmax.f32 %v13554_v23, 0.0  ;;  %v3219_v32 = vld [vmem:[#allocation3 + $0x28] sm:$0x3]  ;;  %v3226_v34 = vrot.slane %v3218_v30, 2 }
 0x3bf   : > { %3191 = vst [vmem:[#allocation3 + $0x48] sm:$0xff] %v3171_v28  ;;  %v3173_v1 = vmax.f32 %v13559_v29, 0.0  ;;  %v3229_v43 = vrot.slane %v3219_v32, 2  ;;  %v3400_v54 = vld [vmem:[#allocation3 + $0x30] sm:$0xc0] }
 0x3c0   : > { %v3227_v42 = vsel %vm3224_vm1, %v3225_v33, %v3226_v34  ;;  %v3401_v58 = vld [vmem:[#allocation3 + $0x38] sm:$0xc0]  ;;  %v3398_v5 = vld [vmem:[#allocation3 + $0x30] sm:$0xf]  ;;  %v3399_v9 = vld [vmem:[#allocation3 + $0x38] sm:$0xf] }
 0x3c1   : > { %v3091_v37 = vpop.f32.mrb[52].mxu0  ;;  %v3230_v38 = vsel %vm3224_vm1, %v3228_v35, %v3229_v43  ;;  %v3233_v47 = vmax.f32 %v3162_v59, %v3227_v42  ;;  %v3408_v59 = vrot.slane %v3400_v54, 2  ;;  %v3411_v6 = vrot.slane %v3401_v58, 2  ;;  %v3397_v14 = vld [vmem:[#allocation3 + $0x28] sm:$0xf0] }
 0x3c2   : > { %v3154_v39 = vadd.f32 %v13534_v52, %v3091_v37  ;;  %v3093_v41 = vpop.f32.mrb[53].mxu0  ;;  %v3234_v44 = vmax.f32 %v3163_v62, %v3230_v38 }
 0x3c3   : > { %v3155_v45 = vadd.f32 %v13538_v53, %v3093_v41  ;;  %v3095_v46 = vpop.f32.mrb[54].mxu0 }
 0x3c4   : > { %v3174_v55 = vmax.f32 %v3154_v39, 0.0  ;;  %v3156_v56 = vadd.f32 %v13534_v52, %v3095_v46  ;;  %v3097_v57 = vpop.f32.mrb[55].mxu0  ;;  %3239 = vmatprep.subr.mxu1 %v3234_v44 }
 0x3c5   : > { %v3175_v60 = vmax.f32 %v3155_v45, 0.0  ;;  %v3157_v61 = vadd.f32 %v13538_v53, %v3097_v57  ;;  %3240 = vmatpush1.msra.mxu1 %v3233_v47  ;;  %v3402_v62 = vld [vmem:[#allocation3 + $0x40] sm:$0x3f] }
 0x3c6   : > { %3194 = vst [vmem:[#allocation3 + $0x60] sm:$0xff] %v3174_v55  ;;  %v3176_v63 = vmax.f32 %v3156_v56, 0.0  ;;  %3313 = vmatprep.subr.mxu1 %v3234_v44  ;;  %9806 = vmatmul.mubr.msk.f32.vlgmr.msra.gmra.mrb[24].mxu1 %vm3235_vm3, %v13568_v50  ;;  %v3403_v8 = vld [vmem:[#allocation3 + $0x48] sm:$0x3f]  ;;  %v3409_v0 = vrot.slane %v3402_v62, 2 }
 0x3c7   : > { %3195 = vst [vmem:[#allocation3 + $0x68] sm:$0xff] %v3175_v60  ;;  %v3177_v2 = vmax.f32 %v3157_v61, 0.0  ;;  %3314 = vmatpush1.msra.mxu1 %v3233_v47  ;;  %3377 = vmatprep.mubr.f32.mxu1 %v13574_v3  ;;  %v3412_v7 = vrot.slane %v3403_v8, 2 }
 0x3c8   : > { %3196 = vst [vmem:[#allocation3 + $0x70] sm:$0xff] %v3176_v63  ;;  %v3410_v11 = vsel %vm3224_vm1, %v3408_v59, %v3409_v0  ;;  %v3420_v12 = vmax.f32 %v3398_v5, %v3409_v0 }
 0x3c9   : > { %3197 = vst [vmem:[#allocation3 + $0x78] sm:$0xff] %v3177_v2  ;;  %v3101_v13 = vpop.f32.mrb[56].mxu0  ;;  %v3413_v15 = vsel %vm3224_vm1, %v3411_v6, %v3412_v7  ;;  %v3421_v16 = vmax.f32 %v3399_v9, %v3412_v7  ;;  %v3418_v17 = vmax.f32 %v3396_v10, %v3410_v11 }
 0x3ca   : > { %v3158_v18 = vadd.f32 %v13534_v52, %v3101_v13  ;;  %v3103_v19 = vpop.f32.mrb[57].mxu0  ;;  %9807 = vmatmul.mubr.msk.f32.vlgmr.msra.gmra.mrb[26].mxu1 %vm3235_vm3, %v13579_v4  ;;  %v3419_v20 = vmax.f32 %v3397_v14, %v3413_v15  ;;  %v3428_v26 = vrot.slane %v3420_v12, 4  ;;  %v11580_v15 = vld [vmem:[%s15850_s5 + $0x40c] ss:$16 sps:$4 sm:$0xff]  }
 0x3cb   : > { %v3159_v21 = vadd.f32 %v13538_v53, %v3103_v19  ;;  %v3105_v22 = vpop.f32.mrb[58].mxu0  ;;  %v3431_v24 = vrot.slane %v3421_v16, 4  ;;  %v3427_v25 = vrot.slane %v3418_v17, 4  ;;  %3499 = vmatprep.mubr.f32.mxu1 %v13574_v3  ;;  %v11578_v16 = vld [vmem:[%s15850_s5 + $0x408] ss:$16 sps:$4 sm:$0xff]  }
 0x3cc   : > { %v3178_v27 = vmax.f32 %v3158_v18, 0.0  ;;  %v3160_v28 = vadd.f32 %v13534_v52, %v3105_v22  ;;  %v3107_v30 = vpop.f32.mrb[59].mxu0  ;;  %v3430_v32 = vrot.slane %v3419_v20, 4  ;;  %v11586_v17 = vld [vmem:[%s15850_s5 + $0x42c] ss:$16 sps:$4 sm:$0xff]  }
 0x3cd   : > { %v3179_v33 = vmax.f32 %v3159_v21, 0.0  ;;  %v3161_v34 = vadd.f32 %v13538_v53, %v3107_v30  ;;  %v3591_v35 = vld [vmem:[#allocation3 + $0x60] sm:$0xfc]  ;;  %v3429_v38 = vsel %vm3426_vm5, %v3427_v25, %v3428_v26  ;;  %v11590_v18 = vld [vmem:[%s15850_s5 + $0x448] ss:$16 sps:$4 sm:$0xff]  }
 0x3ce   : > { %3198 = vst [vmem:[#allocation3 + $0x80] sm:$0xff] %v3178_v27  ;;  %v3180_v43 = vmax.f32 %v3160_v28, 0.0  ;;  %v3432_v42 = vsel %vm3426_vm5, %v3430_v32, %v3431_v24  ;;  %v3592_v36 = vld [vmem:[#allocation3 + $0x68] sm:$0xfc]  ;;  %v3599_v41 = vrot.slane %v3591_v35, 2 }
 0x3cf   : > { %3199 = vst [vmem:[#allocation3 + $0x88] sm:$0xff] %v3179_v33  ;;  %v3181_v37 = vmax.f32 %v3161_v34, 0.0  ;;  %3435 = vmatprep.subr.mxu1 %v3432_v42  ;;  %v3593_v39 = vld [vmem:[#allocation3 + $0x70] sm:$0x3]  ;;  %v3602_v53 = vrot.slane %v3592_v36, 2 }
 0x3d0   : > { %3200 = vst [vmem:[#allocation3 + $0x90] sm:$0xff] %v3180_v43  ;;  %3436 = vmatpush1.msra.mxu1 %v3429_v38  ;;  %v3594_v52 = vld [vmem:[#allocation3 + $0x78] sm:$0x3]  ;;  %v3600_v44 = vrot.slane %v3593_v39, 2  ;;  %v3762_v0 = vld [vmem:[#allocation3 + $0x78] sm:$0xf0] }
 0x3d1   : > { %3201 = vst [vmem:[#allocation3 + $0x98] sm:$0xff] %v3181_v37  ;;  %9808 = vmatmul.mubr.msk.f32.vlgmr.msra.gmra.mrb[28].mxu1 %vm3235_vm3, %v13568_v50  ;;  %3506 = vmatprep.subr.mxu1 %v3432_v42  ;;  %v3603_v45 = vrot.slane %v3594_v52, 2  ;;  %v11596_v19 = vld [vmem:[%s15850_s5 + $0x468] ss:$16 sps:$4 sm:$0xff]   ;;  %v11604_v20 = vld [vmem:[%s15850_s5 + $0x48c] ss:$16 sps:$4 sm:$0xff]  }
 0x3d2   : > { %3507 = vmatpush1.msra.mxu1 %v3429_v38  ;;  %3570 = vmatprep.mubr.f32.mxu1 %v13574_v3  ;;  %v3601_v46 = vsel %vm3224_vm1, %v3599_v41, %v3600_v44  ;;  %v11602_v21 = vld [vmem:[%s15850_s5 + $0x488] ss:$16 sps:$4 sm:$0xff]   ;;  %v11610_v22 = vld [vmem:[%s15850_s5 + $0x4ac] ss:$16 sps:$4 sm:$0xff]   ;;  %v11611_v25 = vld [vmem:[%s15850_s5 + $0x300] ss:$16 sps:$4 sm:$0xff]  }
 0x3d3   : > { %v3604_v47 = vsel %vm3224_vm1, %v3602_v53, %v3603_v45  ;;  %v3607_v55 = vmax.f32 %v3172_v31, %v3601_v46  ;;  %v3761_v31 = vld [vmem:[#allocation3 + $0x70] sm:$0xf0]  ;;  %v11608_v24 = vld [vmem:[%s15850_s5 + $0x4a8] ss:$16 sps:$4 sm:$0xff]   ;;  %v11616_v28 = vld [vmem:[%s15850_s5 + $0x4cc] ss:$16 sps:$4 sm:$0xff]  }
 0x3d4   : > { %v3608_v54 = vmax.f32 %v3173_v1, %v3604_v47  ;;  %v11613_v26 = vld [vmem:[%s15850_s5 + $0x304] ss:$16 sps:$4 sm:$0xff]   ;;  %v11614_v27 = vld [vmem:[%s15850_s5 + $0x4c8] ss:$16 sps:$4 sm:$0xff]   ;;  %v11622_v32 = vld [vmem:[%s15850_s5 + $0x4ec] ss:$16 sps:$4 sm:$0xff]  }
 0x3d5   : > { %9809 = vmatmul.mubr.msk.f32.vlgmr.msra.gmra.mrb[30].mxu1 %vm3235_vm3, %v13579_v4  ;;  %v3765_v56 = vld [vmem:[#allocation3 + $0x80] sm:$0xc0]  ;;  %v3763_v63 = vld [vmem:[#allocation3 + $0x80] sm:$0xf]  ;;  %4469 = vmatprep.subr.bf16.mxu0 %v11613_v26  ;;  %v11620_v34 = vld [vmem:[%s15850_s5 + $0x4e8] ss:$16 sps:$4 sm:$0xff]  }
 0x3d6   : > { %3609 = vmatprep.subr.mxu1 %v3608_v54  ;;  %3673 = vmatprep.mubr.f32.mxu1 %v13574_v3  ;;  %v3766_v57 = vld [vmem:[#allocation3 + $0x88] sm:$0xc0]  ;;  %v3773_v61 = vrot.slane %v3765_v56, 2  ;;  %v3764_v23 = vld [vmem:[#allocation3 + $0x88] sm:$0xf] }
 0x3d7   : > { %3610 = vmatpush1.msra.mxu1 %v3607_v55  ;;  %v3767_v58 = vld [vmem:[#allocation3 + $0x90] sm:$0x3f]  ;;  %v3776_v29 = vrot.slane %v3766_v57, 2  ;;  %4470 = vmatpush1.bf16.msra.mxu0 %v11611_v25  ;;  %v11628_v43 = vld [vmem:[%s15850_s5 + $0x50c] ss:$16 sps:$4 sm:$0xff]  }
 0x3d8   : > { %3680 = vmatprep.subr.mxu1 %v3608_v54  ;;  %v3768_v60 = vld [vmem:[#allocation3 + $0x98] sm:$0x3f]  ;;  %v3774_v62 = vrot.slane %v3767_v58, 2  ;;  %v11619_v30 = vld [vmem:[%s15850_s5 + $0x324] ss:$16 sps:$4 sm:$0xff]  }
 0x3d9   : > { %9810 = vmatmul.mubr.msk.f32.vlgmr.msra.gmra.mrb[32].mxu1 %vm3235_vm3, %v13568_v50  ;;  %v3777_v1 = vrot.slane %v3768_v60, 2  ;;  %v11617_v33 = vld [vmem:[%s15850_s5 + $0x320] ss:$16 sps:$4 sm:$0xff]   ;;  %4471 = vmatprep.subr.bf16.mxu0 %v11619_v30  ;;  %v11625_v35 = vld [vmem:[%s15850_s5 + $0x344] ss:$16 sps:$4 sm:$0xff]  }
 0x3da   : > { %3681 = vmatpush1.msra.mxu1 %v3607_v55  ;;  %3744 = vmatprep.mubr.f32.mxu1 %v13574_v3  ;;  %v3775_v8 = vsel %vm3224_vm1, %v3773_v61, %v3774_v62  ;;  %v3785_v59 = vmax.f32 %v3763_v63, %v3774_v62  ;;  %v11623_v42 = vld [vmem:[%s15850_s5 + $0x340] ss:$16 sps:$4 sm:$0xff]   ;;  %v11626_v36 = vld [vmem:[%s15850_s5 + $0x508] ss:$16 sps:$4 sm:$0xff]   ;;  %v11631_v37 = vld [vmem:[%s15850_s5 + $0x364] ss:$16 sps:$4 sm:$0xff]  }
 0x3db   : > { %v3778_v2 = vsel %vm3224_vm1, %v3776_v29, %v3777_v1  ;;  %v3786_v6 = vmax.f32 %v3764_v23, %v3777_v1  ;;  %v3783_v7 = vmax.f32 %v3761_v31, %v3775_v8  ;;  %4472 = vmatpush1.bf16.msra.mxu0 %v11617_v33  ;;  %v11634_v38 = vld [vmem:[%s15850_s5 + $0x52c] ss:$16 sps:$4 sm:$0xff]   ;;  %v11629_v39 = vld [vmem:[%s15850_s5 + $0x360] ss:$16 sps:$4 sm:$0xff]   ;;  %v11632_v52 = vld [vmem:[%s15850_s5 + $0x528] ss:$16 sps:$4 sm:$0xff]  }
 0x3dc   : > { %v3784_v5 = vmax.f32 %v3762_v0, %v3778_v2  ;;  %v3792_v11 = vrot.slane %v3785_v59, 4  ;;  %4473 = vmatprep.subr.bf16.mxu0 %v11625_v35  ;;  %v11637_v41 = vld [vmem:[%s15850_s5 + $0x384] ss:$16 sps:$4 sm:$0xff]   ;;  %v11640_v44 = vld [vmem:[%s15850_s5 + $0x54c] ss:$16 sps:$4 sm:$0xff]  }
 0x3dd   : > { %9811 = vmatmul.mubr.msk.f32.vlgmr.msra.gmra.mrb[34].mxu1 %vm3235_vm3, %v13579_v4  ;;  %v3795_v9 = vrot.slane %v3786_v6, 4  ;;  %v3791_v10 = vrot.slane %v3783_v7, 4  ;;  %v11635_v53 = vld [vmem:[%s15850_s5 + $0x380] ss:$16 sps:$4 sm:$0xff]   ;;  %v11638_v45 = vld [vmem:[%s15850_s5 + $0x548] ss:$16 sps:$4 sm:$0xff]  }
 0x3de   : > { %v3794_v12 = vrot.slane %v3784_v5, 4  ;;  %3863 = vmatprep.mubr.f32.mxu1 %v13574_v3  ;;  %v11643_v46 = vld [vmem:[%s15850_s5 + $0x3a4] ss:$16 sps:$4 sm:$0xff]   ;;  %v11646_v47 = vld [vmem:[%s15850_s5 + $0x56c] ss:$16 sps:$4 sm:$0xff]  }
 0x3df   : > { %v3793_v14 = vsel %vm3426_vm5, %v3791_v10, %v3792_v11  ;;  %4474 = vmatpush1.bf16.msra.mxu0 %v11623_v42  ;;  %v11641_v54 = vld [vmem:[%s15850_s5 + $0x3a0] ss:$16 sps:$4 sm:$0xff]   ;;  %v11644_v55 = vld [vmem:[%s15850_s5 + $0x568] ss:$16 sps:$4 sm:$0xff]   ;;  %v11649_v57 = vld [vmem:[%s15850_s5 + $0x3c4] ss:$16 sps:$4 sm:$0xff]  }
 0x3e0   : > { %v3796_v13 = vsel %vm3426_vm5, %v3794_v12, %v3795_v9  ;;  %4475 = vmatprep.subr.bf16.mxu0 %v11631_v37  ;;  %v11647_v56 = vld [vmem:[%s15850_s5 + $0x3c0] ss:$16 sps:$4 sm:$0xff]   ;;  %v11650_v58 = vld [vmem:[%s15850_s5 + $0x588] ss:$16 sps:$4 sm:$0xff]   ;;  %v11652_v60 = vld [vmem:[%s15850_s5 + $0x58c] ss:$16 sps:$4 sm:$0xff]  }
 0x3e1   : > { %3799 = vmatprep.subr.mxu1 %v3796_v13  ;;  %v11655_v61 = vld [vmem:[%s15850_s5 + $0x3e4] ss:$16 sps:$4 sm:$0xff]   ;;  %v11658_v62 = vld [vmem:[%s15850_s5 + $0x5ac] ss:$16 sps:$4 sm:$0xff]   ;;  %v11653_v29 = vld [vmem:[%s15850_s5 + $0x3e0] ss:$16 sps:$4 sm:$0xff]  }
 0x3e2   : > { %3800 = vmatpush1.msra.mxu1 %v3793_v14  ;;  %v11656_v1 = vld [vmem:[%s15850_s5 + $0x5a8] ss:$16 sps:$4 sm:$0xff]   ;;  %v11661_v63 = vld [vmem:[%s15850_s5 + $0x20c] ss:$16 sps:$4 sm:$0xff]   ;;  %v11676_v0 = vld [vmem:[%s15850_s5 + $0x604] ss:$16 sps:$4 sm:$0xff]  }
 0x3e3   : > { %9812 = vmatmul.mubr.msk.f32.vlgmr.msra.gmra.mrb[36].mxu1 %vm3235_vm3, %v13568_v50  ;;  %3870 = vmatprep.subr.mxu1 %v3796_v13  ;;  %v11584_v50 = vld [vmem:[%s15850_s5 + $0x428] ss:$16 sps:$4 sm:$0xff]   ;;  %v11664_v23 = vld [vmem:[%s15850_s5 + $0x5cc] ss:$16 sps:$4 sm:$0xff]   ;;  %v4027_v37 = vld [vmem:[#allocation4 + $0x30] sm:$0x1] }
 0x3e4   : > { %3871 = vmatpush1.msra.mxu1 %v3793_v14  ;;  %3934 = vmatprep.mubr.f32.mxu1 %v13574_v3  ;;  %v11592_v3 = vld [vmem:[%s15850_s5 + $0x44c] ss:$16 sps:$4 sm:$0xff]   ;;  %v11662_v31 = vld [vmem:[%s15850_s5 + $0x5c8] ss:$16 sps:$4 sm:$0xff]  }
 0x3e5   : > { %5436 = vmatprep.subr.bf16.mxu1 %v11580_v15  ;;  %4476 = vmatpush1.bf16.msra.mxu0 %v11629_v39  ;;  %v11670_v8 = vld [vmem:[%s15850_s5 + $0x5ec] ss:$16 sps:$4 sm:$0xff]   ;;  %v11668_v59 = vld [vmem:[%s15850_s5 + $0x5e8] ss:$16 sps:$4 sm:$0xff]  }
 0x3e6   : > { %4477 = vmatprep.subr.bf16.mxu0 %v11637_v41 }
 0x3e7   : > { %9813 = vmatmul.mubr.msk.f32.vlgmr.msra.gmra.mrb[38].mxu1 %vm3235_vm3, %v13579_v4  ;;  %v11598_v4 = vld [vmem:[%s15850_s5 + $0x46c] ss:$16 sps:$4 sm:$0xff]  }
 0x3e8   : > { %5437 = vmatpush1.bf16.msra.mxu1 %v11578_v16 }
 0x3e9   : > { %5438 = vmatprep.subr.bf16.mxu1 %v11586_v17  ;;  %4478 = vmatpush1.bf16.msra.mxu0 %v11635_v53 }
 0x3ea   : > { %4479 = vmatprep.subr.bf16.mxu0 %v11643_v46 }
 0x3ec   : > { %5439 = vmatpush1.bf16.msra.mxu1 %v11584_v50 }
 0x3ed   : > { %5440 = vmatprep.subr.bf16.mxu1 %v11592_v3  ;;  %4480 = vmatpush1.bf16.msra.mxu0 %v11641_v54 }
 0x3ee   : > { %4481 = vmatprep.subr.bf16.mxu0 %v11649_v57 }
 0x3f0   : > { %5441 = vmatpush1.bf16.msra.mxu1 %v11590_v18 }
 0x3f1   : > { %5442 = vmatprep.subr.bf16.mxu1 %v11598_v4  ;;  %4482 = vmatpush1.bf16.msra.mxu0 %v11647_v56 }
 0x3f2   : > { %4483 = vmatprep.subr.bf16.mxu0 %v11655_v61 }
 0x3f4   : > { %5443 = vmatpush1.bf16.msra.mxu1 %v11596_v19 }
 0x3f5   : > { %5444 = vmatprep.subr.bf16.mxu1 %v11604_v20  ;;  %4484 = vmatpush1.bf16.msra.mxu0 %v11653_v29 }
 0x3f6   : > { %4504 = vmatprep.subr.bf16.mxu0 %v11661_v63 }
 0x3f8   : > { %5445 = vmatpush1.bf16.msra.mxu1 %v11602_v21 }
 0x3f9   : > { %5446 = vmatprep.subr.bf16.mxu1 %v11610_v22 }
 0x3fc   : > { %5447 = vmatpush1.bf16.msra.mxu1 %v11608_v24 }
 0x3fd   : > { %5448 = vmatprep.subr.bf16.mxu1 %v11616_v28 }
 0x400   : > { %5449 = vmatpush1.bf16.msra.mxu1 %v11614_v27 }
 0x401   : > { %5450 = vmatprep.subr.bf16.mxu1 %v11622_v32 }
 0x404   : > { %5451 = vmatpush1.bf16.msra.mxu1 %v11620_v34 }
 0x405   : > { %5452 = vmatprep.subr.bf16.mxu1 %v11628_v43 }
 0x408   : > { %5453 = vmatpush1.bf16.msra.mxu1 %v11626_v36 }
 0x409   : > { %5454 = vmatprep.subr.bf16.mxu1 %v11634_v38 }
 0x40c   : > { %5455 = vmatpush1.bf16.msra.mxu1 %v11632_v52  ;;  %v4028_v52 = vld [vmem:[#allocation4 + $0x38] sm:$0x1] }
 0x40d   : > { %5456 = vmatprep.subr.bf16.mxu1 %v11640_v44 }
 0x410   : > { %5457 = vmatpush1.bf16.msra.mxu1 %v11638_v45 }
 0x411   : > { %5458 = vmatprep.subr.bf16.mxu1 %v11646_v47 }
 0x414   : > { %5459 = vmatpush1.bf16.msra.mxu1 %v11644_v55 }
 0x415   : > { %5460 = vmatprep.subr.bf16.mxu1 %v11652_v60 }
 0x418   : > { %5461 = vmatpush1.bf16.msra.mxu1 %v11650_v58 }
 0x419   : > { %5462 = vmatprep.subr.bf16.mxu1 %v11658_v62 }
 0x41c   : > { %5463 = vmatpush1.bf16.msra.mxu1 %v11656_v1 }
 0x41d   : > { %5464 = vmatprep.subr.bf16.mxu1 %v11664_v23 }
 0x420   : > { %5465 = vmatpush1.bf16.msra.mxu1 %v11662_v31 }
 0x421   : > { %5466 = vmatprep.subr.bf16.mxu1 %v11670_v8 }
 0x424   : > { %5467 = vmatpush1.bf16.msra.mxu1 %v11668_v59  ;;  %v11659_v59 = vld [vmem:[%s15850_s5 + $0x208] ss:$16 sps:$4 sm:$0xff]  }
 0x425   : > { %5907 = vmatprep.subr.bf16.mxu1 %v11676_v0 }
 0x499   : > { %v3305_v2 = vpop.f32.mrb[24].mxu1 }
 0x49a   : > { %v3307_v6 = vpop.f32.mrb[25].mxu1 }
 0x49d   : > { %v3379_v7 = vpop.f32.mrb[26].mxu1 }
 0x49e   : > { %v3384_v5 = vmax.f32 %v3305_v2, %v3379_v7  ;;  %v3381_v9 = vpop.f32.mrb[27].mxu1  ;;  %v11667_v7 = vld [vmem:[%s15850_s5 + $0x22c] ss:$16 sps:$4 sm:$0xff]  }
 0x49f   : > { %v3385_v10 = vmax.f32 %v3307_v6, %v3381_v9 }
 0x4a0   : > { %v3388_v11 = vrot.slane %v3384_v5, 1 }
 0x4a1   : > { %v3389_v12 = vrot.slane %v3385_v10, 1 }
 0x4a2   : > { %3392 = vst [vmem:[#allocation4 + $0x10] ss:$-12 sps:$4 sm:$0x87] %v3388_v11  }
 0x4a3   : > { %3393 = vst [vmem:[#allocation4 + $0x18] ss:$-12 sps:$4 sm:$0x87] %v3389_v12  }
 0x4a4   : > { %v3501_v13 = vpop.f32.mrb[28].mxu1 }
 0x4a5   : > { %v3503_v14 = vpop.f32.mrb[29].mxu1 }
 0x4a8   : > { %v3572_v15 = vpop.f32.mrb[30].mxu1 }
 0x4a9   : > { %v3577_v16 = vmax.f32 %v3501_v13, %v3572_v15  ;;  %v3574_v17 = vpop.f32.mrb[31].mxu1  ;;  %v4025_v34 = vld [vmem:[#allocation4] sm:$0xfe]  ;;  %v11665_v13 = vld [vmem:[%s15850_s5 + $0x228] ss:$16 sps:$4 sm:$0xff]  }
 0x4aa   : > { %v3578_v50 = vmax.f32 %v3503_v14, %v3574_v17  ;;  %v4026_v30 = vld [vmem:[#allocation4 + $0x8] sm:$0xfe]  ;;  %v4977_v11 = vld [vmem:[#allocation4] sm:$0xfc] }
 0x4ab   : > { %v3581_v3 = vrot.slane %v3577_v16, 3  ;;  %v4978_v9 = vld [vmem:[#allocation4 + $0x8] sm:$0xfc] }
 0x4ac   : > { %v3582_v18 = vrot.slane %v3578_v50, 3  ;;  %v3675_v4 = vpop.f32.mrb[32].mxu1  ;;  %v11673_v17 = vld [vmem:[%s15850_s5 + $0x24c] ss:$16 sps:$4 sm:$0xff]  }
 0x4ad   : > { %3585 = vst [vmem:[#allocation4 + $0x20] ss:$-12 sps:$4 sm:$0xe1] %v3581_v3   ;;  %v3677_v19 = vpop.f32.mrb[33].mxu1 }
 0x4ae   : > { %3586 = vst [vmem:[#allocation4 + $0x28] ss:$-12 sps:$4 sm:$0xe1] %v3582_v18  }
 0x4b0   : > { %v3746_v20 = vpop.f32.mrb[34].mxu1 }
 0x4b1   : > { %v3751_v21 = vmax.f32 %v3675_v4, %v3746_v20  ;;  %v3748_v22 = vpop.f32.mrb[35].mxu1  ;;  %v11671_v20 = vld [vmem:[%s15850_s5 + $0x248] ss:$16 sps:$4 sm:$0xff]  }
 0x4b2   : > { %v3752_v24 = vmax.f32 %v3677_v19, %v3748_v22 }
 0x4b3   : > { %v3755_v25 = vrot.slane %v3751_v21, 5  ;;  %v11674_v21 = vld [vmem:[%s15850_s5 + $0x600] ss:$16 sps:$4 sm:$0xff]  }
 0x4b4   : > { %v3756_v26 = vrot.slane %v3752_v24, 5  ;;  %v13769_v27 = vld [vmem:[#allocation4 + $0x10] sm:$0xff] }
 0x4b5   : > { %3759 = vst [vmem:[#allocation4 + $0x20] sm:$0x78] %v3755_v25  ;;  %v13771_v28 = vld [vmem:[#allocation4 + $0x18] sm:$0xff]  ;;  %v4029_v43 = vpack.c.bf16 %v13769_v27, %v4025_v34  ;;  %v4981_v15 = vpack.c.bf16 %v13769_v27, %v4977_v11 }
 0x4b6   : > { %3760 = vst [vmem:[#allocation4 + $0x28] sm:$0x78] %v3756_v26  ;;  %v3865_v32 = vpop.f32.mrb[36].mxu1  ;;  %v4030_v33 = vpack.c.bf16 %v13771_v28, %v4026_v30  ;;  %v4982_v10 = vpack.c.bf16 %v13771_v28, %v4978_v9  ;;  %v11677_v34 = vld [vmem:[%s15850_s5 + $0x268] ss:$16 sps:$4 sm:$0xff]  }
 0x4b7   : > { %v3867_v35 = vpop.f32.mrb[37].mxu1  ;;  %v4102_v41 = vshll.u32 %v4029_v43, 16  ;;  %v4100_v1 = vshrl.u32 %v4029_v43, 16  ;;  %v5055_v22 = vrot.slane %v4981_v15, 1  ;;  %v11685_v43 = vld [vmem:[%s15850_s5 + $0x28c] ss:$16 sps:$4 sm:$0xff]  }
 0x4b8   : > { %v4114_v36 = vshll.u32 %v4030_v33, 16  ;;  %v4112_v61 = vshrl.u32 %v4030_v33, 16  ;;  %v5058_v18 = vrot.slane %v4982_v10, 1  ;;  %v11682_v33 = vld [vmem:[%s15850_s5 + $0x624] ss:$16 sps:$4 sm:$0xff]  }
 0x4b9   : > { %v4104_v58 = vrot.slane %v4102_v41, 1  ;;  %v11692_v9 = vld [vmem:[%s15850_s5 + $0x660] ss:$16 sps:$4 sm:$0xff]  }
 0x4ba   : > { %v3936_v42 = vpop.f32.mrb[38].mxu1  ;;  %v4116_v57 = vrot.slane %v4114_v36, 1 }
 0x4bb   : > { %v3941_v38 = vmax.f32 %v3865_v32, %v3936_v42  ;;  %v3938_v39 = vpop.f32.mrb[39].mxu1  ;;  %v4105_v0 = vor.u32 %v4104_v58, %v4100_v1  ;;  %v11679_v32 = vld [vmem:[%s15850_s5 + $0x26c] ss:$16 sps:$4 sm:$0xff]   ;;  %v8146_v58 = vld [vmem:[#allocation4 + $0x40] sm:$0x3f] }
 0x4bc   : > { %v3942_v44 = vmax.f32 %v3867_v35, %v3938_v39  ;;  %v13775_v53 = vld [vmem:[#allocation4 + $0x20] sm:$0xff]  ;;  %v4117_v23 = vor.u32 %v4116_v57, %v4112_v61  ;;  %v8144_v57 = vld [vmem:[#allocation4 + $0x10] sm:$0xc0] }
 0x4bd   : > { %v3945_v45 = vrot.slane %v3941_v38, 7  ;;  %v13777_v46 = vld [vmem:[#allocation4 + $0x28] sm:$0xff]  ;;  %v4031_v47 = vpack.c.bf16 %v4027_v37, %v13775_v53  ;;  %v13782_v54 = vpack.c.bf16 %v13775_v53, %v13769_v27  ;;  %v11680_v35 = vld [vmem:[%s15850_s5 + $0x620] ss:$16 sps:$4 sm:$0xff]   ;;  %v11688_v39 = vld [vmem:[%s15850_s5 + $0x644] ss:$16 sps:$4 sm:$0xff]  }
 0x4be   : > { %v3946_v55 = vrot.slane %v3942_v44, 7  ;;  %v4032_v56 = vpack.c.bf16 %v4028_v52, %v13777_v46  ;;  %v13787_v29 = vpack.c.bf16 %v13777_v46, %v13771_v28  ;;  %v7075_v37 = vld [vmem:[#allocation4 + $0x28] sm:$0xff]  ;;  %v7074_v41 = vld [vmem:[#allocation4 + $0x20] sm:$0xff] }
 0x4bf   : > { %3949 = vst [vmem:[#allocation4 + $0x30] sm:$0x1e] %v3945_v45  ;;  %v4107_v60 = vshll.u32 %v4031_v47, 16  ;;  %v4123_v19 = vshrl.u32 %v4031_v47, 16  ;;  %v8147_v38 = vld [vmem:[#allocation4 + $0x48] sm:$0x3f]  ;;  %v8148_v1 = vpack.c.bf16 %v7074_v41, %v8144_v57 }
 0x4c0   : > { %3950 = vst [vmem:[#allocation4 + $0x38] sm:$0x1e] %v3946_v55  ;;  %v4119_v62 = vshll.u32 %v4032_v56, 16  ;;  %v4126_v8 = vshrl.u32 %v4032_v56, 16  ;;  %v5500_v52 = vld [vmem:[#allocation4 + $0x8] sm:$0xc0] }
 0x4c1   : > { %v4109_v63 = vrot.slane %v4107_v60, 1  ;;  %v5504_v44 = vpack.c.bf16 %v13771_v28, %v5500_v52  ;;  %v8145_v45 = vld [vmem:[#allocation4 + $0x18] sm:$0xc0]  ;;  %v11683_v60 = vld [vmem:[%s15850_s5 + $0x288] ss:$16 sps:$4 sm:$0xff]   ;;  %v8221_v10 = vrot.slane %v8148_v1, 3 }
 0x4c2   : > { %v4121_v31 = vrot.slane %v4119_v62, 1  ;;  %v8149_v55 = vpack.c.bf16 %v7075_v37, %v8145_v45  ;;  %v11686_v61 = vld [vmem:[%s15850_s5 + $0x640] ss:$16 sps:$4 sm:$0xff]   ;;  %v11719_v37 = vld [vmem:[%s15850_s5 + $0x348] ss:$16 sps:$4 sm:$0xff]  }
 0x4c3   : > { %v13797_v5 = vsel %vm4098_vm6, %v4105_v0, %v4109_v63  ;;  %v13824_v25 = vor.u32 %v4123_v19, %v4109_v63  ;;  %v11691_v63 = vld [vmem:[%s15850_s5 + $0x2ac] ss:$16 sps:$4 sm:$0xff]   ;;  %v11701_v19 = vld [vmem:[%s15850_s5 + $0x2e8] ss:$16 sps:$4 sm:$0xff]   ;;  %v11730_v52 = vld [vmem:[%s15850_s5 + $0x724] ss:$16 sps:$4 sm:$0xff]  }
 0x4c4   : > { %v4122_v2 = vsel %vm4098_vm6, %v4117_v23, %v4121_v31  ;;  %v13792_v6 = vor.u32 %v4126_v8, %v4121_v31  ;;  %v5580_v23 = vrot.slane %v5504_v44, 3  ;;  %v11694_v31 = vld [vmem:[%s15850_s5 + $0x664] ss:$16 sps:$4 sm:$0xff]   ;;  %v11725_v41 = vld [vmem:[%s15850_s5 + $0x368] ss:$16 sps:$4 sm:$0xff]  }
 0x4c5   : > { %4485 = vmatprep.mubr.bf16.mxu0 %v4122_v2  ;;  %v11728_v44 = vld [vmem:[%s15850_s5 + $0x720] ss:$16 sps:$4 sm:$0xff]   ;;  %v11733_v45 = vld [vmem:[%s15850_s5 + $0x38c] ss:$16 sps:$4 sm:$0xff]  }
 0x4c6   : > { %4486 = vmatmul.mubr.bf16.vlgmr.msra.gmra.mrb[60].mxu0 %v13797_v5  ;;  %v4979_v12 = vld [vmem:[#allocation4 + $0x30] sm:$0x3]  ;;  %v11739_v57 = vld [vmem:[%s15850_s5 + $0x3ac] ss:$16 sps:$4 sm:$0xff]  }
 0x4c7   : > { %4505 = vmatpush1.bf16.msra.mxu0 %v11659_v59  ;;  %4495 = vmatprep.mubr.bf16.mxu0 %v13792_v6  ;;  %v4980_v14 = vld [vmem:[#allocation4 + $0x38] sm:$0x3]  ;;  %v4983_v16 = vpack.c.bf16 %v4979_v12, %v13775_v53  ;;  %v6567_v47 = vld [vmem:[#allocation4 + $0x30] sm:$0xff]  ;;  %v8224_v59 = vrot.slane %v8149_v55, 3  ;;  %v11697_v12 = vld [vmem:[%s15850_s5 + $0x2cc] ss:$16 sps:$4 sm:$0xff]  }
 0x4c8   : > { %4506 = vmatprep.subr.bf16.mxu0 %v11667_v7  ;;  %v4984_v50 = vpack.c.bf16 %v4980_v14, %v13777_v46  ;;  %v5502_v26 = vld [vmem:[#allocation4 + $0x38] sm:$0x3f]  ;;  %v8150_v8 = vpack.c.bf16 %v8146_v58, %v6567_v47  ;;  %v11736_v47 = vld [vmem:[%s15850_s5 + $0x744] ss:$16 sps:$4 sm:$0xff]  }
 0x4c9   : > { %v13811_v3 = vrot.slane %v4983_v16, 1  ;;  %v5506_v42 = vpack.c.bf16 %v5502_v26, %v13777_v46  ;;  %v6568_v36 = vld [vmem:[#allocation4 + $0x38] sm:$0xff]  ;;  %v11742_v58 = vld [vmem:[%s15850_s5 + $0x764] ss:$16 sps:$4 sm:$0xff]  }
 0x4ca   : > { %v13813_v4 = vrot.slane %v4984_v50, 1  ;;  %v8151_v56 = vpack.c.bf16 %v8147_v38, %v6568_v36  ;;  %v11689_v7 = vld [vmem:[%s15850_s5 + $0x2a8] ss:$16 sps:$4 sm:$0xff]   ;;  %v13880_v11 = vrot.slane %v8150_v8, 3  ;;  %v11703_v50 = vld [vmem:[%s15850_s5 + $0x2ec] ss:$16 sps:$4 sm:$0xff]  }
 0x4cb   : > { %4507 = vmatpush1.bf16.msra.mxu0 %v11665_v13  ;;  %v13828_v30 = vsel %vm5054_vm7, %v5055_v22, %v13811_v3  ;;  %v13859_v62 = vrot.slane %v5506_v42, 3  ;;  %v11700_v13 = vld [vmem:[%s15850_s5 + $0x684] ss:$16 sps:$4 sm:$0xff]   ;;  %v11695_v16 = vld [vmem:[%s15850_s5 + $0x2c8] ss:$16 sps:$4 sm:$0xff]  }
 0x4cc   : > { %4508 = vmatprep.subr.bf16.mxu0 %v11673_v17  ;;  %v13822_v24 = vsel %vm5054_vm7, %v5058_v18, %v13813_v4  ;;  %v13868_v0 = vrot.slane %v8151_v56, 3  ;;  %v13895_v15 = vsel %vm5576_vm8, %v8221_v10, %v13880_v11  ;;  %v11698_v17 = vld [vmem:[%s15850_s5 + $0x680] ss:$16 sps:$4 sm:$0xff]   ;;  %v11706_v18 = vld [vmem:[%s15850_s5 + $0x6a4] ss:$16 sps:$4 sm:$0xff]  }
 0x4cd   : > { %5468 = vmatprep.mubr.bf16.mxu1 %v13822_v24  ;;  %v11712_v22 = vld [vmem:[%s15850_s5 + $0x6c4] ss:$16 sps:$4 sm:$0xff]   ;;  %v11707_v26 = vld [vmem:[%s15850_s5 + $0x308] ss:$16 sps:$4 sm:$0xff]   ;;  %v11721_v42 = vld [vmem:[%s15850_s5 + $0x34c] ss:$16 sps:$4 sm:$0xff]  }
 0x4ce   : > { %4496 = vmatmul.mubr.bf16.gmra.mrb[64].mxu0 %v13824_v25  ;;  %5469 = vmatmul.mubr.bf16.vlgmr.msra.gmra.mrb[40].mxu1 %v13828_v30  ;;  %v13891_v14 = vsel %vm5576_vm8, %v8224_v59, %v13868_v0  ;;  %v11724_v36 = vld [vmem:[%s15850_s5 + $0x704] ss:$16 sps:$4 sm:$0xff]   ;;  %v11722_v38 = vld [vmem:[%s15850_s5 + $0x700] ss:$16 sps:$4 sm:$0xff]   ;;  %v11731_v55 = vld [vmem:[%s15850_s5 + $0x388] ss:$16 sps:$4 sm:$0xff]  }
 0x4cf   : > { %4509 = vmatpush1.bf16.msra.mxu0 %v11671_v20  ;;  %5908 = vmatpush1.bf16.msra.mxu1 %v11674_v21  ;;  %v11704_v20 = vld [vmem:[%s15850_s5 + $0x6a0] ss:$16 sps:$4 sm:$0xff]   ;;  %v11709_v21 = vld [vmem:[%s15850_s5 + $0x30c] ss:$16 sps:$4 sm:$0xff]   ;;  %v11754_v59 = vld [vmem:[%s15850_s5 + $0x7a4] ss:$16 sps:$4 sm:$0xff]  }
 0x4d0   : > { %4536 = vmatprep.mubr.bf16.mxu0 %v4122_v2  ;;  %5478 = vmatprep.mubr.bf16.mxu1 %v13813_v4  ;;  %v13872_v2 = vsel %vm5576_vm8, %v5580_v23, %v13859_v62  ;;  %v11734_v56 = vld [vmem:[%s15850_s5 + $0x740] ss:$16 sps:$4 sm:$0xff]   ;;  %v11745_v1 = vld [vmem:[%s15850_s5 + $0x3cc] ss:$16 sps:$4 sm:$0xff]   ;;  %v11743_v23 = vld [vmem:[%s15850_s5 + $0x3c8] ss:$16 sps:$4 sm:$0xff]  }
 0x4d1   : > { %4510 = vmatprep.subr.bf16.mxu0 %v11679_v32  ;;  %5909 = vmatprep.subr.bf16.mxu1 %v11682_v33  ;;  %v11710_v32 = vld [vmem:[%s15850_s5 + $0x6c0] ss:$16 sps:$4 sm:$0xff]   ;;  %v11715_v33 = vld [vmem:[%s15850_s5 + $0x32c] ss:$16 sps:$4 sm:$0xff]   ;;  %v11757_v10 = vld [vmem:[%s15850_s5 + $0x4] ss:$16 sps:$4 sm:$0xff]  }
 0x4d2   : > { %v11751_v8 = vld [vmem:[%s15850_s5 + $0x3ec] ss:$16 sps:$4 sm:$0xff]  }
 0x4d3   : > { %4511 = vmatpush1.bf16.msra.mxu0 %v11677_v34  ;;  %5910 = vmatpush1.bf16.msra.mxu1 %v11680_v35  ;;  %v11718_v34 = vld [vmem:[%s15850_s5 + $0x6e4] ss:$16 sps:$4 sm:$0xff]   ;;  %v11713_v35 = vld [vmem:[%s15850_s5 + $0x328] ss:$16 sps:$4 sm:$0xff]  }
 0x4d4   : > { %4512 = vmatprep.subr.bf16.mxu0 %v11685_v43  ;;  %5911 = vmatprep.subr.bf16.mxu1 %v11688_v39  ;;  %v11716_v43 = vld [vmem:[%s15850_s5 + $0x6e0] ss:$16 sps:$4 sm:$0xff]   ;;  %v11727_v39 = vld [vmem:[%s15850_s5 + $0x36c] ss:$16 sps:$4 sm:$0xff]  }
 0x4d6   : > { %5479 = vmatmul.mubr.bf16.gmra.mrb[44].mxu1 %v13811_v3 }
 0x4d7   : > { %4513 = vmatpush1.bf16.msra.mxu0 %v11683_v60  ;;  %5912 = vmatpush1.bf16.msra.mxu1 %v11686_v61  ;;  %v11737_v60 = vld [vmem:[%s15850_s5 + $0x3a8] ss:$16 sps:$4 sm:$0xff]   ;;  %v11740_v61 = vld [vmem:[%s15850_s5 + $0x760] ss:$16 sps:$4 sm:$0xff]  }
 0x4d8   : > { %5939 = vmatprep.mubr.bf16.mxu1 %v13872_v2  ;;  %4514 = vmatprep.subr.bf16.mxu0 %v11691_v63  ;;  %v11748_v63 = vld [vmem:[%s15850_s5 + $0x784] ss:$16 sps:$4 sm:$0xff]  }
 0x4d9   : > { %5913 = vmatprep.subr.bf16.mxu1 %v11694_v31  ;;  %v11746_v31 = vld [vmem:[%s15850_s5 + $0x780] ss:$16 sps:$4 sm:$0xff]  }
 0x4db   : > { %4515 = vmatpush1.bf16.msra.mxu0 %v11689_v7  ;;  %5914 = vmatpush1.bf16.msra.mxu1 %v11692_v9  ;;  %v11749_v7 = vld [vmem:[%s15850_s5 + $0x3e8] ss:$16 sps:$4 sm:$0xff]   ;;  %v11752_v9 = vld [vmem:[%s15850_s5 + $0x7a0] ss:$16 sps:$4 sm:$0xff]  }
 0x4dc   : > { %4516 = vmatprep.subr.bf16.mxu0 %v11697_v12  ;;  %5915 = vmatprep.subr.bf16.mxu1 %v11700_v13  ;;  %v11760_v12 = vld [vmem:[%s15850_s5 + $0x7c4] ss:$16 sps:$4 sm:$0xff]   ;;  %v11755_v13 = vld [vmem:[%s15850_s5] ss:$16 sps:$4 sm:$0xff]  }
 0x4df   : > { %4517 = vmatpush1.bf16.msra.mxu0 %v11695_v16  ;;  %5916 = vmatpush1.bf16.msra.mxu1 %v11698_v17  ;;  %v5501_v16 = vld [vmem:[#allocation4 + $0x30] sm:$0x3f] }
 0x4e0   : > { %4518 = vmatprep.subr.bf16.mxu0 %v11703_v50  ;;  %5917 = vmatprep.subr.bf16.mxu1 %v11706_v18  ;;  %v11758_v17 = vld [vmem:[%s15850_s5 + $0x7c0] ss:$16 sps:$4 sm:$0xff]   ;;  %v11763_v50 = vld [vmem:[%s15850_s5 + $0x24] ss:$16 sps:$4 sm:$0xff]  }
 0x4e1   : > { %v11766_v18 = vld [vmem:[%s15850_s5 + $0x7e4] ss:$16 sps:$4 sm:$0xff]  }
 0x4e3   : > { %4519 = vmatpush1.bf16.msra.mxu0 %v11701_v19  ;;  %5918 = vmatpush1.bf16.msra.mxu1 %v11704_v20  ;;  %v5505_v19 = vpack.c.bf16 %v5501_v16, %v13775_v53  ;;  %v11761_v20 = vld [vmem:[%s15850_s5 + $0x20] ss:$16 sps:$4 sm:$0xff]   ;;  %v11817_v16 = vld [vmem:[%s15850_s5 + $0x144] ss:$16 sps:$4 sm:$0xff]  }
 0x4e4   : > { %4520 = vmatprep.subr.bf16.mxu0 %v11709_v21  ;;  %5919 = vmatprep.subr.bf16.mxu1 %v11712_v22  ;;  %v5499_v21 = vld [vmem:[#allocation4] sm:$0xc0]  ;;  %v11764_v22 = vld [vmem:[%s15850_s5 + $0x7e0] ss:$16 sps:$4 sm:$0xff]  }
 0x4e7   : > { %4521 = vmatpush1.bf16.msra.mxu0 %v11707_v26  ;;  %5920 = vmatpush1.bf16.msra.mxu1 %v11710_v32  ;;  %v5503_v26 = vpack.c.bf16 %v13769_v27, %v5499_v21  ;;  %v14045_v32 = vrot.slane %v5505_v19, 3  ;;  %v11823_v19 = vld [vmem:[%s15850_s5 + $0x164] ss:$16 sps:$4 sm:$0xff]   ;;  %v11826_v21 = vld [vmem:[%s15850_s5 + $0x72c] ss:$16 sps:$4 sm:$0xff]  }
 0x4e8   : > { %4522 = vmatprep.subr.bf16.mxu0 %v11715_v33  ;;  %5921 = vmatprep.subr.bf16.mxu1 %v11718_v34  ;;  %v11767_v33 = vld [vmem:[%s15850_s5 + $0x40] ss:$16 sps:$4 sm:$0xff]  }
 0x4e9   : > { %v5577_v34 = vrot.slane %v5503_v26, 3  ;;  %v11824_v26 = vld [vmem:[%s15850_s5 + $0x728] ss:$16 sps:$4 sm:$0xff]  }
 0x4eb   : > { %4523 = vmatpush1.bf16.msra.mxu0 %v11713_v35  ;;  %5922 = vmatpush1.bf16.msra.mxu1 %v11716_v43  ;;  %v11770_v35 = vld [vmem:[%s15850_s5 + $0x608] ss:$16 sps:$4 sm:$0xff]  }
 0x4ec   : > { %4524 = vmatprep.subr.bf16.mxu0 %v11721_v42  ;;  %5923 = vmatprep.subr.bf16.mxu1 %v11724_v36  ;;  %v3952_v43 = vld [vmem:[#allocation4 + $0x8] sm:$0xff]  ;;  %v11775_v42 = vld [vmem:[%s15850_s5 + $0x64] ss:$16 sps:$4 sm:$0xff]   ;;  %v14059_v36 = vsel %vm5576_vm8, %v5577_v34, %v14045_v32 }
 0x4ed   : > { %v11835_v34 = vld [vmem:[%s15850_s5 + $0x1a4] ss:$16 sps:$4 sm:$0xff]  }
 0x4ef   : > { %4525 = vmatpush1.bf16.msra.mxu0 %v11719_v37  ;;  %5924 = vmatpush1.bf16.msra.mxu1 %v11722_v38  ;;  %v14062_v37 = vpack.c.bf16 %v13771_v28, %v3952_v43  ;;  %v11778_v38 = vld [vmem:[%s15850_s5 + $0x62c] ss:$16 sps:$4 sm:$0xff]  }
 0x4f0   : > { %4526 = vmatprep.subr.bf16.mxu0 %v11727_v39  ;;  %5925 = vmatprep.subr.bf16.mxu1 %v11730_v52  ;;  %v11773_v39 = vld [vmem:[%s15850_s5 + $0x60] ss:$16 sps:$4 sm:$0xff]   ;;  %v11776_v52 = vld [vmem:[%s15850_s5 + $0x628] ss:$16 sps:$4 sm:$0xff]   ;;  %v11838_v43 = vld [vmem:[%s15850_s5 + $0x76c] ss:$16 sps:$4 sm:$0xff]  }
 0x4f3   : > { %4527 = vmatpush1.bf16.msra.mxu0 %v11725_v41  ;;  %5926 = vmatpush1.bf16.msra.mxu1 %v11728_v44  ;;  %v11784_v41 = vld [vmem:[%s15850_s5 + $0x64c] ss:$16 sps:$4 sm:$0xff]   ;;  %v11779_v44 = vld [vmem:[%s15850_s5 + $0x80] ss:$16 sps:$4 sm:$0xff]  }
 0x4f4   : > { %4528 = vmatprep.subr.bf16.mxu0 %v11733_v45  ;;  %5927 = vmatprep.subr.bf16.mxu1 %v11736_v47  ;;  %v11787_v45 = vld [vmem:[%s15850_s5 + $0xa4] ss:$16 sps:$4 sm:$0xff]   ;;  %v11782_v47 = vld [vmem:[%s15850_s5 + $0x648] ss:$16 sps:$4 sm:$0xff]  }
 0x4f7   : > { %4529 = vmatpush1.bf16.msra.mxu0 %v11731_v55  ;;  %5928 = vmatpush1.bf16.msra.mxu1 %v11734_v56  ;;  %v11790_v55 = vld [vmem:[%s15850_s5 + $0x66c] ss:$16 sps:$4 sm:$0xff]   ;;  %v11785_v56 = vld [vmem:[%s15850_s5 + $0xa0] ss:$16 sps:$4 sm:$0xff]  }
 0x4f8   : > { %4530 = vmatprep.subr.bf16.mxu0 %v11739_v57  ;;  %5929 = vmatprep.subr.bf16.mxu1 %v11742_v58  ;;  %v11793_v57 = vld [vmem:[%s15850_s5 + $0xc4] ss:$16 sps:$4 sm:$0xff]   ;;  %v11788_v58 = vld [vmem:[%s15850_s5 + $0x668] ss:$16 sps:$4 sm:$0xff]  }
 0x4fb   : > { %4531 = vmatpush1.bf16.msra.mxu0 %v11737_v60  ;;  %5930 = vmatpush1.bf16.msra.mxu1 %v11740_v61  ;;  %v11796_v60 = vld [vmem:[%s15850_s5 + $0x68c] ss:$16 sps:$4 sm:$0xff]   ;;  %v11799_v61 = vld [vmem:[%s15850_s5 + $0xe4] ss:$16 sps:$4 sm:$0xff]  }
 0x4fc   : > { %4532 = vmatprep.subr.bf16.mxu0 %v11745_v1  ;;  %5931 = vmatprep.subr.bf16.mxu1 %v11748_v63  ;;  %v11794_v1 = vld [vmem:[%s15850_s5 + $0x688] ss:$16 sps:$4 sm:$0xff]   ;;  %v11802_v63 = vld [vmem:[%s15850_s5 + $0x6ac] ss:$16 sps:$4 sm:$0xff]  }
 0x4ff   : > { %4533 = vmatpush1.bf16.msra.mxu0 %v11743_v23  ;;  %5932 = vmatpush1.bf16.msra.mxu1 %v11746_v31  ;;  %v11797_v23 = vld [vmem:[%s15850_s5 + $0xe0] ss:$16 sps:$4 sm:$0xff]   ;;  %v11805_v31 = vld [vmem:[%s15850_s5 + $0x104] ss:$16 sps:$4 sm:$0xff]  }
 0x500   : > { %4534 = vmatprep.subr.bf16.mxu0 %v11751_v8  ;;  %5933 = vmatprep.subr.bf16.mxu1 %v11754_v59  ;;  %v11800_v8 = vld [vmem:[%s15850_s5 + $0x6a8] ss:$16 sps:$4 sm:$0xff]   ;;  %v11808_v59 = vld [vmem:[%s15850_s5 + $0x6cc] ss:$16 sps:$4 sm:$0xff]  }
 0x503   : > { %4535 = vmatpush1.bf16.msra.mxu0 %v11749_v7  ;;  %5934 = vmatpush1.bf16.msra.mxu1 %v11752_v9  ;;  %v11803_v7 = vld [vmem:[%s15850_s5 + $0x100] ss:$16 sps:$4 sm:$0xff]   ;;  %v11811_v9 = vld [vmem:[%s15850_s5 + $0x124] ss:$16 sps:$4 sm:$0xff]  }
 0x504   : > { %4875 = vmatprep.subr.bf16.mxu0 %v11757_v10  ;;  %5935 = vmatprep.subr.bf16.mxu1 %v11760_v12  ;;  %v11806_v10 = vld [vmem:[%s15850_s5 + $0x6c8] ss:$16 sps:$4 sm:$0xff]   ;;  %v11814_v12 = vld [vmem:[%s15850_s5 + $0x6ec] ss:$16 sps:$4 sm:$0xff]  }
 0x506   : > { %4537 = vmatmul.mubr.bf16.vlgmr.msra.gmra.mrb[68].mxu0 %v13797_v5  ;;  %v11769_v5 = vld [vmem:[%s15850_s5 + $0x44] ss:$16 sps:$4 sm:$0xff]  }
 0x507   : > { %4546 = vmatprep.mubr.bf16.mxu0 %v13792_v6  ;;  %4876 = vmatpush1.bf16.msra.mxu0 %v11755_v13  ;;  %v11772_v6 = vld [vmem:[%s15850_s5 + $0x60c] ss:$16 sps:$4 sm:$0xff]   ;;  %v11809_v13 = vld [vmem:[%s15850_s5 + $0x120] ss:$16 sps:$4 sm:$0xff]  }
 0x508   : > { %5936 = vmatpush1.bf16.msra.mxu1 %v11758_v17  ;;  %4877 = vmatprep.subr.bf16.mxu0 %v11763_v50  ;;  %v11812_v17 = vld [vmem:[%s15850_s5 + $0x6e8] ss:$16 sps:$4 sm:$0xff]   ;;  %v11820_v50 = vld [vmem:[%s15850_s5 + $0x70c] ss:$16 sps:$4 sm:$0xff]  }
 0x509   : > { %5937 = vmatprep.subr.bf16.mxu1 %v11766_v18  ;;  %v11815_v18 = vld [vmem:[%s15850_s5 + $0x140] ss:$16 sps:$4 sm:$0xff]  }
 0x50b   : > { %4878 = vmatpush1.bf16.msra.mxu0 %v11761_v20  ;;  %v11818_v20 = vld [vmem:[%s15850_s5 + $0x708] ss:$16 sps:$4 sm:$0xff]  }
 0x50c   : > { %5938 = vmatpush1.bf16.msra.mxu1 %v11764_v22  ;;  %4879 = vmatprep.subr.bf16.mxu0 %v11769_v5  ;;  %v11821_v22 = vld [vmem:[%s15850_s5 + $0x160] ss:$16 sps:$4 sm:$0xff]   ;;  %v11829_v5 = vld [vmem:[%s15850_s5 + $0x184] ss:$16 sps:$4 sm:$0xff]  }
 0x50d   : > { %5958 = vmatprep.subr.bf16.mxu1 %v11772_v6  ;;  %v11832_v6 = vld [vmem:[%s15850_s5 + $0x74c] ss:$16 sps:$4 sm:$0xff]  }
 0x50e   : > { %4547 = vmatmul.mubr.bf16.gmra.mrb[72].mxu0 %v13824_v25  ;;  %v11781_v25 = vld [vmem:[%s15850_s5 + $0x84] ss:$16 sps:$4 sm:$0xff]  }
 0x50f   : > { %5940 = vmatmul.mubr.bf16.vlgmr.msra.gmra.mrb[48].mxu1 %v14059_v36  ;;  %4880 = vmatpush1.bf16.msra.mxu0 %v11767_v33  ;;  %v11827_v33 = vld [vmem:[%s15850_s5 + $0x180] ss:$16 sps:$4 sm:$0xff]  }
 0x510   : > { %4907 = vmatprep.mubr.bf16.mxu0 %v14062_v37  ;;  %5949 = vmatprep.mubr.bf16.mxu1 %v13859_v62 }
 0x511   : > { %5959 = vmatpush1.bf16.msra.mxu1 %v11770_v35  ;;  %4881 = vmatprep.subr.bf16.mxu0 %v11775_v42  ;;  %v11830_v35 = vld [vmem:[%s15850_s5 + $0x748] ss:$16 sps:$4 sm:$0xff]   ;;  %v11833_v42 = vld [vmem:[%s15850_s5 + $0x1a0] ss:$16 sps:$4 sm:$0xff]  }
 0x512   : > { %5960 = vmatprep.subr.bf16.mxu1 %v11778_v38  ;;  %v11841_v38 = vld [vmem:[%s15850_s5 + $0x1c4] ss:$16 sps:$4 sm:$0xff]  }
 0x513   : > { %4882 = vmatpush1.bf16.msra.mxu0 %v11773_v39  ;;  %v11836_v39 = vld [vmem:[%s15850_s5 + $0x768] ss:$16 sps:$4 sm:$0xff]  }
 0x514   : > { %4883 = vmatprep.subr.bf16.mxu0 %v11781_v25  ;;  %v11844_v25 = vld [vmem:[%s15850_s5 + $0x78c] ss:$16 sps:$4 sm:$0xff]  }
 0x515   : > { %5961 = vmatpush1.bf16.msra.mxu1 %v11776_v52  ;;  %v11839_v52 = vld [vmem:[%s15850_s5 + $0x1c0] ss:$16 sps:$4 sm:$0xff]  }
 0x516   : > { %5962 = vmatprep.subr.bf16.mxu1 %v11784_v41  ;;  %v11847_v41 = vld [vmem:[%s15850_s5 + $0x1e4] ss:$16 sps:$4 sm:$0xff]  }
 0x517   : > { %5950 = vmatmul.mubr.bf16.gmra.mrb[52].mxu1 %v14045_v32  ;;  %4884 = vmatpush1.bf16.msra.mxu0 %v11779_v44  ;;  %v11842_v44 = vld [vmem:[%s15850_s5 + $0x788] ss:$16 sps:$4 sm:$0xff]  }
 0x518   : > { %5990 = vmatprep.mubr.bf16.mxu1 %v13872_v2  ;;  %4885 = vmatprep.subr.bf16.mxu0 %v11787_v45  ;;  %v11791_v2 = vld [vmem:[%s15850_s5 + $0xc0] ss:$16 sps:$4 sm:$0xff]   ;;  %v11850_v45 = vld [vmem:[%s15850_s5 + $0x7ac] ss:$16 sps:$4 sm:$0xff]  }
 0x519   : > { %5963 = vmatpush1.bf16.msra.mxu1 %v11782_v47  ;;  %v11845_v47 = vld [vmem:[%s15850_s5 + $0x1e0] ss:$16 sps:$4 sm:$0xff]  }
 0x51a   : > { %5964 = vmatprep.subr.bf16.mxu1 %v11790_v55  ;;  %v11853_v55 = vld [vmem:[%s15850_s5 + $0xc] ss:$16 sps:$4 sm:$0xff]  }
 0x51b   : > { %4886 = vmatpush1.bf16.msra.mxu0 %v11785_v56  ;;  %v11848_v56 = vld [vmem:[%s15850_s5 + $0x7a8] ss:$16 sps:$4 sm:$0xff]  }
 0x51c   : > { %4887 = vmatprep.subr.bf16.mxu0 %v11793_v57  ;;  %v11856_v57 = vld [vmem:[%s15850_s5 + $0x7cc] ss:$16 sps:$4 sm:$0xff]  }
 0x51d   : > { %5965 = vmatpush1.bf16.msra.mxu1 %v11788_v58  ;;  %v3951_v58 = vld [vmem:[#allocation4] sm:$0xff] }
 0x51e   : > { %5966 = vmatprep.subr.bf16.mxu1 %v11796_v60  ;;  %v11851_v60 = vld [vmem:[%s15850_s5 + $0x8] ss:$16 sps:$4 sm:$0xff]  }
 0x51f   : > { %4888 = vmatpush1.bf16.msra.mxu0 %v11791_v2  ;;  %v14232_v2 = vpack.c.bf16 %v13769_v27, %v3951_v58  ;;  %v11862_v27 = vld [vmem:[%s15850_s5 + $0x7ec] ss:$16 sps:$4 sm:$0xff]   ;;  %v11896_v58 = vld [vmem:[%s15850_s5 + $0x8a0] ss:$16 sps:$4 sm:$0xff]  }
 0x520   : > { %4889 = vmatprep.subr.bf16.mxu0 %v11799_v61  ;;  %v11859_v61 = vld [vmem:[%s15850_s5 + $0x2c] ss:$16 sps:$4 sm:$0xff]  }
 0x521   : > { %5967 = vmatpush1.bf16.msra.mxu1 %v11794_v1  ;;  %v11854_v1 = vld [vmem:[%s15850_s5 + $0x7c8] ss:$16 sps:$4 sm:$0xff]  }
 0x522   : > { %5968 = vmatprep.subr.bf16.mxu1 %v11802_v63  ;;  %v14242_v63 = vpack.c.bf16 %v13777_v46, %v13777_v46 }
 0x523   : > { %4890 = vmatpush1.bf16.msra.mxu0 %v11797_v23  ;;  %v6024_v23 = vld [vmem:[#allocation4 + $0x38] sm:$0x7f] }
 0x524   : > { %4891 = vmatprep.subr.bf16.mxu0 %v11805_v31  ;;  %v11857_v31 = vld [vmem:[%s15850_s5 + $0x28] ss:$16 sps:$4 sm:$0xff]  }
 0x525   : > { %5969 = vmatpush1.bf16.msra.mxu1 %v11800_v8  ;;  %v11865_v8 = vld [vmem:[%s15850_s5 + $0x4c] ss:$16 sps:$4 sm:$0xff]  }
 0x526   : > { %5970 = vmatprep.subr.bf16.mxu1 %v11808_v59  ;;  %v6028_v59 = vpack.c.bf16 %v6024_v23, %v13777_v46  ;;  %v14268_v46 = vpack.c.bf16 %v13775_v53, %v13775_v53  ;;  %v11902_v23 = vld [vmem:[%s15850_s5 + $0x8c0] ss:$16 sps:$4 sm:$0xff]  }
 0x527   : > { %4892 = vmatpush1.bf16.msra.mxu0 %v11803_v7  ;;  %v11860_v7 = vld [vmem:[%s15850_s5 + $0x7e8] ss:$16 sps:$4 sm:$0xff]  }
 0x528   : > { %4893 = vmatprep.subr.bf16.mxu0 %v11811_v9  ;;  %v6022_v9 = vld [vmem:[#allocation4 + $0x8] sm:$0x80] }
 0x529   : > { %5971 = vmatpush1.bf16.msra.mxu1 %v11806_v10  ;;  %v11868_v10 = vld [vmem:[%s15850_s5 + $0x804] ss:$16 sps:$4 sm:$0xff]  }
 0x52a   : > { %5972 = vmatprep.subr.bf16.mxu1 %v11814_v12  ;;  %v6026_v12 = vpack.c.bf16 %v13771_v28, %v6022_v9  ;;  %v11866_v28 = vld [vmem:[%s15850_s5 + $0x800] ss:$16 sps:$4 sm:$0xff]   ;;  %v11911_v9 = vld [vmem:[%s15850_s5 + $0x148] ss:$16 sps:$4 sm:$0xff]  }
 0x52b   : > { %4894 = vmatpush1.bf16.msra.mxu0 %v11809_v13  ;;  %v11863_v13 = vld [vmem:[%s15850_s5 + $0x48] ss:$16 sps:$4 sm:$0xff]  }
 0x52c   : > { %4895 = vmatprep.subr.bf16.mxu0 %v11817_v16  ;;  %v11871_v16 = vld [vmem:[%s15850_s5 + $0x6c] ss:$16 sps:$4 sm:$0xff]  }
 0x52d   : > { %5973 = vmatpush1.bf16.msra.mxu1 %v11812_v17  ;;  %v6121_v17 = vshrl.u32 %v6028_v59, 16 }
 0x52e   : > { %5974 = vmatprep.subr.bf16.mxu1 %v11820_v50  ;;  %v6124_v50 = vshll.u32 %v6028_v59, 16  ;;  %v11908_v59 = vld [vmem:[%s15850_s5 + $0x8e0] ss:$16 sps:$4 sm:$0xff]  }
 0x52f   : > { %4896 = vmatpush1.bf16.msra.mxu0 %v11815_v18  ;;  %v11874_v18 = vld [vmem:[%s15850_s5 + $0x824] ss:$16 sps:$4 sm:$0xff]  }
 0x530   : > { %4897 = vmatprep.subr.bf16.mxu0 %v11823_v19  ;;  %v6113_v19 = vshrl.u32 %v6026_v12, 16 }
 0x531   : > { %5975 = vmatpush1.bf16.msra.mxu1 %v11818_v20  ;;  %v6116_v20 = vshll.u32 %v6026_v12, 16  ;;  %v11914_v12 = vld [vmem:[%s15850_s5 + $0x900] ss:$16 sps:$4 sm:$0xff]  }
 0x532   : > { %5976 = vmatprep.subr.bf16.mxu1 %v11826_v21  ;;  %v11869_v21 = vld [vmem:[%s15850_s5 + $0x68] ss:$16 sps:$4 sm:$0xff]  }
 0x533   : > { %4898 = vmatpush1.bf16.msra.mxu0 %v11821_v22  ;;  %v11877_v22 = vld [vmem:[%s15850_s5 + $0x8c] ss:$16 sps:$4 sm:$0xff]  }
 0x534   : > { %4899 = vmatprep.subr.bf16.mxu0 %v11829_v5  ;;  %v6123_v5 = vrot.slane %v6121_v17, 3  ;;  %v11925_v17 = vld [vmem:[%s15850_s5 + $0x18c] ss:$16 sps:$4 sm:$0xff]  }
 0x535   : > { %5977 = vmatpush1.bf16.msra.mxu1 %v11824_v26  ;;  %v6126_v26 = vrot.slane %v6124_v50, 4  ;;  %v11920_v50 = vld [vmem:[%s15850_s5 + $0x920] ss:$16 sps:$4 sm:$0xff]  }
 0x536   : > { %5978 = vmatprep.subr.bf16.mxu1 %v11832_v6  ;;  %v11880_v6 = vld [vmem:[%s15850_s5 + $0x844] ss:$16 sps:$4 sm:$0xff]  }
 0x537   : > { %4900 = vmatpush1.bf16.msra.mxu0 %v11827_v33  ;;  %v6118_v33 = vrot.slane %v6116_v20, 4  ;;  %v11926_v20 = vld [vmem:[%s15850_s5 + $0x940] ss:$16 sps:$4 sm:$0xff]  }
 0x538   : > { %4901 = vmatprep.subr.bf16.mxu0 %v11835_v34  ;;  %v11875_v34 = vld [vmem:[%s15850_s5 + $0x88] ss:$16 sps:$4 sm:$0xff]  }
 0x539   : > { %5979 = vmatpush1.bf16.msra.mxu1 %v11830_v35  ;;  %v14298_v35 = vor.u32 %v6126_v26, %v6123_v5  ;;  %v11937_v5 = vld [vmem:[%s15850_s5 + $0x1cc] ss:$16 sps:$4 sm:$0xff]   ;;  %v11932_v26 = vld [vmem:[%s15850_s5 + $0x960] ss:$16 sps:$4 sm:$0xff]  }
 0x53a   : > { %5980 = vmatprep.subr.bf16.mxu1 %v11838_v43  ;;  %v11878_v43 = vld [vmem:[%s15850_s5 + $0x840] ss:$16 sps:$4 sm:$0xff]  }
 0x53b   : > { %4902 = vmatpush1.bf16.msra.mxu0 %v11833_v42 }
 0x53c   : > { %4903 = vmatprep.subr.bf16.mxu0 %v11841_v38  ;;  %v11886_v38 = vld [vmem:[%s15850_s5 + $0x864] ss:$16 sps:$4 sm:$0xff]  }
 0x53d   : > { %5981 = vmatpush1.bf16.msra.mxu1 %v11836_v39  ;;  %v11881_v39 = vld [vmem:[%s15850_s5 + $0xa8] ss:$16 sps:$4 sm:$0xff]  }
 0x53e   : > { %5982 = vmatprep.subr.bf16.mxu1 %v11844_v25 }
 0x53f   : > { %4904 = vmatpush1.bf16.msra.mxu0 %v11839_v52  ;;  %v11889_v52 = vld [vmem:[%s15850_s5 + $0xcc] ss:$16 sps:$4 sm:$0xff]  }
 0x540   : > { %4905 = vmatprep.subr.bf16.mxu0 %v11847_v41  ;;  %v11884_v41 = vld [vmem:[%s15850_s5 + $0x860] ss:$16 sps:$4 sm:$0xff]  }
 0x541   : > { %5983 = vmatpush1.bf16.msra.mxu1 %v11842_v44  ;;  %v11887_v44 = vld [vmem:[%s15850_s5 + $0xc8] ss:$16 sps:$4 sm:$0xff]  }
 0x542   : > { %5984 = vmatprep.subr.bf16.mxu1 %v11850_v45  ;;  %v11895_v45 = vld [vmem:[%s15850_s5 + $0xec] ss:$16 sps:$4 sm:$0xff]  }
 0x543   : > { %4906 = vmatpush1.bf16.msra.mxu0 %v11845_v47  ;;  %v11890_v47 = vld [vmem:[%s15850_s5 + $0x880] ss:$16 sps:$4 sm:$0xff]  }
 0x544   : > { %4926 = vmatprep.subr.bf16.mxu0 %v11853_v55  ;;  %v11898_v55 = vld [vmem:[%s15850_s5 + $0x8a4] ss:$16 sps:$4 sm:$0xff]  }
 0x545   : > { %5985 = vmatpush1.bf16.msra.mxu1 %v11848_v56  ;;  %v11893_v56 = vld [vmem:[%s15850_s5 + $0xe8] ss:$16 sps:$4 sm:$0xff]  }
 0x546   : > { %4908 = vmatmul.mubr.bf16.vlgmr.msra.gmra.mrb[60].mxu0 %v14232_v2  ;;  %5986 = vmatprep.subr.bf16.mxu1 %v11856_v57  ;;  %v11901_v57 = vld [vmem:[%s15850_s5 + $0x10c] ss:$16 sps:$4 sm:$0xff]  }
 0x547   : > { %4917 = vmatprep.mubr.bf16.mxu0 %v14242_v63  ;;  %4927 = vmatpush1.bf16.msra.mxu0 %v11851_v60  ;;  %v11904_v60 = vld [vmem:[%s15850_s5 + $0x8c4] ss:$16 sps:$4 sm:$0xff]  }
 0x548   : > { %4928 = vmatprep.subr.bf16.mxu0 %v11859_v61  ;;  %v11899_v61 = vld [vmem:[%s15850_s5 + $0x108] ss:$16 sps:$4 sm:$0xff]  }
 0x549   : > { %5987 = vmatpush1.bf16.msra.mxu1 %v11854_v1  ;;  %v11907_v1 = vld [vmem:[%s15850_s5 + $0x12c] ss:$16 sps:$4 sm:$0xff]  }
 0x54a   : > { %5988 = vmatprep.subr.bf16.mxu1 %v11862_v27  ;;  %v11910_v27 = vld [vmem:[%s15850_s5 + $0x8e4] ss:$16 sps:$4 sm:$0xff]  }
 0x54b   : > { %4929 = vmatpush1.bf16.msra.mxu0 %v11857_v31  ;;  %v11905_v31 = vld [vmem:[%s15850_s5 + $0x128] ss:$16 sps:$4 sm:$0xff]  }
 0x54c   : > { %4930 = vmatprep.subr.bf16.mxu0 %v11865_v8  ;;  %v11913_v8 = vld [vmem:[%s15850_s5 + $0x14c] ss:$16 sps:$4 sm:$0xff]  }
 0x54d   : > { %5989 = vmatpush1.bf16.msra.mxu1 %v11860_v7  ;;  %v11916_v7 = vld [vmem:[%s15850_s5 + $0x904] ss:$16 sps:$4 sm:$0xff]  }
 0x54e   : > { %4918 = vmatmul.mubr.bf16.gmra.mrb[76].mxu0 %v14268_v46  ;;  %6453 = vmatprep.subr.bf16.mxu1 %v11868_v10  ;;  %v11919_v10 = vld [vmem:[%s15850_s5 + $0x16c] ss:$16 sps:$4 sm:$0xff]  }
 0x54f   : > { %4931 = vmatpush1.bf16.msra.mxu0 %v11863_v13  ;;  %4958 = vmatprep.mubr.bf16.mxu0 %v14062_v37  ;;  %v11872_v37 = vld [vmem:[%s15850_s5 + $0x820] ss:$16 sps:$4 sm:$0xff]   ;;  %v11922_v13 = vld [vmem:[%s15850_s5 + $0x924] ss:$16 sps:$4 sm:$0xff]  }
 0x550   : > { %5991 = vmatmul.mubr.bf16.vlgmr.msra.gmra.mrb[40].mxu1 %v14059_v36  ;;  %4932 = vmatprep.subr.bf16.mxu0 %v11871_v16  ;;  %v6115_v36 = vrot.slane %v6113_v19, 3  ;;  %v11917_v16 = vld [vmem:[%s15850_s5 + $0x168] ss:$16 sps:$4 sm:$0xff]   ;;  %v11931_v19 = vld [vmem:[%s15850_s5 + $0x1ac] ss:$16 sps:$4 sm:$0xff]  }
 0x551   : > { %6000 = vmatprep.mubr.bf16.mxu1 %v13859_v62  ;;  %6454 = vmatpush1.bf16.msra.mxu1 %v11866_v28  ;;  %v11883_v62 = vld [vmem:[%s15850_s5 + $0xac] ss:$16 sps:$4 sm:$0xff]   ;;  %v11928_v28 = vld [vmem:[%s15850_s5 + $0x944] ss:$16 sps:$4 sm:$0xff]  }
 0x552   : > { %6455 = vmatprep.subr.bf16.mxu1 %v11874_v18  ;;  %v6119_v42 = vor.u32 %v6118_v33, %v6115_v36  ;;  %v11923_v18 = vld [vmem:[%s15850_s5 + $0x188] ss:$16 sps:$4 sm:$0xff]   ;;  %v11943_v36 = vld [vmem:[%s15850_s5 + $0x1ec] ss:$16 sps:$4 sm:$0xff]   ;;  %v6023_v33 = vld [vmem:[#allocation4 + $0x30] sm:$0x7f] }
 0x553   : > { %4933 = vmatpush1.bf16.msra.mxu0 %v11869_v21  ;;  %v11934_v21 = vld [vmem:[%s15850_s5 + $0x964] ss:$16 sps:$4 sm:$0xff]  }
 0x554   : > { %4934 = vmatprep.subr.bf16.mxu0 %v11877_v22  ;;  %v14315_v25 = vsel %vm6094_vm9, %v6119_v42, %v14298_v35  ;;  %v11929_v22 = vld [vmem:[%s15850_s5 + $0x1a8] ss:$16 sps:$4 sm:$0xff]   ;;  %v6027_v42 = vpack.c.bf16 %v6023_v33, %v13775_v53  ;;  %v11947_v53 = vld [vmem:[%s15850_s5 + $0x400] ss:$16 sps:$4 sm:$0xff]  }
 0x555   : > { %6456 = vmatpush1.bf16.msra.mxu1 %v11872_v37  ;;  %v11940_v37 = vld [vmem:[%s15850_s5 + $0x984] ss:$16 sps:$4 sm:$0xff]   ;;  %v11989_v33 = vld [vmem:[%s15850_s5 + $0x4e0] ss:$16 sps:$4 sm:$0xff]  }
 0x556   : > { %6457 = vmatprep.subr.bf16.mxu1 %v11880_v6  ;;  %v11935_v6 = vld [vmem:[%s15850_s5 + $0x1c8] ss:$16 sps:$4 sm:$0xff]  }
 0x557   : > { %4935 = vmatpush1.bf16.msra.mxu0 %v11875_v34  ;;  %v11938_v34 = vld [vmem:[%s15850_s5 + $0x980] ss:$16 sps:$4 sm:$0xff]  }
 0x558   : > { %6001 = vmatmul.mubr.bf16.gmra.mrb[56].mxu1 %v14045_v32  ;;  %4936 = vmatprep.subr.bf16.mxu0 %v11883_v62  ;;  %v11892_v32 = vld [vmem:[%s15850_s5 + $0x884] ss:$16 sps:$4 sm:$0xff]  }
 0x559   : > { %6458 = vmatpush1.bf16.msra.mxu1 %v11878_v43  ;;  %6485 = vmatprep.mubr.bf16.mxu1 %v14315_v25  ;;  %v11946_v62 = vld [vmem:[%s15850_s5 + $0x9a4] ss:$16 sps:$4 sm:$0xff]   ;;  %v11941_v43 = vld [vmem:[%s15850_s5 + $0x1e8] ss:$16 sps:$4 sm:$0xff]  }
 0x55a   : > { %6459 = vmatprep.subr.bf16.mxu1 %v11886_v38  ;;  %v11949_v38 = vld [vmem:[%s15850_s5 + $0x404] ss:$16 sps:$4 sm:$0xff]  }
 0x55b   : > { %4937 = vmatpush1.bf16.msra.mxu0 %v11881_v39  ;;  %v6021_v39 = vld [vmem:[#allocation4] sm:$0x80] }
 0x55c   : > { %4938 = vmatprep.subr.bf16.mxu0 %v11889_v52  ;;  %v11944_v52 = vld [vmem:[%s15850_s5 + $0x9a0] ss:$16 sps:$4 sm:$0xff]  }
 0x55d   : > { %6460 = vmatpush1.bf16.msra.mxu1 %v11884_v41  ;;  %v12488_v41 = vld [vmem:[#allocation4 + $0x10] sm:$0xff] }
 0x55e   : > { %6461 = vmatprep.subr.bf16.mxu1 %v11892_v32  ;;  %v6025_v32 = vpack.c.bf16 %v12488_v41, %v6021_v39 }
 0x55f   : > { %4939 = vmatpush1.bf16.msra.mxu0 %v11887_v44  ;;  %v11952_v44 = vld [vmem:[%s15850_s5 + $0x9c4] ss:$16 sps:$4 sm:$0xff]  }
 0x560   : > { %4940 = vmatprep.subr.bf16.mxu0 %v11895_v45  ;;  %v6104_v45 = vshrl.u32 %v6027_v42, 16 }
 0x561   : > { %6462 = vmatpush1.bf16.msra.mxu1 %v11890_v47  ;;  %v6107_v47 = vshll.u32 %v6027_v42, 16 }
 0x562   : > { %6463 = vmatprep.subr.bf16.mxu1 %v11898_v55  ;;  %v11955_v55 = vld [vmem:[%s15850_s5 + $0x424] ss:$16 sps:$4 sm:$0xff]  }
 0x563   : > { %4941 = vmatpush1.bf16.msra.mxu0 %v11893_v56  ;;  %v11950_v56 = vld [vmem:[%s15850_s5 + $0x9c0] ss:$16 sps:$4 sm:$0xff]  }
 0x564   : > { %4942 = vmatprep.subr.bf16.mxu0 %v11901_v57  ;;  %v6096_v57 = vshrl.u32 %v6025_v32, 16 }
 0x565   : > { %6464 = vmatpush1.bf16.msra.mxu1 %v11896_v58  ;;  %v6099_v58 = vshll.u32 %v6025_v32, 16  ;;  %v12003_v32 = vld [vmem:[%s15850_s5 + $0x524] ss:$16 sps:$4 sm:$0xff]  }
 0x566   : > { %6465 = vmatprep.subr.bf16.mxu1 %v11904_v60  ;;  %v11958_v60 = vld [vmem:[%s15850_s5 + $0x9e4] ss:$16 sps:$4 sm:$0xff]  }
 0x567   : > { %4943 = vmatpush1.bf16.msra.mxu0 %v11899_v61  ;;  %v11953_v61 = vld [vmem:[%s15850_s5 + $0x420] ss:$16 sps:$4 sm:$0xff]  }
 0x568   : > { %4944 = vmatprep.subr.bf16.mxu0 %v11907_v1  ;;  %v6106_v1 = vrot.slane %v6104_v45, 3  ;;  %v12001_v45 = vld [vmem:[%s15850_s5 + $0x520] ss:$16 sps:$4 sm:$0xff]  }
 0x569   : > { %6466 = vmatpush1.bf16.msra.mxu1 %v11902_v23  ;;  %v6109_v23 = vrot.slane %v6107_v47, 4  ;;  %v12009_v47 = vld [vmem:[%s15850_s5 + $0x544] ss:$16 sps:$4 sm:$0xff]  }
 0x56a   : > { %6467 = vmatprep.subr.bf16.mxu1 %v11910_v27  ;;  %v11961_v27 = vld [vmem:[%s15850_s5 + $0x444] ss:$16 sps:$4 sm:$0xff]  }
 0x56b   : > { %4945 = vmatpush1.bf16.msra.mxu0 %v11905_v31  ;;  %v6098_v31 = vrot.slane %v6096_v57, 3 }
 0x56c   : > { %4946 = vmatprep.subr.bf16.mxu0 %v11913_v8  ;;  %v6101_v8 = vrot.slane %v6099_v58, 4  ;;  %v12012_v58 = vld [vmem:[%s15850_s5 + $0x90c] ss:$16 sps:$4 sm:$0xff]  }
 0x56d   : > { %6468 = vmatpush1.bf16.msra.mxu1 %v11908_v59  ;;  %v11959_v59 = vld [vmem:[%s15850_s5 + $0x440] ss:$16 sps:$4 sm:$0xff]  }
 0x56e   : > { %6469 = vmatprep.subr.bf16.mxu1 %v11916_v7  ;;  %v14477_v7 = vor.u32 %v6109_v23, %v6106_v1  ;;  %v12015_v23 = vld [vmem:[%s15850_s5 + $0x564] ss:$16 sps:$4 sm:$0xff]  }
 0x56f   : > { %4947 = vmatpush1.bf16.msra.mxu0 %v11911_v9  ;;  %v11967_v9 = vld [vmem:[%s15850_s5 + $0x464] ss:$16 sps:$4 sm:$0xff]  }
 0x570   : > { %4948 = vmatprep.subr.bf16.mxu0 %v11919_v10  ;;  %v6102_v10 = vor.u32 %v6101_v8, %v6098_v31  ;;  %v12013_v31 = vld [vmem:[%s15850_s5 + $0x560] ss:$16 sps:$4 sm:$0xff]   ;;  %v12021_v8 = vld [vmem:[%s15850_s5 + $0x584] ss:$16 sps:$4 sm:$0xff]  }
 0x571   : > { %6470 = vmatpush1.bf16.msra.mxu1 %v11914_v12  ;;  %v11962_v12 = vld [vmem:[%s15850_s5 + $0x808] ss:$16 sps:$4 sm:$0xff]  }
 0x572   : > { %6471 = vmatprep.subr.bf16.mxu1 %v11922_v13  ;;  %v11970_v13 = vld [vmem:[%s15850_s5 + $0x82c] ss:$16 sps:$4 sm:$0xff]  }
 0x573   : > { %4949 = vmatpush1.bf16.msra.mxu0 %v11917_v16  ;;  %v14491_v16 = vsel %vm6094_vm9, %v6102_v10, %v14477_v7  ;;  %v12027_v10 = vld [vmem:[%s15850_s5 + $0x5a4] ss:$16 sps:$4 sm:$0xff]  }
 0x574   : > { %4950 = vmatprep.subr.bf16.mxu0 %v11925_v17  ;;  %v11965_v17 = vld [vmem:[%s15850_s5 + $0x460] ss:$16 sps:$4 sm:$0xff]  }
 0x575   : > { %6472 = vmatpush1.bf16.msra.mxu1 %v11920_v50  ;;  %v11968_v50 = vld [vmem:[%s15850_s5 + $0x828] ss:$16 sps:$4 sm:$0xff]  }
 0x576   : > { %6473 = vmatprep.subr.bf16.mxu1 %v11928_v28  ;;  %v11971_v28 = vld [vmem:[%s15850_s5 + $0x480] ss:$16 sps:$4 sm:$0xff]  }
 0x577   : > { %4951 = vmatpush1.bf16.msra.mxu0 %v11923_v18  ;;  %v11979_v18 = vld [vmem:[%s15850_s5 + $0x4a4] ss:$16 sps:$4 sm:$0xff]  }
 0x578   : > { %4952 = vmatprep.subr.bf16.mxu0 %v11931_v19  ;;  %v11974_v19 = vld [vmem:[%s15850_s5 + $0x848] ss:$16 sps:$4 sm:$0xff]  }
 0x579   : > { %6474 = vmatpush1.bf16.msra.mxu1 %v11926_v20  ;;  %v11982_v20 = vld [vmem:[%s15850_s5 + $0x86c] ss:$16 sps:$4 sm:$0xff]  }
 0x57a   : > { %6475 = vmatprep.subr.bf16.mxu1 %v11934_v21  ;;  %v11977_v21 = vld [vmem:[%s15850_s5 + $0x4a0] ss:$16 sps:$4 sm:$0xff]  }
 0x57b   : > { %4953 = vmatpush1.bf16.msra.mxu0 %v11929_v22  ;;  %v11985_v22 = vld [vmem:[%s15850_s5 + $0x4c4] ss:$16 sps:$4 sm:$0xff]  }
 0x57c   : > { %4954 = vmatprep.subr.bf16.mxu0 %v11937_v5  ;;  %v11980_v5 = vld [vmem:[%s15850_s5 + $0x868] ss:$16 sps:$4 sm:$0xff]  }
 0x57d   : > { %6476 = vmatpush1.bf16.msra.mxu1 %v11932_v26  ;;  %v11988_v26 = vld [vmem:[%s15850_s5 + $0x88c] ss:$16 sps:$4 sm:$0xff]  }
 0x57e   : > { %6477 = vmatprep.subr.bf16.mxu1 %v11940_v37  ;;  %v11983_v37 = vld [vmem:[%s15850_s5 + $0x4c0] ss:$16 sps:$4 sm:$0xff]  }
 0x57f   : > { %4955 = vmatpush1.bf16.msra.mxu0 %v11935_v6  ;;  %v11991_v6 = vld [vmem:[%s15850_s5 + $0x4e4] ss:$16 sps:$4 sm:$0xff]  }
 0x580   : > { %4956 = vmatprep.subr.bf16.mxu0 %v11943_v36  ;;  %v11994_v36 = vld [vmem:[%s15850_s5 + $0x8ac] ss:$16 sps:$4 sm:$0xff]  }
 0x581   : > { %6478 = vmatpush1.bf16.msra.mxu1 %v11938_v34  ;;  %v11997_v34 = vld [vmem:[%s15850_s5 + $0x504] ss:$16 sps:$4 sm:$0xff]  }
 0x582   : > { %6479 = vmatprep.subr.bf16.mxu1 %v11946_v62 }
 0x583   : > { %4957 = vmatpush1.bf16.msra.mxu0 %v11941_v43  ;;  %v11992_v43 = vld [vmem:[%s15850_s5 + $0x8a8] ss:$16 sps:$4 sm:$0xff]  }
 0x584   : > { %5385 = vmatprep.subr.bf16.mxu0 %v11949_v38  ;;  %v12000_v38 = vld [vmem:[%s15850_s5 + $0x8cc] ss:$16 sps:$4 sm:$0xff]  }
 0x585   : > { %6480 = vmatpush1.bf16.msra.mxu1 %v11944_v52  ;;  %v11995_v52 = vld [vmem:[%s15850_s5 + $0x500] ss:$16 sps:$4 sm:$0xff]  }
 0x586   : > { %4959 = vmatmul.mubr.bf16.vlgmr.msra.gmra.mrb[68].mxu0 %v14232_v2  ;;  %6481 = vmatprep.subr.bf16.mxu1 %v11952_v44  ;;  %v11956_v2 = vld [vmem:[%s15850_s5 + $0x9e0] ss:$16 sps:$4 sm:$0xff]   ;;  %v11998_v44 = vld [vmem:[%s15850_s5 + $0x8c8] ss:$16 sps:$4 sm:$0xff]  }
 0x587   : > { %4968 = vmatprep.mubr.bf16.mxu0 %v14242_v63  ;;  %5386 = vmatpush1.bf16.msra.mxu0 %v11947_v53  ;;  %v11964_v63 = vld [vmem:[%s15850_s5 + $0x80c] ss:$16 sps:$4 sm:$0xff]  }
 0x588   : > { %5387 = vmatprep.subr.bf16.mxu0 %v11955_v55  ;;  %v12006_v53 = vld [vmem:[%s15850_s5 + $0x8ec] ss:$16 sps:$4 sm:$0xff]  }
 0x589   : > { %6482 = vmatpush1.bf16.msra.mxu1 %v11950_v56  ;;  %v12004_v56 = vld [vmem:[%s15850_s5 + $0x8e8] ss:$16 sps:$4 sm:$0xff]  }
 0x58a   : > { %6483 = vmatprep.subr.bf16.mxu1 %v11958_v60 }
 0x58b   : > { %5388 = vmatpush1.bf16.msra.mxu0 %v11953_v61  ;;  %v12007_v61 = vld [vmem:[%s15850_s5 + $0x540] ss:$16 sps:$4 sm:$0xff]  }
 0x58c   : > { %5389 = vmatprep.subr.bf16.mxu0 %v11961_v27  ;;  %v12010_v27 = vld [vmem:[%s15850_s5 + $0x908] ss:$16 sps:$4 sm:$0xff]  }
 0x58d   : > { %6484 = vmatpush1.bf16.msra.mxu1 %v11956_v2  ;;  %v12018_v2 = vld [vmem:[%s15850_s5 + $0x92c] ss:$16 sps:$4 sm:$0xff]  }
 0x58e   : > { %4969 = vmatmul.mubr.bf16.gmra.mrb[80].mxu0 %v14268_v46  ;;  %6504 = vmatprep.subr.bf16.mxu1 %v11964_v63  ;;  %v11973_v46 = vld [vmem:[%s15850_s5 + $0x484] ss:$16 sps:$4 sm:$0xff]   ;;  %v12016_v63 = vld [vmem:[%s15850_s5 + $0x928] ss:$16 sps:$4 sm:$0xff]  }
 0x58f   : > { %5390 = vmatpush1.bf16.msra.mxu0 %v11959_v59  ;;  %5417 = vmatprep.mubr.bf16.mxu0 %v13822_v24  ;;  %v11976_v24 = vld [vmem:[%s15850_s5 + $0x84c] ss:$16 sps:$4 sm:$0xff]  }
 0x590   : > { %6486 = vmatmul.mubr.bf16.vlgmr.msra.gmra.mrb[48].mxu1 %v14491_v16  ;;  %5391 = vmatprep.subr.bf16.mxu0 %v11967_v9  ;;  %v12024_v59 = vld [vmem:[%s15850_s5 + $0x94c] ss:$16 sps:$4 sm:$0xff]   ;;  %v12019_v9 = vld [vmem:[%s15850_s5 + $0x580] ss:$16 sps:$4 sm:$0xff]  }
 0x591   : > { %6495 = vmatprep.mubr.bf16.mxu1 %v14298_v35  ;;  %6505 = vmatpush1.bf16.msra.mxu1 %v11962_v12  ;;  %v12022_v12 = vld [vmem:[%s15850_s5 + $0x948] ss:$16 sps:$4 sm:$0xff]  }
 0x592   : > { %6506 = vmatprep.subr.bf16.mxu1 %v11970_v13  ;;  %v12030_v13 = vld [vmem:[%s15850_s5 + $0x96c] ss:$16 sps:$4 sm:$0xff]  }
 0x593   : > { %5392 = vmatpush1.bf16.msra.mxu0 %v11965_v17  ;;  %v12025_v17 = vld [vmem:[%s15850_s5 + $0x5a0] ss:$16 sps:$4 sm:$0xff]  }
 0x594   : > { %5393 = vmatprep.subr.bf16.mxu0 %v11973_v46  ;;  %v12033_v46 = vld [vmem:[%s15850_s5 + $0x5c4] ss:$16 sps:$4 sm:$0xff]  }
 0x595   : > { %6507 = vmatpush1.bf16.msra.mxu1 %v11968_v50  ;;  %v12028_v50 = vld [vmem:[%s15850_s5 + $0x968] ss:$16 sps:$4 sm:$0xff]  }
 0x596   : > { %6508 = vmatprep.subr.bf16.mxu1 %v11976_v24  ;;  %v12036_v24 = vld [vmem:[%s15850_s5 + $0x98c] ss:$16 sps:$4 sm:$0xff]  }
 0x597   : > { %5394 = vmatpush1.bf16.msra.mxu0 %v11971_v28  ;;  %v12031_v28 = vld [vmem:[%s15850_s5 + $0x5c0] ss:$16 sps:$4 sm:$0xff]  }
 0x598   : > { %6496 = vmatmul.mubr.bf16.gmra.mrb[60].mxu1 %v14477_v7  ;;  %5395 = vmatprep.subr.bf16.mxu0 %v11979_v18  ;;  %v12039_v18 = vld [vmem:[%s15850_s5 + $0x5e4] ss:$16 sps:$4 sm:$0xff]  }
 0x599   : > { %6509 = vmatpush1.bf16.msra.mxu1 %v11974_v19  ;;  %6536 = vmatprep.mubr.bf16.mxu1 %v14315_v25  ;;  %v11986_v25 = vld [vmem:[%s15850_s5 + $0x888] ss:$16 sps:$4 sm:$0xff]  }
 0x59a   : > { %6510 = vmatprep.subr.bf16.mxu1 %v11982_v20  ;;  %v12034_v19 = vld [vmem:[%s15850_s5 + $0x988] ss:$16 sps:$4 sm:$0xff]   ;;  %v12042_v20 = vld [vmem:[%s15850_s5 + $0x9ac] ss:$16 sps:$4 sm:$0xff]  }
 0x59b   : > { %5396 = vmatpush1.bf16.msra.mxu0 %v11977_v21  ;;  %v12037_v21 = vld [vmem:[%s15850_s5 + $0x5e0] ss:$16 sps:$4 sm:$0xff]  }
 0x59c   : > { %5397 = vmatprep.subr.bf16.mxu0 %v11985_v22  ;;  %v12040_v22 = vld [vmem:[%s15850_s5 + $0x9a8] ss:$16 sps:$4 sm:$0xff]  }
 0x59d   : > { %6511 = vmatpush1.bf16.msra.mxu1 %v11980_v5  ;;  %v12045_v5 = vld [vmem:[%s15850_s5 + $0x9cc] ss:$16 sps:$4 sm:$0xff]  }
 0x59e   : > { %6512 = vmatprep.subr.bf16.mxu1 %v11988_v26  ;;  %v12043_v26 = vld [vmem:[%s15850_s5 + $0x9c8] ss:$16 sps:$4 sm:$0xff]  }
 0x59f   : > { %5398 = vmatpush1.bf16.msra.mxu0 %v11983_v37  ;;  %v12048_v37 = vld [vmem:[%s15850_s5 + $0x9ec] ss:$16 sps:$4 sm:$0xff]  }
 0x5a0   : > { %5399 = vmatprep.subr.bf16.mxu0 %v11991_v6  ;;  %v12046_v6 = vld [vmem:[%s15850_s5 + $0x9e8] ss:$16 sps:$4 sm:$0xff]  }
 0x5a1   : > { %6513 = vmatpush1.bf16.msra.mxu1 %v11986_v25  ;;  %v14552_v62 = vpop.f32.mrb[64].mxu0  ;;  %v12051_v25 = vld [vmem:[%s15850_s5 + $0xa04] ss:$16 sps:$4 sm:$0xff]  }
 0x5a2   : > { %6514 = vmatprep.subr.bf16.mxu1 %v11994_v36  ;;  %v14557_v42 = vpop.f32.mrb[65].mxu0  ;;  %v12489_v36 = vld [vmem:[#allocation2 + $0x68] sm:$0xff] }
 0x5a3   : > { %5400 = vmatpush1.bf16.msra.mxu0 %v11989_v33  ;;  %v4501_v39 = vpop.f32.mrb[66].mxu0  ;;  %v12052_v33 = vld [vmem:[%s15850_s5 + $0xa20] ss:$16 sps:$4 sm:$0xff]  }
 0x5a4   : > { %v4502_v41 = vpop.f32.mrb[67].mxu0  ;;  %5401 = vmatprep.subr.bf16.mxu0 %v11997_v34  ;;  %v12055_v34 = vld [vmem:[%s15850_s5 + $0xa40] ss:$16 sps:$4 sm:$0xff]  }
 0x5a5   : > { %6515 = vmatpush1.bf16.msra.mxu1 %v11992_v43  ;;  %v12063_v43 = vld [vmem:[%s15850_s5 + $0xa84] ss:$16 sps:$4 sm:$0xff]  }
 0x5a6   : > { %6516 = vmatprep.subr.bf16.mxu1 %v12000_v38  ;;  %v12061_v38 = vld [vmem:[%s15850_s5 + $0xa80] ss:$16 sps:$4 sm:$0xff]  }
 0x5a7   : > { %5402 = vmatpush1.bf16.msra.mxu0 %v11995_v52  ;;  %v12064_v52 = vld [vmem:[%s15850_s5 + $0xaa0] ss:$16 sps:$4 sm:$0xff]  }
 0x5a8   : > { %5403 = vmatprep.subr.bf16.mxu0 %v12003_v32  ;;  %v12069_v32 = vld [vmem:[%s15850_s5 + $0xac4] ss:$16 sps:$4 sm:$0xff]  }
 0x5a9   : > { %6517 = vmatpush1.bf16.msra.mxu1 %v11998_v44  ;;  %v14580_v55 = vpop.f32.mrb[44].mxu1 }
 0x5aa   : > { %6518 = vmatprep.subr.bf16.mxu1 %v12006_v53  ;;  %v14585_v57 = vpop.f32.mrb[45].mxu1 }
 0x5ab   : > { %5404 = vmatpush1.bf16.msra.mxu0 %v12001_v45  ;;  %v5484_v60 = vpop.f32.mrb[46].mxu1  ;;  %v12067_v45 = vld [vmem:[%s15850_s5 + $0xac0] ss:$16 sps:$4 sm:$0xff]  }
 0x5ac   : > { %v5485_v1 = vpop.f32.mrb[47].mxu1  ;;  %5405 = vmatprep.subr.bf16.mxu0 %v12009_v47  ;;  %v12072_v47 = vld [vmem:[%s15850_s5 + $0xae4] ss:$16 sps:$4 sm:$0xff]  }
 0x5ad   : > { %6519 = vmatpush1.bf16.msra.mxu1 %v12004_v56  ;;  %v12070_v56 = vld [vmem:[%s15850_s5 + $0xae0] ss:$16 sps:$4 sm:$0xff]   ;;  %v12075_v60 = vld [vmem:[%s15850_s5 + $0xb04] ss:$16 sps:$4 sm:$0xff]  }
 0x5ae   : > { %6520 = vmatprep.subr.bf16.mxu1 %v12012_v58 }
 0x5af   : > { %5406 = vmatpush1.bf16.msra.mxu0 %v12007_v61 }
 0x5b0   : > { %5407 = vmatprep.subr.bf16.mxu0 %v12015_v23 }
 0x5b1   : > { %6521 = vmatpush1.bf16.msra.mxu1 %v12010_v27  ;;  %v12073_v27 = vld [vmem:[%s15850_s5 + $0xb00] ss:$16 sps:$4 sm:$0xff]  }
 0x5b2   : > { %6522 = vmatprep.subr.bf16.mxu1 %v12018_v2  ;;  %v12078_v2 = vld [vmem:[%s15850_s5 + $0xb24] ss:$16 sps:$4 sm:$0xff]  }
 0x5b3   : > { %5408 = vmatpush1.bf16.msra.mxu0 %v12013_v31  ;;  %v12076_v31 = vld [vmem:[%s15850_s5 + $0xb20] ss:$16 sps:$4 sm:$0xff]  }
 0x5b4   : > { %5409 = vmatprep.subr.bf16.mxu0 %v12021_v8  ;;  %v12081_v8 = vld [vmem:[%s15850_s5 + $0xb44] ss:$16 sps:$4 sm:$0xff]  }
 0x5b5   : > { %6523 = vmatpush1.bf16.msra.mxu1 %v12016_v63  ;;  %v12079_v63 = vld [vmem:[%s15850_s5 + $0xb40] ss:$16 sps:$4 sm:$0xff]  }
 0x5b6   : > { %6524 = vmatprep.subr.bf16.mxu1 %v12024_v59  ;;  %v12084_v59 = vld [vmem:[%s15850_s5 + $0xb64] ss:$16 sps:$4 sm:$0xff]  }
 0x5b7   : > { %5410 = vmatpush1.bf16.msra.mxu0 %v12019_v9  ;;  %v12082_v9 = vld [vmem:[%s15850_s5 + $0xb60] ss:$16 sps:$4 sm:$0xff]  }
 0x5b8   : > { %5411 = vmatprep.subr.bf16.mxu0 %v12027_v10  ;;  %v12087_v10 = vld [vmem:[%s15850_s5 + $0xb84] ss:$16 sps:$4 sm:$0xff]  }
 0x5b9   : > { %6525 = vmatpush1.bf16.msra.mxu1 %v12022_v12  ;;  %v12085_v12 = vld [vmem:[%s15850_s5 + $0xb80] ss:$16 sps:$4 sm:$0xff]  }
 0x5ba   : > { %6526 = vmatprep.subr.bf16.mxu1 %v12030_v13  ;;  %v12090_v13 = vld [vmem:[%s15850_s5 + $0xba4] ss:$16 sps:$4 sm:$0xff]  }
 0x5bb   : > { %5412 = vmatpush1.bf16.msra.mxu0 %v12025_v17  ;;  %v12088_v17 = vld [vmem:[%s15850_s5 + $0xba0] ss:$16 sps:$4 sm:$0xff]  }
 0x5bc   : > { %5413 = vmatprep.subr.bf16.mxu0 %v12033_v46  ;;  %v12093_v46 = vld [vmem:[%s15850_s5 + $0xbc4] ss:$16 sps:$4 sm:$0xff]  }
 0x5bd   : > { %6527 = vmatpush1.bf16.msra.mxu1 %v12028_v50  ;;  %v12091_v50 = vld [vmem:[%s15850_s5 + $0xbc0] ss:$16 sps:$4 sm:$0xff]  }
 0x5be   : > { %6528 = vmatprep.subr.bf16.mxu1 %v12036_v24  ;;  %v12096_v24 = vld [vmem:[%s15850_s5 + $0xbe4] ss:$16 sps:$4 sm:$0xff]  }
 0x5bf   : > { %5414 = vmatpush1.bf16.msra.mxu0 %v12031_v28  ;;  %v12094_v28 = vld [vmem:[%s15850_s5 + $0xbe0] ss:$16 sps:$4 sm:$0xff]  }
 0x5c0   : > { %5415 = vmatprep.subr.bf16.mxu0 %v12039_v18  ;;  %v12099_v18 = vld [vmem:[%s15850_s5 + $0xa0c] ss:$16 sps:$4 sm:$0xff]  }
 0x5c1   : > { %6529 = vmatpush1.bf16.msra.mxu1 %v12034_v19  ;;  %v12097_v19 = vld [vmem:[%s15850_s5 + $0xa08] ss:$16 sps:$4 sm:$0xff]  }
 0x5c2   : > { %6530 = vmatprep.subr.bf16.mxu1 %v12042_v20  ;;  %v12102_v20 = vld [vmem:[%s15850_s5 + $0xa2c] ss:$16 sps:$4 sm:$0xff]  }
 0x5c3   : > { %5416 = vmatpush1.bf16.msra.mxu0 %v12037_v21  ;;  %v14788_v21 = vld [vmem:[#allocation4 + $0x38] sm:$0xff] }
 0x5c5   : > { %6531 = vmatpush1.bf16.msra.mxu1 %v12040_v22  ;;  %v14792_v22 = vpack.c.bf16 %v14788_v21, %v14788_v21 }
 0x5c6   : > { %5418 = vmatmul.mubr.bf16.vlgmr.msra.gmra.mrb[60].mxu0 %v13828_v30  ;;  %6532 = vmatprep.subr.bf16.mxu1 %v12045_v5  ;;  %v12049_v30 = vld [vmem:[%s15850_s5 + $0xa00] ss:$16 sps:$4 sm:$0xff]   ;;  %v12100_v5 = vld [vmem:[%s15850_s5 + $0xa28] ss:$16 sps:$4 sm:$0xff]  }
 0x5c7   : > { %5427 = vmatprep.mubr.bf16.mxu0 %v13813_v4  ;;  %v12054_v4 = vld [vmem:[%s15850_s5 + $0xa24] ss:$16 sps:$4 sm:$0xff]  }
 0x5c9   : > { %6533 = vmatpush1.bf16.msra.mxu1 %v12043_v26  ;;  %v12105_v26 = vld [vmem:[%s15850_s5 + $0xa4c] ss:$16 sps:$4 sm:$0xff]  }
 0x5ca   : > { %6534 = vmatprep.subr.bf16.mxu1 %v12048_v37  ;;  %v12103_v37 = vld [vmem:[%s15850_s5 + $0xa48] ss:$16 sps:$4 sm:$0xff]  }
 0x5cd   : > { %6535 = vmatpush1.bf16.msra.mxu1 %v12046_v6  ;;  %v14805_v6 = vld [vmem:[#allocation4 + $0x30] sm:$0xff] }
 0x5ce   : > { %5428 = vmatmul.mubr.bf16.gmra.mrb[84].mxu0 %v13811_v3  ;;  %6958 = vmatprep.subr.bf16.mxu1 %v12051_v25  ;;  %v12057_v3 = vld [vmem:[%s15850_s5 + $0xa44] ss:$16 sps:$4 sm:$0xff]   ;;  %v14809_v25 = vpack.c.bf16 %v14805_v6, %v14805_v6 }
 0x5cf   : > { %8780 = vmatprep.mubr.f32.mxu0 %v12489_v36  ;;  %v12111_v36 = vld [vmem:[%s15850_s5 + $0xa8c] ss:$16 sps:$4 sm:$0xff]  }
 0x5d0   : > { %6537 = vmatmul.mubr.bf16.vlgmr.msra.gmra.mrb[40].mxu1 %v14491_v16  ;;  %v12058_v16 = vld [vmem:[%s15850_s5 + $0xa60] ss:$16 sps:$4 sm:$0xff]  }
 0x5d1   : > { %6546 = vmatprep.mubr.bf16.mxu1 %v14298_v35  ;;  %6959 = vmatpush1.bf16.msra.mxu1 %v12049_v30  ;;  %v12060_v35 = vld [vmem:[%s15850_s5 + $0xa64] ss:$16 sps:$4 sm:$0xff]   ;;  %v12108_v30 = vld [vmem:[%s15850_s5 + $0xa6c] ss:$16 sps:$4 sm:$0xff]  }
 0x5d2   : > { %6960 = vmatprep.subr.bf16.mxu1 %v12054_v4  ;;  %v12106_v4 = vld [vmem:[%s15850_s5 + $0xa68] ss:$16 sps:$4 sm:$0xff]  }
 0x5d5   : > { %6961 = vmatpush1.bf16.msra.mxu1 %v12052_v33  ;;  %v12109_v33 = vld [vmem:[%s15850_s5 + $0xa88] ss:$16 sps:$4 sm:$0xff]  }
 0x5d6   : > { %6962 = vmatprep.subr.bf16.mxu1 %v12057_v3  ;;  %v12114_v3 = vld [vmem:[%s15850_s5 + $0xaac] ss:$16 sps:$4 sm:$0xff]  }
 0x5d8   : > { %6547 = vmatmul.mubr.bf16.gmra.mrb[64].mxu1 %v14477_v7  ;;  %v12066_v7 = vld [vmem:[%s15850_s5 + $0xaa4] ss:$16 sps:$4 sm:$0xff]  }
 0x5d9   : > { %6963 = vmatpush1.bf16.msra.mxu1 %v12055_v34  ;;  %6990 = vmatprep.mubr.bf16.mxu1 %v13787_v29  ;;  %v12112_v34 = vld [vmem:[%s15850_s5 + $0xaa8] ss:$16 sps:$4 sm:$0xff]  }
 0x5da   : > { %6964 = vmatprep.subr.bf16.mxu1 %v12060_v35 }
 0x5dd   : > { %6965 = vmatpush1.bf16.msra.mxu1 %v12058_v16 }
 0x5de   : > { %6966 = vmatprep.subr.bf16.mxu1 %v12063_v43  ;;  %v12117_v43 = vld [vmem:[%s15850_s5 + $0xacc] ss:$16 sps:$4 sm:$0xff]  }
 0x5e1   : > { %6967 = vmatpush1.bf16.msra.mxu1 %v12061_v38  ;;  %v14708_v39 = vpop.f32.mrb[72].mxu0 }
 0x5e2   : > { %v14713_v41 = vpop.f32.mrb[73].mxu0  ;;  %6968 = vmatprep.subr.bf16.mxu1 %v12066_v7 }
 0x5e3   : > { %v4552_v44 = vpop.f32.mrb[74].mxu0 }
 0x5e4   : > { %v4553_v53 = vpop.f32.mrb[75].mxu0  ;;  %v12118_v44 = vld [vmem:[%s15850_s5 + $0xae8] ss:$16 sps:$4 sm:$0xff]  }
 0x5e5   : > { %6969 = vmatpush1.bf16.msra.mxu1 %v12064_v52 }
 0x5e6   : > { %6970 = vmatprep.subr.bf16.mxu1 %v12069_v32  ;;  %v12115_v32 = vld [vmem:[%s15850_s5 + $0xac8] ss:$16 sps:$4 sm:$0xff]  }
 0x5e9   : > { %6971 = vmatpush1.bf16.msra.mxu1 %v12067_v45 }
 0x5ea   : > { %v14727_v58 = vpop.f32.mrb[52].mxu1  ;;  %6972 = vmatprep.subr.bf16.mxu1 %v12072_v47 }
 0x5eb   : > { %v14732_v61 = vpop.f32.mrb[53].mxu1 }
 0x5ec   : > { %v5955_v1 = vpop.f32.mrb[54].mxu1 }
 0x5ed   : > { %6973 = vmatpush1.bf16.msra.mxu1 %v12070_v56  ;;  %v5956_v23 = vpop.f32.mrb[55].mxu1  ;;  %v12121_v56 = vld [vmem:[%s15850_s5 + $0xb08] ss:$16 sps:$4 sm:$0xff]   ;;  %v12126_v1 = vld [vmem:[%s15850_s5 + $0xb2c] ss:$16 sps:$4 sm:$0xff]  }
 0x5ee   : > { %6974 = vmatprep.subr.bf16.mxu1 %v12075_v60  ;;  %v12124_v23 = vld [vmem:[%s15850_s5 + $0xb28] ss:$16 sps:$4 sm:$0xff]  }
 0x5f1   : > { %6975 = vmatpush1.bf16.msra.mxu1 %v12073_v27  ;;  %v12129_v27 = vld [vmem:[%s15850_s5 + $0xb4c] ss:$16 sps:$4 sm:$0xff]  }
 0x5f2   : > { %6976 = vmatprep.subr.bf16.mxu1 %v12078_v2  ;;  %v12127_v2 = vld [vmem:[%s15850_s5 + $0xb48] ss:$16 sps:$4 sm:$0xff]  }
 0x5f5   : > { %6977 = vmatpush1.bf16.msra.mxu1 %v12076_v31  ;;  %v12132_v31 = vld [vmem:[%s15850_s5 + $0xb6c] ss:$16 sps:$4 sm:$0xff]  }
 0x5f6   : > { %6978 = vmatprep.subr.bf16.mxu1 %v12081_v8  ;;  %v12130_v8 = vld [vmem:[%s15850_s5 + $0xb68] ss:$16 sps:$4 sm:$0xff]  }
 0x5f9   : > { %6979 = vmatpush1.bf16.msra.mxu1 %v12079_v63  ;;  %v12135_v63 = vld [vmem:[%s15850_s5 + $0xb8c] ss:$16 sps:$4 sm:$0xff]  }
 0x5fa   : > { %6980 = vmatprep.subr.bf16.mxu1 %v12084_v59  ;;  %v12133_v59 = vld [vmem:[%s15850_s5 + $0xb88] ss:$16 sps:$4 sm:$0xff]  }
 0x5fd   : > { %6981 = vmatpush1.bf16.msra.mxu1 %v12082_v9  ;;  %v12138_v9 = vld [vmem:[%s15850_s5 + $0xbac] ss:$16 sps:$4 sm:$0xff]  }
 0x5fe   : > { %6982 = vmatprep.subr.bf16.mxu1 %v12087_v10  ;;  %v12136_v10 = vld [vmem:[%s15850_s5 + $0xba8] ss:$16 sps:$4 sm:$0xff]  }
 0x601   : > { %6983 = vmatpush1.bf16.msra.mxu1 %v12085_v12  ;;  %v12141_v12 = vld [vmem:[%s15850_s5 + $0xbcc] ss:$16 sps:$4 sm:$0xff]  }
 0x602   : > { %6984 = vmatprep.subr.bf16.mxu1 %v12090_v13  ;;  %v12139_v13 = vld [vmem:[%s15850_s5 + $0xbc8] ss:$16 sps:$4 sm:$0xff]  }
 0x605   : > { %6985 = vmatpush1.bf16.msra.mxu1 %v12088_v17  ;;  %v12144_v17 = vld [vmem:[%s15850_s5 + $0xbec] ss:$16 sps:$4 sm:$0xff]  }
 0x606   : > { %6986 = vmatprep.subr.bf16.mxu1 %v12093_v46  ;;  %v12142_v46 = vld [vmem:[%s15850_s5 + $0xbe8] ss:$16 sps:$4 sm:$0xff]  }
 0x609   : > { %6987 = vmatpush1.bf16.msra.mxu1 %v12091_v50  ;;  %v12147_v50 = vld [vmem:[%s15850_s5 + $0xc04] ss:$16 sps:$4 sm:$0xff]  }
 0x60a   : > { %6988 = vmatprep.subr.bf16.mxu1 %v12096_v24  ;;  %v12145_v24 = vld [vmem:[%s15850_s5 + $0xc00] ss:$16 sps:$4 sm:$0xff]  }
 0x60d   : > { %6989 = vmatpush1.bf16.msra.mxu1 %v12094_v28  ;;  %v7079_v28 = vld [vmem:[#allocation4 + $0x48] sm:$0xf] }
 0x60e   : > { %7009 = vmatprep.subr.bf16.mxu1 %v12099_v18  ;;  %v12150_v18 = vld [vmem:[%s15850_s5 + $0xc24] ss:$16 sps:$4 sm:$0xff]  }
 0x610   : > { %6991 = vmatmul.mubr.bf16.vlgmr.msra.gmra.mrb[48].mxu1 %v13782_v54 }
 0x611   : > { %7000 = vmatprep.mubr.bf16.mxu1 %v14792_v22  ;;  %7010 = vmatpush1.bf16.msra.mxu1 %v12097_v19  ;;  %v7083_v19 = vpack.c.bf16 %v7079_v28, %v14788_v21  ;;  %v12186_v28 = vld [vmem:[%s15850_s5 + $0xda4] ss:$16 sps:$4 sm:$0xff]  }
 0x612   : > { %7011 = vmatprep.subr.bf16.mxu1 %v12102_v20  ;;  %v12148_v20 = vld [vmem:[%s15850_s5 + $0xc20] ss:$16 sps:$4 sm:$0xff]  }
 0x615   : > { %7012 = vmatpush1.bf16.msra.mxu1 %v12100_v5  ;;  %v7073_v5 = vld [vmem:[#allocation4 + $0x18] sm:$0xf0] }
 0x616   : > { %7013 = vmatprep.subr.bf16.mxu1 %v12105_v26  ;;  %v12153_v26 = vld [vmem:[%s15850_s5 + $0xc44] ss:$16 sps:$4 sm:$0xff]  }
 0x618   : > { %7001 = vmatmul.mubr.bf16.gmra.mrb[68].mxu1 %v14809_v25 }
 0x619   : > { %7014 = vmatpush1.bf16.msra.mxu1 %v12103_v37  ;;  %7041 = vmatprep.mubr.bf16.mxu1 %v13787_v29  ;;  %v14919_v37 = vld [vmem:[#allocation4 + $0x28] sm:$0xff] }
 0x61a   : > { %7015 = vmatprep.subr.bf16.mxu1 %v12108_v30  ;;  %v7081_v30 = vpack.c.bf16 %v14919_v37, %v7073_v5  ;;  %v12187_v5 = vld [vmem:[%s15850_s5 + $0xdc0] ss:$16 sps:$4 sm:$0xff]  }
 0x61d   : > { %7016 = vmatpush1.bf16.msra.mxu1 %v12106_v4  ;;  %v7157_v4 = vrot.slane %v7081_v30, 2 }
 0x61e   : > { %7017 = vmatprep.subr.bf16.mxu1 %v12111_v36  ;;  %v12156_v36 = vld [vmem:[%s15850_s5 + $0xc64] ss:$16 sps:$4 sm:$0xff]  }
 0x621   : > { %7018 = vmatpush1.bf16.msra.mxu1 %v12109_v33  ;;  %v4919_v29 = vpop.f32.mrb[76].mxu0 }
 0x622   : > { %v14832_v35 = vadd.f32 %v4919_v29, %v14552_v62  ;;  %v4921_v16 = vpop.f32.mrb[77].mxu0  ;;  %7019 = vmatprep.subr.bf16.mxu1 %v12114_v3  ;;  %v12120_v62 = vld [vmem:[%s15850_s5 + $0xaec] ss:$16 sps:$4 sm:$0xff]   ;;  %v12154_v29 = vld [vmem:[%s15850_s5 + $0xc60] ss:$16 sps:$4 sm:$0xff]  }
 0x623   : > { %v14838_v38 = vadd.f32 %v4921_v16, %v14557_v42  ;;  %v4923_v7 = vpop.f32.mrb[78].mxu0  ;;  %v12123_v42 = vld [vmem:[%s15850_s5 + $0xb0c] ss:$16 sps:$4 sm:$0xff]  }
 0x624   : > { %v4924_v52 = vpop.f32.mrb[79].mxu0  ;;  %v12157_v7 = vld [vmem:[%s15850_s5 + $0xc80] ss:$16 sps:$4 sm:$0xff]  }
 0x625   : > { %7020 = vmatpush1.bf16.msra.mxu1 %v12112_v34  ;;  %v12162_v52 = vld [vmem:[%s15850_s5 + $0xca4] ss:$16 sps:$4 sm:$0xff]  }
 0x626   : > { %7021 = vmatprep.subr.bf16.mxu1 %v12117_v43 }
 0x629   : > { %7022 = vmatpush1.bf16.msra.mxu1 %v12115_v32 }
 0x62a   : > { %7023 = vmatprep.subr.bf16.mxu1 %v12120_v62  ;;  %v12160_v62 = vld [vmem:[%s15850_s5 + $0xca0] ss:$16 sps:$4 sm:$0xff]  }
 0x62b   : > { %v14852_v53 = vpop.f32.mrb[56].mxu1 }
 0x62c   : > { %v14854_v45 = vpop.f32.mrb[57].mxu1 }
 0x62d   : > { %v6006_v47 = vpop.f32.mrb[58].mxu1  ;;  %7024 = vmatpush1.bf16.msra.mxu1 %v12118_v44 }
 0x62e   : > { %v6007_v60 = vpop.f32.mrb[59].mxu1  ;;  %7025 = vmatprep.subr.bf16.mxu1 %v12123_v42  ;;  %v12165_v47 = vld [vmem:[%s15850_s5 + $0xcc4] ss:$16 sps:$4 sm:$0xff]  }
 0x631   : > { %7026 = vmatpush1.bf16.msra.mxu1 %v12121_v56 }
 0x632   : > { %7027 = vmatprep.subr.bf16.mxu1 %v12126_v1 }
 0x635   : > { %7028 = vmatpush1.bf16.msra.mxu1 %v12124_v23 }
 0x636   : > { %7029 = vmatprep.subr.bf16.mxu1 %v12129_v27 }
 0x639   : > { %7030 = vmatpush1.bf16.msra.mxu1 %v12127_v2  ;;  %v12163_v2 = vld [vmem:[%s15850_s5 + $0xcc0] ss:$16 sps:$4 sm:$0xff]  }
 0x63a   : > { %7031 = vmatprep.subr.bf16.mxu1 %v12132_v31 }
 0x63d   : > { %7032 = vmatpush1.bf16.msra.mxu1 %v12130_v8 }
 0x63e   : > { %7033 = vmatprep.subr.bf16.mxu1 %v12135_v63 }
 0x641   : > { %7034 = vmatpush1.bf16.msra.mxu1 %v12133_v59 }
 0x642   : > { %7035 = vmatprep.subr.bf16.mxu1 %v12138_v9  ;;  %v12174_v9 = vld [vmem:[%s15850_s5 + $0xd24] ss:$16 sps:$4 sm:$0xff]  }
 0x645   : > { %7036 = vmatpush1.bf16.msra.mxu1 %v12136_v10  ;;  %v12172_v10 = vld [vmem:[%s15850_s5 + $0xd20] ss:$16 sps:$4 sm:$0xff]  }
 0x646   : > { %7037 = vmatprep.subr.bf16.mxu1 %v12141_v12  ;;  %v12177_v12 = vld [vmem:[%s15850_s5 + $0xd44] ss:$16 sps:$4 sm:$0xff]  }
 0x649   : > { %7038 = vmatpush1.bf16.msra.mxu1 %v12139_v13  ;;  %v12175_v13 = vld [vmem:[%s15850_s5 + $0xd40] ss:$16 sps:$4 sm:$0xff]  }
 0x64a   : > { %7039 = vmatprep.subr.bf16.mxu1 %v12144_v17  ;;  %v12180_v17 = vld [vmem:[%s15850_s5 + $0xd64] ss:$16 sps:$4 sm:$0xff]  }
 0x64d   : > { %7040 = vmatpush1.bf16.msra.mxu1 %v12142_v46  ;;  %v12178_v46 = vld [vmem:[%s15850_s5 + $0xd60] ss:$16 sps:$4 sm:$0xff]  }
 0x64e   : > { %7484 = vmatprep.subr.bf16.mxu1 %v12147_v50  ;;  %v12183_v50 = vld [vmem:[%s15850_s5 + $0xd84] ss:$16 sps:$4 sm:$0xff]  }
 0x650   : > { %7042 = vmatmul.mubr.bf16.vlgmr.msra.gmra.mrb[40].mxu1 %v13782_v54  ;;  %v14922_v54 = vrot.slane %v7083_v19, 2  ;;  %v12189_v19 = vld [vmem:[%s15850_s5 + $0xdc4] ss:$16 sps:$4 sm:$0xff]  }
 0x651   : > { %7051 = vmatprep.mubr.bf16.mxu1 %v14792_v22  ;;  %7485 = vmatpush1.bf16.msra.mxu1 %v12145_v24  ;;  %v12151_v22 = vld [vmem:[%s15850_s5 + $0xc40] ss:$16 sps:$4 sm:$0xff]  }
 0x652   : > { %7486 = vmatprep.subr.bf16.mxu1 %v12150_v18  ;;  %v14933_v33 = vsel %vm3224_vm1, %v7157_v4, %v14922_v54  ;;  %v12181_v24 = vld [vmem:[%s15850_s5 + $0xd80] ss:$16 sps:$4 sm:$0xff]  }
 0x653   : > { %v12184_v18 = vld [vmem:[%s15850_s5 + $0xda0] ss:$16 sps:$4 sm:$0xff]  }
 0x654   : > { %v12190_v4 = vld [vmem:[%s15850_s5 + $0xde0] ss:$16 sps:$4 sm:$0xff]  }
 0x655   : > { %7487 = vmatpush1.bf16.msra.mxu1 %v12148_v20  ;;  %v7078_v20 = vld [vmem:[#allocation4 + $0x40] sm:$0xf] }
 0x656   : > { %7488 = vmatprep.subr.bf16.mxu1 %v12153_v26  ;;  %v12192_v26 = vld [vmem:[%s15850_s5 + $0xde4] ss:$16 sps:$4 sm:$0xff]   ;;  %v7082_v30 = vpack.c.bf16 %v7078_v20, %v14805_v6 }
 0x658   : > { %7052 = vmatmul.mubr.bf16.gmra.mrb[72].mxu1 %v14809_v25  ;;  %v12159_v25 = vld [vmem:[%s15850_s5 + $0xc84] ss:$16 sps:$4 sm:$0xff]  }
 0x659   : > { %7489 = vmatpush1.bf16.msra.mxu1 %v12151_v22  ;;  %7516 = vmatprep.mubr.bf16.mxu1 %v14933_v33  ;;  %v14936_v3 = vpop.f32.mrb[68].mxu0  ;;  %v7072_v22 = vld [vmem:[#allocation4 + $0x10] sm:$0xf0] }
 0x65a   : > { %v14941_v34 = vpop.f32.mrb[69].mxu0  ;;  %7490 = vmatprep.subr.bf16.mxu1 %v12156_v36  ;;  %v15034_v36 = vld [vmem:[#allocation4 + $0x20] sm:$0xff] }
 0x65b   : > { %v14946_v16 = vpop.f32.mrb[70].mxu0 }
 0x65c   : > { %v14948_v43 = vpop.f32.mrb[71].mxu0 }
 0x65d   : > { %7491 = vmatpush1.bf16.msra.mxu1 %v12154_v29  ;;  %v7080_v29 = vpack.c.bf16 %v15034_v36, %v7072_v22  ;;  %v12223_v22 = vld [vmem:[%s15850_s5 + $0xd48] ss:$16 sps:$4 sm:$0xff]  }
 0x65e   : > { %7492 = vmatprep.subr.bf16.mxu1 %v12159_v25  ;;  %v12195_v25 = vld [vmem:[%s15850_s5 + $0xc0c] ss:$16 sps:$4 sm:$0xff]  }
 0x661   : > { %7493 = vmatpush1.bf16.msra.mxu1 %v12157_v7  ;;  %v4970_v32 = vpop.f32.mrb[80].mxu0  ;;  %v15040_v7 = vrot.slane %v7082_v30, 2  ;;  %v12222_v30 = vld [vmem:[%s15850_s5 + $0xd2c] ss:$16 sps:$4 sm:$0xff]  }
 0x662   : > { %v4971_v44 = vadd.f32 %v4970_v32, %v14708_v39  ;;  %v4972_v42 = vpop.f32.mrb[81].mxu0  ;;  %7494 = vmatprep.subr.bf16.mxu1 %v12162_v52  ;;  %v12168_v39 = vld [vmem:[%s15850_s5 + $0xce4] ss:$16 sps:$4 sm:$0xff]   ;;  %v7154_v52 = vrot.slane %v7080_v29, 2  ;;  %v12193_v32 = vld [vmem:[%s15850_s5 + $0xc08] ss:$16 sps:$4 sm:$0xff]  }
 0x663   : > { %v4973_v56 = vadd.f32 %v4972_v42, %v14713_v41  ;;  %v4974_v60 = vpop.f32.mrb[82].mxu0  ;;  %v12196_v42 = vld [vmem:[%s15850_s5 + $0xc28] ss:$16 sps:$4 sm:$0xff]  }
 0x664   : > { %v5497_v1 = vadd.f32 %v14580_v55, %v4971_v44  ;;  %v4975_v23 = vpop.f32.mrb[83].mxu0  ;;  %v12166_v55 = vld [vmem:[%s15850_s5 + $0xce0] ss:$16 sps:$4 sm:$0xff]   ;;  %v15050_v44 = vsel %vm3224_vm1, %v7154_v52, %v15040_v7  ;;  %v12204_v60 = vld [vmem:[%s15850_s5 + $0xc6c] ss:$16 sps:$4 sm:$0xff]  }
 0x665   : > { %v5498_v27 = vadd.f32 %v14585_v57, %v4973_v56  ;;  %7495 = vmatpush1.bf16.msra.mxu1 %v12160_v62  ;;  %v12171_v57 = vld [vmem:[%s15850_s5 + $0xd04] ss:$16 sps:$4 sm:$0xff]   ;;  %v12198_v62 = vld [vmem:[%s15850_s5 + $0xc2c] ss:$16 sps:$4 sm:$0xff]   ;;  %v12199_v56 = vld [vmem:[%s15850_s5 + $0xc48] ss:$16 sps:$4 sm:$0xff]  }
 0x666   : > { %7496 = vmatprep.subr.bf16.mxu1 %v12165_v47  ;;  %v14973_v31 = vadd.f32 %v14852_v53, %v5497_v1  ;;  %v12169_v53 = vld [vmem:[%s15850_s5 + $0xd00] ss:$16 sps:$4 sm:$0xff]   ;;  %v12201_v47 = vld [vmem:[%s15850_s5 + $0xc4c] ss:$16 sps:$4 sm:$0xff]   ;;  %v12202_v23 = vld [vmem:[%s15850_s5 + $0xc68] ss:$16 sps:$4 sm:$0xff]  }
 0x667   : > { %v14976_v41 = vadd.f32 %v14854_v45, %v5498_v27  ;;  %v12226_v29 = vld [vmem:[%s15850_s5 + $0xd68] ss:$16 sps:$4 sm:$0xff]  }
 0x668   : > { %v12229_v52 = vld [vmem:[%s15850_s5 + $0xd88] ss:$16 sps:$4 sm:$0xff]  }
 0x669   : > { %7497 = vmatpush1.bf16.msra.mxu1 %v12163_v2  ;;  %v12207_v2 = vld [vmem:[%s15850_s5 + $0xc8c] ss:$16 sps:$4 sm:$0xff]  }
 0x66a   : > { %7498 = vmatprep.subr.bf16.mxu1 %v12168_v39 }
 0x66b   : > { %v14984_v8 = vpop.f32.mrb[60].mxu1 }
 0x66c   : > { %v14986_v63 = vpop.f32.mrb[61].mxu1 }
 0x66d   : > { %v6501_v59 = vpop.f32.mrb[62].mxu1  ;;  %7499 = vmatpush1.bf16.msra.mxu1 %v12166_v55 }
 0x66e   : > { %v6502_v45 = vpop.f32.mrb[63].mxu1  ;;  %7500 = vmatprep.subr.bf16.mxu1 %v12171_v57  ;;  %v12210_v57 = vld [vmem:[%s15850_s5 + $0xcac] ss:$16 sps:$4 sm:$0xff]  }
 0x671   : > { %7501 = vmatpush1.bf16.msra.mxu1 %v12169_v53  ;;  %v12208_v53 = vld [vmem:[%s15850_s5 + $0xca8] ss:$16 sps:$4 sm:$0xff]  }
 0x672   : > { %7502 = vmatprep.subr.bf16.mxu1 %v12174_v9 }
 0x675   : > { %7503 = vmatpush1.bf16.msra.mxu1 %v12172_v10  ;;  %v12213_v10 = vld [vmem:[%s15850_s5 + $0xccc] ss:$16 sps:$4 sm:$0xff]  }
 0x676   : > { %7504 = vmatprep.subr.bf16.mxu1 %v12177_v12 }
 0x679   : > { %7505 = vmatpush1.bf16.msra.mxu1 %v12175_v13 }
 0x67a   : > { %7506 = vmatprep.subr.bf16.mxu1 %v12180_v17 }
 0x67d   : > { %7507 = vmatpush1.bf16.msra.mxu1 %v12178_v46 }
 0x67e   : > { %7508 = vmatprep.subr.bf16.mxu1 %v12183_v50 }
 0x681   : > { %7509 = vmatpush1.bf16.msra.mxu1 %v12181_v24  ;;  %v12211_v24 = vld [vmem:[%s15850_s5 + $0xcc8] ss:$16 sps:$4 sm:$0xff]  }
 0x682   : > { %7510 = vmatprep.subr.bf16.mxu1 %v12186_v28 }
 0x685   : > { %7511 = vmatpush1.bf16.msra.mxu1 %v12184_v18 }
 0x686   : > { %7512 = vmatprep.subr.bf16.mxu1 %v12189_v19 }
 0x689   : > { %7513 = vmatpush1.bf16.msra.mxu1 %v12187_v5  ;;  %v12217_v5 = vld [vmem:[%s15850_s5 + $0xd08] ss:$16 sps:$4 sm:$0xff]  }
 0x68a   : > { %7514 = vmatprep.subr.bf16.mxu1 %v12192_v26 }
 0x68d   : > { %7515 = vmatpush1.bf16.msra.mxu1 %v12190_v4  ;;  %v12228_v4 = vld [vmem:[%s15850_s5 + $0xd6c] ss:$16 sps:$4 sm:$0xff]  }
 0x68e   : > { %7535 = vmatprep.subr.bf16.mxu1 %v12195_v25  ;;  %v12231_v25 = vld [vmem:[%s15850_s5 + $0xd8c] ss:$16 sps:$4 sm:$0xff]  }
 0x690   : > { %7517 = vmatmul.mubr.bf16.vlgmr.msra.gmra.mrb[48].mxu1 %v15050_v44 }
 0x691   : > { %7526 = vmatprep.mubr.bf16.mxu1 %v14922_v54  ;;  %7536 = vmatpush1.bf16.msra.mxu1 %v12193_v32  ;;  %v12234_v32 = vld [vmem:[%s15850_s5 + $0xdac] ss:$16 sps:$4 sm:$0xff]  }
 0x692   : > { %7537 = vmatprep.subr.bf16.mxu1 %v12198_v62  ;;  %v12232_v62 = vld [vmem:[%s15850_s5 + $0xda8] ss:$16 sps:$4 sm:$0xff]  }
 0x695   : > { %7538 = vmatpush1.bf16.msra.mxu1 %v12196_v42  ;;  %v12237_v42 = vld [vmem:[%s15850_s5 + $0xdcc] ss:$16 sps:$4 sm:$0xff]  }
 0x696   : > { %7539 = vmatprep.subr.bf16.mxu1 %v12201_v47  ;;  %v12235_v47 = vld [vmem:[%s15850_s5 + $0xdc8] ss:$16 sps:$4 sm:$0xff]  }
 0x698   : > { %7527 = vmatmul.mubr.bf16.gmra.mrb[76].mxu1 %v15040_v7 }
 0x699   : > { %7540 = vmatpush1.bf16.msra.mxu1 %v12199_v56  ;;  %7567 = vmatprep.mubr.bf16.mxu1 %v14933_v33  ;;  %v15068_v1 = vpop.f32.mrb[60].mxu0  ;;  %v12205_v33 = vld [vmem:[%s15850_s5 + $0xc88] ss:$16 sps:$4 sm:$0xff]  }
 0x69a   : > { %v15073_v27 = vpop.f32.mrb[61].mxu0  ;;  %7541 = vmatprep.subr.bf16.mxu1 %v12204_v60  ;;  %v7601_v56 = vld [vmem:[#allocation4 + $0x48] sm:$0x1f] }
 0x69b   : > { %v15078_v39 = vpop.f32.mrb[62].mxu0  ;;  %v12240_v60 = vld [vmem:[%s15850_s5 + $0xdec] ss:$16 sps:$4 sm:$0xff]  }
 0x69c   : > { %v15080_v55 = vpop.f32.mrb[63].mxu0 }
 0x69d   : > { %7542 = vmatpush1.bf16.msra.mxu1 %v12202_v23  ;;  %v7605_v23 = vpack.c.bf16 %v7601_v56, %v14788_v21  ;;  %v12241_v21 = vld [vmem:[%s15850_s5 + $0xe00] ss:$16 sps:$4 sm:$0xff]  }
 0x69e   : > { %7543 = vmatprep.subr.bf16.mxu1 %v12207_v2  ;;  %v12238_v2 = vld [vmem:[%s15850_s5 + $0xde8] ss:$16 sps:$4 sm:$0xff]   ;;  %v12271_v56 = vld [vmem:[%s15850_s5 + $0xf40] ss:$16 sps:$4 sm:$0xff]  }
 0x6a1   : > { %7544 = vmatpush1.bf16.msra.mxu1 %v12205_v33  ;;  %v5429_v59 = vpop.f32.mrb[84].mxu0  ;;  %v7599_v33 = vld [vmem:[#allocation4 + $0x18] sm:$0xe0] }
 0x6a2   : > { %v5495_v45 = vadd.f32 %v5429_v59, %v14832_v35  ;;  %v5431_v9 = vpop.f32.mrb[85].mxu0  ;;  %7545 = vmatprep.subr.bf16.mxu1 %v12210_v57  ;;  %v12216_v35 = vld [vmem:[%s15850_s5 + $0xcec] ss:$16 sps:$4 sm:$0xff]   ;;  %v12243_v57 = vld [vmem:[%s15850_s5 + $0xe04] ss:$16 sps:$4 sm:$0xff]   ;;  %v7603_v59 = vpack.c.bf16 %v14919_v37, %v7599_v33 }
 0x6a3   : > { %v5496_v12 = vadd.f32 %v5431_v9, %v14838_v38  ;;  %v5433_v13 = vpop.f32.mrb[86].mxu0  ;;  %v12246_v9 = vld [vmem:[%s15850_s5 + $0xe24] ss:$16 sps:$4 sm:$0xff]   ;;  %v12244_v37 = vld [vmem:[%s15850_s5 + $0xe20] ss:$16 sps:$4 sm:$0xff]  }
 0x6a4   : > { %v6017_v17 = vadd.f32 %v14727_v58, %v5495_v45  ;;  %v5434_v46 = vpop.f32.mrb[87].mxu0  ;;  %v12214_v58 = vld [vmem:[%s15850_s5 + $0xce8] ss:$16 sps:$4 sm:$0xff]   ;;  %v7701_v45 = vshll.u32 %v7605_v23, 16  ;;  %v7600_v33 = vld [vmem:[#allocation4 + $0x40] sm:$0x1f] }
 0x6a5   : > { %v6018_v50 = vadd.f32 %v14732_v61, %v5496_v12  ;;  %7546 = vmatpush1.bf16.msra.mxu1 %v12208_v53  ;;  %v12219_v61 = vld [vmem:[%s15850_s5 + $0xd0c] ss:$16 sps:$4 sm:$0xff]   ;;  %v7698_v53 = vshrl.u32 %v7605_v23, 16  ;;  %v7693_v12 = vshll.u32 %v7603_v59, 16  ;;  %v12249_v46 = vld [vmem:[%s15850_s5 + $0xe44] ss:$16 sps:$4 sm:$0xff]  }
 0x6a6   : > { %7547 = vmatprep.subr.bf16.mxu1 %v12213_v10  ;;  %v15105_v28 = vadd.f32 %v14984_v8, %v6017_v17  ;;  %v7690_v10 = vshrl.u32 %v7603_v59, 16  ;;  %v7703_v17 = vrot.slane %v7701_v45, 3  ;;  %v12274_v23 = vld [vmem:[%s15850_s5 + $0xf60] ss:$16 sps:$4 sm:$0xff]   ;;  %v12282_v59 = vld [vmem:[%s15850_s5 + $0xfa4] ss:$16 sps:$4 sm:$0xff]  }
 0x6a7   : > { %v15108_v38 = vadd.f32 %v14986_v63, %v6018_v50  ;;  %v7700_v13 = vrot.slane %v7698_v53, 2  ;;  %v7604_v53 = vpack.c.bf16 %v7600_v33, %v14805_v6  ;;  %v7598_v45 = vld [vmem:[#allocation4 + $0x10] sm:$0xe0]  ;;  %v12283_v6 = vld [vmem:[%s15850_s5 + $0xfc0] ss:$16 sps:$4 sm:$0xff]  }
 0x6a8   : > { %v7692_v50 = vrot.slane %v7690_v10, 2  ;;  %v12285_v10 = vld [vmem:[%s15850_s5 + $0xfc4] ss:$16 sps:$4 sm:$0xff]  }
 0x6a9   : > { %7548 = vmatpush1.bf16.msra.mxu1 %v12211_v24  ;;  %v7695_v24 = vrot.slane %v7693_v12, 3  ;;  %v7681_v12 = vshrl.u32 %v7604_v53, 16 }
 0x6aa   : > { %7549 = vmatprep.subr.bf16.mxu1 %v12216_v35  ;;  %v15186_v35 = vor.u32 %v7703_v17, %v7700_v13  ;;  %v7684_v13 = vshll.u32 %v7604_v53, 16  ;;  %v12318_v53 = vld [vmem:[%s15850_s5 + $0xf2c] ss:$16 sps:$4 sm:$0xff]  }
 0x6ab   : > { %v6548_v18 = vpop.f32.mrb[64].mxu1 }
 0x6ac   : > { %v15117_v19 = vadd.f32 %v6548_v18, %v14973_v31  ;;  %v6550_v20 = vpop.f32.mrb[65].mxu1  ;;  %v12220_v31 = vld [vmem:[%s15850_s5 + $0xd28] ss:$16 sps:$4 sm:$0xff]   ;;  %v12250_v18 = vld [vmem:[%s15850_s5 + $0xe60] ss:$16 sps:$4 sm:$0xff]  }
 0x6ad   : > { %v15120_v8 = vadd.f32 %v6550_v20, %v14976_v41  ;;  %v6552_v63 = vpop.f32.mrb[66].mxu1  ;;  %7550 = vmatpush1.bf16.msra.mxu1 %v12214_v58  ;;  %v12225_v41 = vld [vmem:[%s15850_s5 + $0xd4c] ss:$16 sps:$4 sm:$0xff]   ;;  %v12252_v58 = vld [vmem:[%s15850_s5 + $0xe64] ss:$16 sps:$4 sm:$0xff]  }
 0x6ae   : > { %v6553_v26 = vpop.f32.mrb[67].mxu1  ;;  %7551 = vmatprep.subr.bf16.mxu1 %v12219_v61  ;;  %v12255_v20 = vld [vmem:[%s15850_s5 + $0xe84] ss:$16 sps:$4 sm:$0xff]  }
 0x6af   : > { %v12258_v63 = vld [vmem:[%s15850_s5 + $0xea4] ss:$16 sps:$4 sm:$0xff]  }
 0x6b0   : > { %v12261_v26 = vld [vmem:[%s15850_s5 + $0xec4] ss:$16 sps:$4 sm:$0xff]  }
 0x6b1   : > { %7552 = vmatpush1.bf16.msra.mxu1 %v12217_v5  ;;  %v12256_v5 = vld [vmem:[%s15850_s5 + $0xea0] ss:$16 sps:$4 sm:$0xff]  }
 0x6b2   : > { %7553 = vmatprep.subr.bf16.mxu1 %v12222_v30  ;;  %v12259_v30 = vld [vmem:[%s15850_s5 + $0xec0] ss:$16 sps:$4 sm:$0xff]  }
 0x6b5   : > { %7554 = vmatpush1.bf16.msra.mxu1 %v12220_v31  ;;  %v12264_v31 = vld [vmem:[%s15850_s5 + $0xee4] ss:$16 sps:$4 sm:$0xff]  }
 0x6b6   : > { %7555 = vmatprep.subr.bf16.mxu1 %v12225_v41  ;;  %v12262_v41 = vld [vmem:[%s15850_s5 + $0xee0] ss:$16 sps:$4 sm:$0xff]  }
 0x6b9   : > { %7556 = vmatpush1.bf16.msra.mxu1 %v12223_v22  ;;  %v12267_v22 = vld [vmem:[%s15850_s5 + $0xf04] ss:$16 sps:$4 sm:$0xff]  }
 0x6ba   : > { %7557 = vmatprep.subr.bf16.mxu1 %v12228_v4 }
 0x6bd   : > { %7558 = vmatpush1.bf16.msra.mxu1 %v12226_v29 }
 0x6be   : > { %7559 = vmatprep.subr.bf16.mxu1 %v12231_v25 }
 0x6c1   : > { %7560 = vmatpush1.bf16.msra.mxu1 %v12229_v52 }
 0x6c2   : > { %7561 = vmatprep.subr.bf16.mxu1 %v12234_v32 }
 0x6c5   : > { %7562 = vmatpush1.bf16.msra.mxu1 %v12232_v62  ;;  %v12265_v62 = vld [vmem:[%s15850_s5 + $0xf00] ss:$16 sps:$4 sm:$0xff]  }
 0x6c6   : > { %7563 = vmatprep.subr.bf16.mxu1 %v12237_v42 }
 0x6c9   : > { %7564 = vmatpush1.bf16.msra.mxu1 %v12235_v47  ;;  %v12270_v47 = vld [vmem:[%s15850_s5 + $0xf24] ss:$16 sps:$4 sm:$0xff]  }
 0x6ca   : > { %7565 = vmatprep.subr.bf16.mxu1 %v12240_v60  ;;  %v12276_v60 = vld [vmem:[%s15850_s5 + $0xf64] ss:$16 sps:$4 sm:$0xff]  }
 0x6cd   : > { %7566 = vmatpush1.bf16.msra.mxu1 %v12238_v2  ;;  %v12279_v2 = vld [vmem:[%s15850_s5 + $0xf84] ss:$16 sps:$4 sm:$0xff]  }
 0x6ce   : > { %8030 = vmatprep.subr.bf16.mxu1 %v12243_v57  ;;  %v12277_v57 = vld [vmem:[%s15850_s5 + $0xf80] ss:$16 sps:$4 sm:$0xff]  }
 0x6d0   : > { %7568 = vmatmul.mubr.bf16.vlgmr.msra.gmra.mrb[40].mxu1 %v15050_v44  ;;  %v12247_v44 = vld [vmem:[%s15850_s5 + $0xe40] ss:$16 sps:$4 sm:$0xff]  }
 0x6d1   : > { %7577 = vmatprep.mubr.bf16.mxu1 %v14922_v54  ;;  %8031 = vmatpush1.bf16.msra.mxu1 %v12241_v21  ;;  %v7696_v54 = vor.u32 %v7695_v24, %v7692_v50  ;;  %v12280_v21 = vld [vmem:[%s15850_s5 + $0xfa0] ss:$16 sps:$4 sm:$0xff]   ;;  %v7686_v50 = vrot.slane %v7684_v13, 3  ;;  %v12330_v13 = vld [vmem:[%s15850_s5 + $0xfac] ss:$16 sps:$4 sm:$0xff]  }
 0x6d2   : > { %8032 = vmatprep.subr.bf16.mxu1 %v12246_v9  ;;  %v7602_v9 = vpack.c.bf16 %v15034_v36, %v7598_v45  ;;  %v7683_v36 = vrot.slane %v7681_v12, 2  ;;  %v12286_v24 = vld [vmem:[%s15850_s5 + $0xfe0] ss:$16 sps:$4 sm:$0xff]   ;;  %v12319_v45 = vld [vmem:[%s15850_s5 + $0xf48] ss:$16 sps:$4 sm:$0xff]  }
 0x6d3   : > { %v15197_v61 = vsel %vm7671_vm10, %v7696_v54, %v15186_v35  ;;  %v12325_v12 = vld [vmem:[%s15850_s5 + $0xf88] ss:$16 sps:$4 sm:$0xff]  }
 0x6d4   : > { %v7673_v17 = vshrl.u32 %v7602_v9, 16 }
 0x6d5   : > { %8033 = vmatpush1.bf16.msra.mxu1 %v12244_v37  ;;  %v7676_v37 = vshll.u32 %v7602_v9, 16  ;;  %v12322_v9 = vld [vmem:[%s15850_s5 + $0xf68] ss:$16 sps:$4 sm:$0xff]  }
 0x6d6   : > { %8034 = vmatprep.subr.bf16.mxu1 %v12249_v46  ;;  %v12288_v46 = vld [vmem:[%s15850_s5 + $0xfe4] ss:$16 sps:$4 sm:$0xff]  }
 0x6d7   : > { %v7678_v54 = vrot.slane %v7676_v37, 3  ;;  %v12331_v37 = vld [vmem:[%s15850_s5 + $0xfc8] ss:$16 sps:$4 sm:$0xff]  }
 0x6d8   : > { %7578 = vmatmul.mubr.bf16.gmra.mrb[80].mxu1 %v15040_v7  ;;  %v12253_v7 = vld [vmem:[%s15850_s5 + $0xe80] ss:$16 sps:$4 sm:$0xff]  }
 0x6d9   : > { %8035 = vmatpush1.bf16.msra.mxu1 %v12247_v44  ;;  %8062 = vmatprep.mubr.bf16.mxu1 %v15197_v61  ;;  %v7675_v44 = vrot.slane %v7673_v17, 2  ;;  %v12333_v17 = vld [vmem:[%s15850_s5 + $0xfcc] ss:$16 sps:$4 sm:$0xff]  }
 0x6da   : > { %8036 = vmatprep.subr.bf16.mxu1 %v12252_v58  ;;  %v12291_v58 = vld [vmem:[%s15850_s5 + $0xe0c] ss:$16 sps:$4 sm:$0xff]  }
 0x6dd   : > { %8037 = vmatpush1.bf16.msra.mxu1 %v12250_v18  ;;  %v15286_v18 = vor.u32 %v7686_v50, %v7683_v36  ;;  %v12334_v36 = vld [vmem:[%s15850_s5 + $0xfe8] ss:$16 sps:$4 sm:$0xff]   ;;  %v12339_v50 = vld [vmem:[%s15850_s5 + $0x1004] ss:$16 sps:$4 sm:$0xff]  }
 0x6de   : > { %8038 = vmatprep.subr.bf16.mxu1 %v12255_v20  ;;  %v7679_v20 = vor.u32 %v7678_v54, %v7675_v44  ;;  %v12342_v44 = vld [vmem:[%s15850_s5 + $0x1024] ss:$16 sps:$4 sm:$0xff]   ;;  %v12340_v54 = vld [vmem:[%s15850_s5 + $0x1020] ss:$16 sps:$4 sm:$0xff]  }
 0x6e1   : > { %8039 = vmatpush1.bf16.msra.mxu1 %v12253_v7  ;;  %v12289_v7 = vld [vmem:[%s15850_s5 + $0xe08] ss:$16 sps:$4 sm:$0xff]  }
 0x6e2   : > { %8040 = vmatprep.subr.bf16.mxu1 %v12258_v63  ;;  %v12294_v63 = vld [vmem:[%s15850_s5 + $0xe2c] ss:$16 sps:$4 sm:$0xff]  }
 0x6e5   : > { %8041 = vmatpush1.bf16.msra.mxu1 %v12256_v5  ;;  %v15296_v5 = vsel %vm7671_vm10, %v7679_v20, %v15286_v18  ;;  %v12343_v20 = vld [vmem:[%s15850_s5 + $0x1040] ss:$16 sps:$4 sm:$0xff]  }
 0x6e6   : > { %8042 = vmatprep.subr.bf16.mxu1 %v12261_v26  ;;  %v12292_v26 = vld [vmem:[%s15850_s5 + $0xe28] ss:$16 sps:$4 sm:$0xff]  }
 0x6e9   : > { %8043 = vmatpush1.bf16.msra.mxu1 %v12259_v30  ;;  %v12297_v30 = vld [vmem:[%s15850_s5 + $0xe4c] ss:$16 sps:$4 sm:$0xff]  }
 0x6ea   : > { %8044 = vmatprep.subr.bf16.mxu1 %v12264_v31  ;;  %v12295_v31 = vld [vmem:[%s15850_s5 + $0xe48] ss:$16 sps:$4 sm:$0xff]  }
 0x6eb   : > { %v7002_v4 = vpop.f32.mrb[68].mxu1 }
 0x6ec   : > { %v15231_v29 = vadd.f32 %v7002_v4, %v15105_v28  ;;  %v7004_v25 = vpop.f32.mrb[69].mxu1  ;;  %v12268_v28 = vld [vmem:[%s15850_s5 + $0xf20] ss:$16 sps:$4 sm:$0xff]   ;;  %v12303_v4 = vld [vmem:[%s15850_s5 + $0xe8c] ss:$16 sps:$4 sm:$0xff]  }
 0x6ed   : > { %v15234_v52 = vadd.f32 %v7004_v25, %v15108_v38  ;;  %v7006_v32 = vpop.f32.mrb[70].mxu1  ;;  %8045 = vmatpush1.bf16.msra.mxu1 %v12262_v41  ;;  %v12273_v38 = vld [vmem:[%s15850_s5 + $0xf44] ss:$16 sps:$4 sm:$0xff]   ;;  %v12300_v41 = vld [vmem:[%s15850_s5 + $0xe6c] ss:$16 sps:$4 sm:$0xff]  }
 0x6ee   : > { %v7007_v42 = vpop.f32.mrb[71].mxu1  ;;  %8046 = vmatprep.subr.bf16.mxu1 %v12267_v22  ;;  %v12298_v22 = vld [vmem:[%s15850_s5 + $0xe68] ss:$16 sps:$4 sm:$0xff]   ;;  %v12306_v32 = vld [vmem:[%s15850_s5 + $0xeac] ss:$16 sps:$4 sm:$0xff]  }
 0x6ef   : > { %v12301_v25 = vld [vmem:[%s15850_s5 + $0xe88] ss:$16 sps:$4 sm:$0xff]  }
 0x6f0   : > { %v12307_v42 = vld [vmem:[%s15850_s5 + $0xec8] ss:$16 sps:$4 sm:$0xff]  }
 0x6f1   : > { %8047 = vmatpush1.bf16.msra.mxu1 %v12265_v62  ;;  %v12309_v62 = vld [vmem:[%s15850_s5 + $0xecc] ss:$16 sps:$4 sm:$0xff]  }
 0x6f2   : > { %8048 = vmatprep.subr.bf16.mxu1 %v12270_v47  ;;  %v12312_v47 = vld [vmem:[%s15850_s5 + $0xeec] ss:$16 sps:$4 sm:$0xff]  }
 0x6f5   : > { %8049 = vmatpush1.bf16.msra.mxu1 %v12268_v28  ;;  %v12310_v28 = vld [vmem:[%s15850_s5 + $0xee8] ss:$16 sps:$4 sm:$0xff]  }
 0x6f6   : > { %8050 = vmatprep.subr.bf16.mxu1 %v12273_v38  ;;  %v12315_v38 = vld [vmem:[%s15850_s5 + $0xf0c] ss:$16 sps:$4 sm:$0xff]  }
 0x6f9   : > { %8051 = vmatpush1.bf16.msra.mxu1 %v12271_v56 }
 0x6fa   : > { %8052 = vmatprep.subr.bf16.mxu1 %v12276_v60 }
 0x6fd   : > { %8053 = vmatpush1.bf16.msra.mxu1 %v12274_v23 }
 0x6fe   : > { %8054 = vmatprep.subr.bf16.mxu1 %v12279_v2 }
 0x701   : > { %8055 = vmatpush1.bf16.msra.mxu1 %v12277_v57  ;;  %v12313_v57 = vld [vmem:[%s15850_s5 + $0xf08] ss:$16 sps:$4 sm:$0xff]  }
 0x702   : > { %8056 = vmatprep.subr.bf16.mxu1 %v12282_v59 }
 0x705   : > { %8057 = vmatpush1.bf16.msra.mxu1 %v12280_v21  ;;  %v12324_v21 = vld [vmem:[%s15850_s5 + $0xf6c] ss:$16 sps:$4 sm:$0xff]  }
 0x706   : > { %8058 = vmatprep.subr.bf16.mxu1 %v12285_v10  ;;  %v12327_v10 = vld [vmem:[%s15850_s5 + $0xf8c] ss:$16 sps:$4 sm:$0xff]  }
 0x709   : > { %8059 = vmatpush1.bf16.msra.mxu1 %v12283_v6  ;;  %v12328_v6 = vld [vmem:[%s15850_s5 + $0xfa8] ss:$16 sps:$4 sm:$0xff]  }
 0x70a   : > { %8060 = vmatprep.subr.bf16.mxu1 %v12288_v46  ;;  %v12336_v46 = vld [vmem:[%s15850_s5 + $0xfec] ss:$16 sps:$4 sm:$0xff]  }
 0x70d   : > { %8061 = vmatpush1.bf16.msra.mxu1 %v12286_v24  ;;  %v12337_v24 = vld [vmem:[%s15850_s5 + $0x1000] ss:$16 sps:$4 sm:$0xff]  }
 0x70e   : > { %8081 = vmatprep.subr.bf16.mxu1 %v12291_v58  ;;  %v12345_v58 = vld [vmem:[%s15850_s5 + $0x1044] ss:$16 sps:$4 sm:$0xff]  }
 0x710   : > { %8063 = vmatmul.mubr.bf16.vlgmr.msra.gmra.mrb[48].mxu1 %v15296_v5 }
 0x711   : > { %8072 = vmatprep.mubr.bf16.mxu1 %v15186_v35  ;;  %8082 = vmatpush1.bf16.msra.mxu1 %v12289_v7  ;;  %v12346_v7 = vld [vmem:[%s15850_s5 + $0x1060] ss:$16 sps:$4 sm:$0xff]  }
 0x712   : > { %8083 = vmatprep.subr.bf16.mxu1 %v12294_v63  ;;  %v12351_v63 = vld [vmem:[%s15850_s5 + $0x1084] ss:$16 sps:$4 sm:$0xff]  }
 0x715   : > { %8084 = vmatpush1.bf16.msra.mxu1 %v12292_v26  ;;  %v12352_v26 = vld [vmem:[%s15850_s5 + $0x10a0] ss:$16 sps:$4 sm:$0xff]  }
 0x716   : > { %8085 = vmatprep.subr.bf16.mxu1 %v12297_v30  ;;  %v12357_v30 = vld [vmem:[%s15850_s5 + $0x10c4] ss:$16 sps:$4 sm:$0xff]  }
 0x718   : > { %8073 = vmatmul.mubr.bf16.gmra.mrb[84].mxu1 %v15286_v18 }
 0x719   : > { %8086 = vmatpush1.bf16.msra.mxu1 %v12295_v31  ;;  %8113 = vmatprep.mubr.bf16.mxu1 %v15197_v61  ;;  %v12304_v61 = vld [vmem:[%s15850_s5 + $0xea8] ss:$16 sps:$4 sm:$0xff]   ;;  %v12355_v31 = vld [vmem:[%s15850_s5 + $0x10c0] ss:$16 sps:$4 sm:$0xff]  }
 0x71a   : > { %8087 = vmatprep.subr.bf16.mxu1 %v12300_v41  ;;  %v12360_v41 = vld [vmem:[%s15850_s5 + $0x10e4] ss:$16 sps:$4 sm:$0xff]  }
 0x71d   : > { %8088 = vmatpush1.bf16.msra.mxu1 %v12298_v22  ;;  %v12358_v22 = vld [vmem:[%s15850_s5 + $0x10e0] ss:$16 sps:$4 sm:$0xff]  }
 0x71e   : > { %8089 = vmatprep.subr.bf16.mxu1 %v12303_v4  ;;  %v12363_v4 = vld [vmem:[%s15850_s5 + $0x1104] ss:$16 sps:$4 sm:$0xff]  }
 0x721   : > { %8090 = vmatpush1.bf16.msra.mxu1 %v12301_v25 }
 0x722   : > { %8091 = vmatprep.subr.bf16.mxu1 %v12306_v32 }
 0x725   : > { %8092 = vmatpush1.bf16.msra.mxu1 %v12304_v61 }
 0x726   : > { %8093 = vmatprep.subr.bf16.mxu1 %v12309_v62 }
 0x729   : > { %8094 = vmatpush1.bf16.msra.mxu1 %v12307_v42 }
 0x72a   : > { %8095 = vmatprep.subr.bf16.mxu1 %v12312_v47  ;;  %v12361_v47 = vld [vmem:[%s15850_s5 + $0x1100] ss:$16 sps:$4 sm:$0xff]  }
 0x72b   : > { %v7053_v56 = vpop.f32.mrb[72].mxu1 }
 0x72c   : > { %v15345_v60 = vadd.f32 %v7053_v56, %v15117_v19  ;;  %v7055_v23 = vpop.f32.mrb[73].mxu1  ;;  %v12316_v19 = vld [vmem:[%s15850_s5 + $0xf28] ss:$16 sps:$4 sm:$0xff]   ;;  %v12367_v56 = vld [vmem:[%s15850_s5 + $0x1140] ss:$16 sps:$4 sm:$0xff]  }
 0x72d   : > { %v15348_v2 = vadd.f32 %v7055_v23, %v15120_v8  ;;  %v7057_v33 = vpop.f32.mrb[74].mxu1  ;;  %8096 = vmatpush1.bf16.msra.mxu1 %v12310_v28  ;;  %v12321_v8 = vld [vmem:[%s15850_s5 + $0xf4c] ss:$16 sps:$4 sm:$0xff]   ;;  %v12372_v23 = vld [vmem:[%s15850_s5 + $0x1164] ss:$16 sps:$4 sm:$0xff]  }
 0x72e   : > { %v7058_v59 = vpop.f32.mrb[75].mxu1  ;;  %8097 = vmatprep.subr.bf16.mxu1 %v12315_v38  ;;  %v12366_v38 = vld [vmem:[%s15850_s5 + $0x1124] ss:$16 sps:$4 sm:$0xff]   ;;  %v12370_v33 = vld [vmem:[%s15850_s5 + $0x1160] ss:$16 sps:$4 sm:$0xff]  }
 0x72f   : > { %v12373_v59 = vld [vmem:[%s15850_s5 + $0x1180] ss:$16 sps:$4 sm:$0xff]  }
 0x731   : > { %8098 = vmatpush1.bf16.msra.mxu1 %v12313_v57  ;;  %v12375_v57 = vld [vmem:[%s15850_s5 + $0x1184] ss:$16 sps:$4 sm:$0xff]  }
 0x732   : > { %8099 = vmatprep.subr.bf16.mxu1 %v12318_v53  ;;  %v12378_v53 = vld [vmem:[%s15850_s5 + $0x11a4] ss:$16 sps:$4 sm:$0xff]  }
 0x735   : > { %8100 = vmatpush1.bf16.msra.mxu1 %v12316_v19  ;;  %v12376_v19 = vld [vmem:[%s15850_s5 + $0x11a0] ss:$16 sps:$4 sm:$0xff]  }
 0x736   : > { %8101 = vmatprep.subr.bf16.mxu1 %v12321_v8  ;;  %v12381_v8 = vld [vmem:[%s15850_s5 + $0x11c4] ss:$16 sps:$4 sm:$0xff]  }
 0x739   : > { %8102 = vmatpush1.bf16.msra.mxu1 %v12319_v45  ;;  %v12379_v45 = vld [vmem:[%s15850_s5 + $0x11c0] ss:$16 sps:$4 sm:$0xff]  }
 0x73a   : > { %8103 = vmatprep.subr.bf16.mxu1 %v12324_v21  ;;  %v12384_v21 = vld [vmem:[%s15850_s5 + $0x11e4] ss:$16 sps:$4 sm:$0xff]  }
 0x73d   : > { %8104 = vmatpush1.bf16.msra.mxu1 %v12322_v9  ;;  %v12382_v9 = vld [vmem:[%s15850_s5 + $0x11e0] ss:$16 sps:$4 sm:$0xff]  }
 0x73e   : > { %8105 = vmatprep.subr.bf16.mxu1 %v12327_v10  ;;  %v12387_v10 = vld [vmem:[%s15850_s5 + $0x100c] ss:$16 sps:$4 sm:$0xff]  }
 0x741   : > { %8106 = vmatpush1.bf16.msra.mxu1 %v12325_v12  ;;  %v12385_v12 = vld [vmem:[%s15850_s5 + $0x1008] ss:$16 sps:$4 sm:$0xff]  }
 0x742   : > { %8107 = vmatprep.subr.bf16.mxu1 %v12330_v13  ;;  %v12390_v13 = vld [vmem:[%s15850_s5 + $0x102c] ss:$16 sps:$4 sm:$0xff]  }
 0x745   : > { %8108 = vmatpush1.bf16.msra.mxu1 %v12328_v6  ;;  %v12388_v6 = vld [vmem:[%s15850_s5 + $0x1028] ss:$16 sps:$4 sm:$0xff]  }
 0x746   : > { %8109 = vmatprep.subr.bf16.mxu1 %v12333_v17  ;;  %v12393_v17 = vld [vmem:[%s15850_s5 + $0x104c] ss:$16 sps:$4 sm:$0xff]  }
 0x749   : > { %8110 = vmatpush1.bf16.msra.mxu1 %v12331_v37  ;;  %v12391_v37 = vld [vmem:[%s15850_s5 + $0x1048] ss:$16 sps:$4 sm:$0xff]  }
 0x74a   : > { %8111 = vmatprep.subr.bf16.mxu1 %v12336_v46  ;;  %v12396_v46 = vld [vmem:[%s15850_s5 + $0x106c] ss:$16 sps:$4 sm:$0xff]  }
 0x74d   : > { %8112 = vmatpush1.bf16.msra.mxu1 %v12334_v36  ;;  %v12394_v36 = vld [vmem:[%s15850_s5 + $0x1068] ss:$16 sps:$4 sm:$0xff]  }
 0x74e   : > { %8551 = vmatprep.subr.bf16.mxu1 %v12339_v50  ;;  %v12399_v50 = vld [vmem:[%s15850_s5 + $0x108c] ss:$16 sps:$4 sm:$0xff]  }
 0x750   : > { %8114 = vmatmul.mubr.bf16.vlgmr.msra.gmra.mrb[40].mxu1 %v15296_v5  ;;  %v12349_v5 = vld [vmem:[%s15850_s5 + $0x1080] ss:$16 sps:$4 sm:$0xff]  }
 0x751   : > { %8123 = vmatprep.mubr.bf16.mxu1 %v15186_v35  ;;  %8552 = vmatpush1.bf16.msra.mxu1 %v12337_v24  ;;  %v12348_v35 = vld [vmem:[%s15850_s5 + $0x1064] ss:$16 sps:$4 sm:$0xff]   ;;  %v12397_v24 = vld [vmem:[%s15850_s5 + $0x1088] ss:$16 sps:$4 sm:$0xff]  }
 0x752   : > { %8553 = vmatprep.subr.bf16.mxu1 %v12342_v44  ;;  %v12402_v44 = vld [vmem:[%s15850_s5 + $0x10ac] ss:$16 sps:$4 sm:$0xff]  }
 0x755   : > { %8554 = vmatpush1.bf16.msra.mxu1 %v12340_v54  ;;  %v12405_v54 = vld [vmem:[%s15850_s5 + $0x10cc] ss:$16 sps:$4 sm:$0xff]  }
 0x756   : > { %8555 = vmatprep.subr.bf16.mxu1 %v12345_v58  ;;  %v12403_v58 = vld [vmem:[%s15850_s5 + $0x10c8] ss:$16 sps:$4 sm:$0xff]  }
 0x758   : > { %8124 = vmatmul.mubr.bf16.gmra.mrb[88].mxu1 %v15286_v18  ;;  %v12354_v18 = vld [vmem:[%s15850_s5 + $0x10a4] ss:$16 sps:$4 sm:$0xff]  }
 0x759   : > { %8556 = vmatpush1.bf16.msra.mxu1 %v12343_v20  ;;  %8583 = vmatprep.mubr.bf16.mxu1 %v13891_v14  ;;  %v12408_v20 = vld [vmem:[%s15850_s5 + $0x10ec] ss:$16 sps:$4 sm:$0xff]  }
 0x75a   : > { %8557 = vmatprep.subr.bf16.mxu1 %v12348_v35  ;;  %v12406_v35 = vld [vmem:[%s15850_s5 + $0x10e8] ss:$16 sps:$4 sm:$0xff]  }
 0x75d   : > { %8558 = vmatpush1.bf16.msra.mxu1 %v12346_v7  ;;  %v12411_v7 = vld [vmem:[%s15850_s5 + $0x110c] ss:$16 sps:$4 sm:$0xff]  }
 0x75e   : > { %8559 = vmatprep.subr.bf16.mxu1 %v12351_v63 }
 0x761   : > { %8560 = vmatpush1.bf16.msra.mxu1 %v12349_v5 }
 0x762   : > { %8561 = vmatprep.subr.bf16.mxu1 %v12354_v18 }
 0x765   : > { %8562 = vmatpush1.bf16.msra.mxu1 %v12352_v26 }
 0x766   : > { %8563 = vmatprep.subr.bf16.mxu1 %v12357_v30 }
 0x769   : > { %8564 = vmatpush1.bf16.msra.mxu1 %v12355_v31  ;;  %v12409_v31 = vld [vmem:[%s15850_s5 + $0x1108] ss:$16 sps:$4 sm:$0xff]  }
 0x76a   : > { %8565 = vmatprep.subr.bf16.mxu1 %v12360_v41 }
 0x76b   : > { %v7528_v25 = vpop.f32.mrb[76].mxu1 }
 0x76c   : > { %v15451_v32 = vadd.f32 %v7528_v25, %v15231_v29  ;;  %v7530_v61 = vpop.f32.mrb[77].mxu1  ;;  %v12364_v29 = vld [vmem:[%s15850_s5 + $0x1120] ss:$16 sps:$4 sm:$0xff]   ;;  %v12420_v25 = vld [vmem:[%s15850_s5 + $0x116c] ss:$16 sps:$4 sm:$0xff]  }
 0x76d   : > { %v15454_v62 = vadd.f32 %v7530_v61, %v15234_v52  ;;  %v7532_v42 = vpop.f32.mrb[78].mxu1  ;;  %8566 = vmatpush1.bf16.msra.mxu1 %v12358_v22  ;;  %v12369_v52 = vld [vmem:[%s15850_s5 + $0x1144] ss:$16 sps:$4 sm:$0xff]   ;;  %v12414_v22 = vld [vmem:[%s15850_s5 + $0x112c] ss:$16 sps:$4 sm:$0xff]  }
 0x76e   : > { %v7533_v28 = vpop.f32.mrb[79].mxu1  ;;  %8567 = vmatprep.subr.bf16.mxu1 %v12363_v4  ;;  %v12415_v4 = vld [vmem:[%s15850_s5 + $0x1148] ss:$16 sps:$4 sm:$0xff]   ;;  %v12423_v42 = vld [vmem:[%s15850_s5 + $0x118c] ss:$16 sps:$4 sm:$0xff]  }
 0x76f   : > { %v12418_v61 = vld [vmem:[%s15850_s5 + $0x1168] ss:$16 sps:$4 sm:$0xff]   ;;  %v12426_v28 = vld [vmem:[%s15850_s5 + $0x11ac] ss:$16 sps:$4 sm:$0xff]  }
 0x771   : > { %8568 = vmatpush1.bf16.msra.mxu1 %v12361_v47  ;;  %v12421_v47 = vld [vmem:[%s15850_s5 + $0x1188] ss:$16 sps:$4 sm:$0xff]  }
 0x772   : > { %8569 = vmatprep.subr.bf16.mxu1 %v12366_v38  ;;  %v12424_v38 = vld [vmem:[%s15850_s5 + $0x11a8] ss:$16 sps:$4 sm:$0xff]  }
 0x775   : > { %8570 = vmatpush1.bf16.msra.mxu1 %v12364_v29  ;;  %v12429_v29 = vld [vmem:[%s15850_s5 + $0x11cc] ss:$16 sps:$4 sm:$0xff]  }
 0x776   : > { %8571 = vmatprep.subr.bf16.mxu1 %v12369_v52  ;;  %v12427_v52 = vld [vmem:[%s15850_s5 + $0x11c8] ss:$16 sps:$4 sm:$0xff]  }
 0x779   : > { %8572 = vmatpush1.bf16.msra.mxu1 %v12367_v56  ;;  %v12432_v56 = vld [vmem:[%s15850_s5 + $0x11ec] ss:$16 sps:$4 sm:$0xff]  }
 0x77a   : > { %8573 = vmatprep.subr.bf16.mxu1 %v12372_v23  ;;  %v12430_v23 = vld [vmem:[%s15850_s5 + $0x11e8] ss:$16 sps:$4 sm:$0xff]  }
 0x77d   : > { %8574 = vmatpush1.bf16.msra.mxu1 %v12370_v33 }
 0x77e   : > { %8575 = vmatprep.subr.bf16.mxu1 %v12375_v57 }
 0x781   : > { %8576 = vmatpush1.bf16.msra.mxu1 %v12373_v59 }
 0x782   : > { %8577 = vmatprep.subr.bf16.mxu1 %v12378_v53 }
 0x785   : > { %8578 = vmatpush1.bf16.msra.mxu1 %v12376_v19 }
 0x786   : > { %8579 = vmatprep.subr.bf16.mxu1 %v12381_v8 }
 0x789   : > { %8580 = vmatpush1.bf16.msra.mxu1 %v12379_v45 }
 0x78a   : > { %8581 = vmatprep.subr.bf16.mxu1 %v12384_v21 }
 0x78d   : > { %8582 = vmatpush1.bf16.msra.mxu1 %v12382_v9 }
 0x78e   : > { %8602 = vmatprep.subr.bf16.mxu1 %v12387_v10 }
 0x790   : > { %8584 = vmatmul.mubr.bf16.vlgmr.msra.gmra.mrb[48].mxu1 %v13895_v15 }
 0x791   : > { %8593 = vmatprep.mubr.bf16.mxu1 %v13868_v0  ;;  %8603 = vmatpush1.bf16.msra.mxu1 %v12385_v12 }
 0x792   : > { %8604 = vmatprep.subr.bf16.mxu1 %v12390_v13 }
 0x795   : > { %8605 = vmatpush1.bf16.msra.mxu1 %v12388_v6 }
 0x796   : > { %8606 = vmatprep.subr.bf16.mxu1 %v12393_v17 }
 0x798   : > { %8594 = vmatmul.mubr.bf16.gmra.mrb[92].mxu1 %v13880_v11 }
 0x799   : > { %8607 = vmatpush1.bf16.msra.mxu1 %v12391_v37  ;;  %8634 = vmatprep.mubr.bf16.mxu1 %v13891_v14  ;;  %v12400_v14 = vld [vmem:[%s15850_s5 + $0x10a8] ss:$16 sps:$4 sm:$0xff]  }
 0x79a   : > { %8608 = vmatprep.subr.bf16.mxu1 %v12396_v46 }
 0x79d   : > { %8609 = vmatpush1.bf16.msra.mxu1 %v12394_v36 }
 0x79e   : > { %8610 = vmatprep.subr.bf16.mxu1 %v12399_v50 }
 0x7a1   : > { %8611 = vmatpush1.bf16.msra.mxu1 %v12397_v24 }
 0x7a2   : > { %8612 = vmatprep.subr.bf16.mxu1 %v12402_v44 }
 0x7a5   : > { %8613 = vmatpush1.bf16.msra.mxu1 %v12400_v14 }
 0x7a6   : > { %8614 = vmatprep.subr.bf16.mxu1 %v12405_v54 }
 0x7a9   : > { %8615 = vmatpush1.bf16.msra.mxu1 %v12403_v58 }
 0x7aa   : > { %8616 = vmatprep.subr.bf16.mxu1 %v12408_v20 }
 0x7ab   : > { %v7579_v63 = vpop.f32.mrb[80].mxu1 }
 0x7ac   : > { %v7596_v5 = vadd.f32 %v7579_v63, %v15345_v60  ;;  %v7581_v18 = vpop.f32.mrb[81].mxu1  ;;  %v12412_v60 = vld [vmem:[%s15850_s5 + $0x1128] ss:$16 sps:$4 sm:$0xff]  }
 0x7ad   : > { %v7597_v26 = vadd.f32 %v7581_v18, %v15348_v2  ;;  %v7583_v30 = vpop.f32.mrb[82].mxu1  ;;  %8617 = vmatpush1.bf16.msra.mxu1 %v12406_v35  ;;  %v12417_v2 = vld [vmem:[%s15850_s5 + $0x114c] ss:$16 sps:$4 sm:$0xff]  }
 0x7ae   : > { %v7584_v41 = vpop.f32.mrb[83].mxu1  ;;  %8618 = vmatprep.subr.bf16.mxu1 %v12411_v7 }
 0x7af   : > { %v8711_v41 = vld [vmem:[%s15856_s11] sm:$0x1] }
 0x7b1   : > { %8619 = vmatpush1.bf16.msra.mxu1 %v12409_v31 }
 0x7b2   : > { %8620 = vmatprep.subr.bf16.mxu1 %v12414_v22  ;;  %v15627_v22 = vld [vmem:[#allocation2 + $0x68] sm:$0xff] }
 0x7b5   : > { %8621 = vmatpush1.bf16.msra.mxu1 %v12412_v60  ;;  %v8677_v60 = vsub.s32 2, %v13525_v49 }
 0x7b6   : > { %8622 = vmatprep.subr.bf16.mxu1 %v12417_v2  ;;  %v8681_v2 = vsub.s32 3, %v13525_v49 }
 0x7b9   : > { %8623 = vmatpush1.bf16.msra.mxu1 %v12415_v4 }
 0x7ba   : > { %8624 = vmatprep.subr.bf16.mxu1 %v12420_v25 }
 0x7bd   : > { %8625 = vmatpush1.bf16.msra.mxu1 %v12418_v61 }
 0x7be   : > { %8626 = vmatprep.subr.bf16.mxu1 %v12423_v42 }
 0x7c1   : > { %8627 = vmatpush1.bf16.msra.mxu1 %v12421_v47 }
 0x7c2   : > { %8628 = vmatprep.subr.bf16.mxu1 %v12426_v28 }
 0x7c5   : > { %8629 = vmatpush1.bf16.msra.mxu1 %v12424_v38 }
 0x7c6   : > { %8630 = vmatprep.subr.bf16.mxu1 %v12429_v29 }
 0x7c9   : > { %8631 = vmatpush1.bf16.msra.mxu1 %v12427_v52 }
 0x7ca   : > { %8632 = vmatprep.subr.bf16.mxu1 %v12432_v56 }
 0x7cd   : > { %8633 = vmatpush1.bf16.msra.mxu1 %v12430_v23 }
 0x7d0   : > { %8635 = vmatmul.mubr.bf16.vlgmr.msra.gmra.mrb[40].mxu1 %v13895_v15 }
 0x7d1   : > { %8644 = vmatprep.mubr.bf16.mxu1 %v13868_v0  ;;  %v8665_v0 = vld [vmem:[%s15851_s6] sm:$0xf] }
 0x7d2   : > { %v8678_v4 = vrot.slane %v8665_v0, %v8677_v60  ;;  %v8682_v61 = vrot.slane %v8665_v0, %v8681_v2  ;;  %v12453_v60 = vld [vmem:[%s15852_s7 + $0xd0] sm:$0xff]  }
 0x7d3   : > { %v12454_v2 = vld [vmem:[%s15852_s7 + $0x90] sm:$0xff]  }
 0x7d8   : > { %8645 = vmatmul.mubr.bf16.gmra.mrb[96].mxu1 %v13880_v11  ;;  %v8670_v11 = vrot.slane %v8665_v0, %v3134_v40 }
 0x7eb   : > { %v8074_v33 = vpop.f32.mrb[84].mxu1 }
 0x7ec   : > { %v8140_v57 = vadd.f32 %v8074_v33, %v15451_v32  ;;  %v8076_v59 = vpop.f32.mrb[85].mxu1 }
 0x7ed   : > { %v8141_v53 = vadd.f32 %v8076_v59, %v15454_v62  ;;  %v8078_v19 = vpop.f32.mrb[86].mxu1  ;;  %v8674_v62 = vrot.slane %v8665_v0, %v3138_v51 }
 0x7ee   : > { %v8079_v8 = vpop.f32.mrb[87].mxu1 }
 0x82b   : > { %v8125_v45 = vpop.f32.mrb[88].mxu1 }
 0x82c   : > { %v15608_v21 = vadd.f32 %v8125_v45, %v7596_v5  ;;  %v8127_v9 = vpop.f32.mrb[89].mxu1 }
 0x82d   : > { %v15610_v10 = vadd.f32 %v8127_v9, %v7597_v26  ;;  %v8129_v12 = vpop.f32.mrb[90].mxu1 }
 0x82e   : > { %v8130_v15 = vpop.f32.mrb[91].mxu1 }
 0x863   : > { %v8585_v32 = vpop.f32.mrb[48].mxu1 }
 0x864   : > { %v11029_v13 = vadd.f32 %v8585_v32, %v15068_v1  ;;  %v8587_v6 = vpop.f32.mrb[49].mxu1 }
 0x865   : > { %v11030_v17 = vadd.f32 %v8587_v6, %v15073_v27  ;;  %v8589_v37 = vpop.f32.mrb[50].mxu1 }
 0x866   : > { %v8687_v46 = vadd.f32 %v11029_v13, %v8670_v11  ;;  %v11031_v36 = vadd.f32 %v8589_v37, %v15078_v39  ;;  %v8591_v50 = vpop.f32.mrb[51].mxu1  ;;  %v12433_v13 = vld [vmem:[%s15852_s7 + $0x40] sm:$0xff]   ;;  %v12437_v37 = vld [vmem:[%s15852_s7 + $0x50] sm:$0xff]  }
 0x867   : > { %v8688_v24 = vadd.f32 %v11030_v17, %v8674_v62  ;;  %v11032_v44 = vadd.f32 %v8591_v50, %v15080_v55  ;;  %v12436_v17 = vld [vmem:[%s15852_s7 + $0x8] sm:$0xff]   ;;  %v12440_v50 = vld [vmem:[%s15852_s7 + $0x18] sm:$0xff]  }
 0x868   : > { %v8691_v14 = vadd.f32 %v11031_v36, %v8670_v11  ;;  %v8699_v40 = vmax.f32 %v8687_v46, 0.0  ;;  %v12438_v46 = vld [vmem:[%s15852_s7 + $0x10] sm:$0xff]   ;;  %v12439_v36 = vld [vmem:[%s15852_s7 + $0x58] sm:$0xff]  }
 0x869   : > { %v8692_v54 = vadd.f32 %v11032_v44, %v8674_v62  ;;  %v8700_v20 = vmax.f32 %v8688_v24, 0.0  ;;  %v12441_v24 = vld [vmem:[%s15852_s7 + $0x60] sm:$0xff]  }
 0x86a   : > { %v8703_v58 = vmax.f32 %v8691_v14, 0.0  ;;  %v12442_v44 = vld [vmem:[%s15852_s7 + $0x20] sm:$0xff]   ;;  %v12443_v14 = vld [vmem:[%s15852_s7 + $0x68] sm:$0xff]  }
 0x86b   : > { %v8704_v35 = vmax.f32 %v8692_v54, 0.0  ;;  %v8595_v51 = vpop.f32.mrb[92].mxu1  ;;  %v12444_v54 = vld [vmem:[%s15852_s7 + $0x28] sm:$0xff]  }
 0x86c   : > { %v11023_v7 = vpack.c.bf16 %v8703_v58, %v8699_v40  ;;  %v8661_v1 = vadd.f32 %v8595_v51, %v8140_v57  ;;  %v8597_v63 = vpop.f32.mrb[93].mxu1  ;;  %v12445_v40 = vld [vmem:[%s15852_s7 + $0x70] sm:$0xff]   ;;  %v12449_v51 = vld [vmem:[%s15852_s7 + $0xc0] sm:$0xff]  }
 0x86d   : > { %v8662_v5 = vadd.f32 %v8597_v63, %v8141_v53  ;;  %v8599_v27 = vpop.f32.mrb[94].mxu1  ;;  %v11021_v18 = vpack.c.bf16 %v8704_v35, %v8700_v20  ;;  %v12446_v58 = vld [vmem:[%s15852_s7 + $0x30] sm:$0xff]   ;;  %v12447_v20 = vld [vmem:[%s15852_s7 + $0x78] sm:$0xff]  }
 0x86e   : > { %v8695_v26 = vadd.f32 %v8670_v11, %v8661_v1  ;;  %v8600_v30 = vpop.f32.mrb[95].mxu1  ;;  %v12448_v35 = vld [vmem:[%s15852_s7 + $0x38] sm:$0xff]  }
 0x86f   : > { %v8696_v39 = vadd.f32 %v8674_v62, %v8662_v5  ;;  %11022 = vmatprep.subr.bf16.mxu0 %v11021_v18  ;;  %v12451_v30 = vld [vmem:[%s15852_s7 + $0xc8] sm:$0xff]  }
 0x870   : > { %11024 = vmatpush1.bf16.msra.mxu0 %v11023_v7  ;;  %v8707_v55 = vmax.f32 %v8695_v26, 0.0  ;;  %v12450_v26 = vld [vmem:[%s15852_s7 + $0x80] sm:$0xff]  }
 0x871   : > { %v8708_v31 = vmax.f32 %v8696_v39, 0.0 }
 0x873   : > { %8720 = vmatprep.subr.mxu0 %v8708_v31 }
 0x874   : > { %8721 = vmatpush1.msra.mxu0 %v8707_v55 }
 0x875   : > { %10902 = vmatmul.mubr.msk.f32.vlgmr.msra.gmra.mrb[88].mxu0 %vm8712_vm11, %v8711_v41 }
 0x876   : > { %8851 = vmatprep.mubr.f32.mxu0 %v15627_v22 }
 0x8a3   : > { %v8636_v25 = vpop.f32.mrb[40].mxu1 }
 0x8a4   : > { %v11033_v42 = vadd.f32 %v8636_v25, %v14936_v3  ;;  %v8638_v47 = vpop.f32.mrb[41].mxu1  ;;  %v12456_v25 = vld [vmem:[%s15852_s7 + $0x98] sm:$0xff]  }
 0x8a5   : > { %v11034_v28 = vadd.f32 %v8638_v47, %v14941_v34  ;;  %v8640_v38 = vpop.f32.mrb[42].mxu1  ;;  %v12459_v47 = vld [vmem:[%s15852_s7 + $0xe8] sm:$0xff]  }
 0x8a6   : > { %v8689_v29 = vadd.f32 %v11033_v42, %v8678_v4  ;;  %v11035_v52 = vadd.f32 %v8640_v38, %v14946_v16  ;;  %v8642_v56 = vpop.f32.mrb[43].mxu1  ;;  %v12458_v42 = vld [vmem:[%s15852_s7 + $0xa0] sm:$0xff]   ;;  %v12461_v38 = vld [vmem:[%s15852_s7 + $0xf0] sm:$0xff]  }
 0x8a7   : > { %v8690_v23 = vadd.f32 %v11034_v28, %v8682_v61  ;;  %v11036_v33 = vadd.f32 %v8642_v56, %v14948_v43  ;;  %v12460_v28 = vld [vmem:[%s15852_s7 + $0xa8] sm:$0xff]   ;;  %v12464_v56 = vld [vmem:[%s15852_s7 + $0xb8] sm:$0xff]  }
 0x8a8   : > { %v8693_v57 = vadd.f32 %v11035_v52, %v8678_v4  ;;  %v8701_v53 = vmax.f32 %v8689_v29, 0.0  ;;  %v12462_v29 = vld [vmem:[%s15852_s7 + $0xb0] sm:$0xff]   ;;  %v12463_v52 = vld [vmem:[%s15852_s7 + $0xf8] sm:$0xff]  }
 0x8a9   : > { %v8694_v59 = vadd.f32 %v11036_v33, %v8682_v61  ;;  %v8702_v8 = vmax.f32 %v8690_v23, 0.0 }
 0x8aa   : > { %v8705_v19 = vmax.f32 %v8693_v57, 0.0 }
 0x8ab   : > { %v8706_v45 = vmax.f32 %v8694_v59, 0.0  ;;  %v8646_v9 = vpop.f32.mrb[96].mxu1 }
 0x8ac   : > { %v11027_v12 = vpack.c.bf16 %v8705_v19, %v8701_v53  ;;  %v8663_v3 = vadd.f32 %v8646_v9, %v15608_v21  ;;  %v8648_v15 = vpop.f32.mrb[97].mxu1  ;;  %v12434_v21 = vld [vmem:[%s15852_s7] sm:$0xff]  }
 0x8ad   : > { %v8664_v34 = vadd.f32 %v8648_v15, %v15610_v10  ;;  %v8650_v0 = vpop.f32.mrb[98].mxu1  ;;  %v11025_v11 = vpack.c.bf16 %v8706_v45, %v8702_v8  ;;  %v12435_v10 = vld [vmem:[%s15852_s7 + $0x48] sm:$0xff]  }
 0x8ae   : > { %v8697_v16 = vadd.f32 %v8678_v4, %v8663_v3  ;;  %v8651_v32 = vpop.f32.mrb[99].mxu1  ;;  %v12455_v4 = vld [vmem:[%s15852_s7 + $0xd8] sm:$0xff]   ;;  %v12465_v3 = vld [vmem:[%s15854_s9] sm:$0xff]   ;;  %v12466_v15 = vld [vmem:[%s15854_s9 + $0x8] sm:$0xff]  }
 0x8af   : > { %v8698_v62 = vadd.f32 %v8682_v61, %v8664_v34  ;;  %11026 = vmatprep.subr.bf16.mxu0 %v11025_v11  ;;  %v12457_v61 = vld [vmem:[%s15852_s7 + $0xe0] sm:$0xff]   ;;  %v12467_v34 = vld [vmem:[%s15854_s9 + $0x10] sm:$0xff]   ;;  %v12468_v0 = vld [vmem:[%s15854_s9 + $0x18] sm:$0xff]  }
 0x8b0   : > { %11028 = vmatpush1.bf16.msra.mxu0 %v11027_v12  ;;  %v8709_v6 = vmax.f32 %v8697_v16, 0.0  ;;  %v12469_v11 = vld [vmem:[%s15854_s9 + $0x20] sm:$0xff]   ;;  %v12470_v16 = vld [vmem:[%s15854_s9 + $0x28] sm:$0xff]   ;;  %v12471_v32 = vld [vmem:[%s15854_s9 + $0x30] sm:$0xff]  }
 0x8b1   : > { %v8710_v43 = vmax.f32 %v8698_v62, 0.0  ;;  %v12472_v62 = vld [vmem:[%s15854_s9 + $0x38] sm:$0xff]  }
 0x8b3   : > { %8791 = vmatprep.subr.mxu0 %v8710_v43 }
 0x8b4   : > { %8792 = vmatpush1.msra.mxu0 %v8709_v6 }
 0x8b5   : > { %10903 = vmatmul.mubr.msk.f32.vlgmr.msra.gmra.mrb[90].mxu0 %vm8712_vm11, %v8711_v41  ;;  %10948 = vmatprep.subr.bf16.mxu0 %v12433_v13  ;;  %v12452_v41 = vld [vmem:[%s15852_s7 + $0x88] sm:$0xff]  }
 0x8b6   : > { %10949 = vmatpush3.bf16.msra.mxu0 %v12434_v21 }
 0x8b7   : > { %10950 = vmatprep.subr.bf16.mxu0 %v12435_v10 }
 0x8ba   : > { %10951 = vmatpush3.bf16.msra.mxu0 %v12436_v17 }
 0x8bb   : > { %10952 = vmatprep.subr.bf16.mxu0 %v12437_v37 }
 0x8be   : > { %10953 = vmatpush3.bf16.msra.mxu0 %v12438_v46 }
 0x8bf   : > { %10954 = vmatprep.subr.bf16.mxu0 %v12439_v36 }
 0x8c2   : > { %10955 = vmatpush3.bf16.msra.mxu0 %v12440_v50 }
 0x8c3   : > { %10956 = vmatprep.subr.bf16.mxu0 %v12441_v24 }
 0x8c6   : > { %10957 = vmatpush3.bf16.msra.mxu0 %v12442_v44 }
 0x8c7   : > { %10958 = vmatprep.subr.bf16.mxu0 %v12443_v14  ;;  %v12562_v14 = vmov 1966171168  }
 0x8ca   : > { %10959 = vmatpush3.bf16.msra.mxu0 %v12444_v54 }
 0x8cb   : > { %10960 = vmatprep.subr.bf16.mxu0 %v12445_v40 }
 0x8ce   : > { %10961 = vmatpush3.bf16.msra.mxu0 %v12446_v58 }
 0x8cf   : > { %10962 = vmatprep.subr.bf16.mxu0 %v12447_v20 }
 0x8d2   : > { %10963 = vmatpush3.bf16.msra.mxu0 %v12448_v35 }
 0x8d3   : > { %10970 = vmatprep.subr.bf16.mxu0 %v12449_v51 }
 0x948   : > { %v15690_v7 = vpop.f32.mrb[88].mxu0 }
 0x949   : > { %v8858_v1 = vmul.f32 %v15690_v7, %v15690_v7  ;;  %v8919_v63 = vpack.c.bf16 %v15690_v7, %v15690_v7  ;;  %v15696_v5 = vpop.f32.mrb[89].mxu0 }
 0x94a   : > { %v8859_v27 = vmul.f32 %v15696_v5, %v15696_v5  ;;  %v8920_v18 = vpack.c.bf16 %v15696_v5, %v15696_v5 }
 0x94b   : > { %v8863_v39 = vsel %vm8862_vm12, %v8858_v1, 0.0 }
 0x94c   : > { %9212 = vmatprep.mubr.bf16.mxu0 %v8920_v18  ;;  %v8864_v31 = vsel %vm8862_vm12, %v8859_v27, 0.0 }
 0x94d   : > { %9213 = vmatmul.mubr.bf16.vlgmr.msra.gmra.mrb[92].mxu0 %v8919_v63  ;;  %v8865_v55 = vadd.f32 %v8864_v31, %v8863_v39 }
 0x94e   : > { %10971 = vmatpush3.bf16.msra.mxu0 %v12450_v26 }
 0x94f   : > { %10972 = vmatprep.subr.bf16.mxu0 %v12451_v30 }
 0x952   : > { %10973 = vmatpush3.bf16.msra.mxu0 %v12452_v41 }
 0x953   : > { %10974 = vmatprep.subr.bf16.mxu0 %v12453_v60 }
 0x956   : > { %10975 = vmatpush3.bf16.msra.mxu0 %v12454_v2 }
 0x957   : > { %10976 = vmatprep.subr.bf16.mxu0 %v12455_v4 }
 0x95a   : > { %10977 = vmatpush3.bf16.msra.mxu0 %v12456_v25 }
 0x95b   : > { %10978 = vmatprep.subr.bf16.mxu0 %v12457_v61 }
 0x95e   : > { %10979 = vmatpush3.bf16.msra.mxu0 %v12458_v42 }
 0x95f   : > { %10980 = vmatprep.subr.bf16.mxu0 %v12459_v47 }
 0x962   : > { %10981 = vmatpush3.bf16.msra.mxu0 %v12460_v28 }
 0x963   : > { %10982 = vmatprep.subr.bf16.mxu0 %v12461_v38 }
 0x966   : > { %10983 = vmatpush3.bf16.msra.mxu0 %v12462_v29 }
 0x967   : > { %10984 = vmatprep.subr.bf16.mxu0 %v12463_v52 }
 0x96a   : > { %10985 = vmatpush3.bf16.msra.mxu0 %v12464_v56 }
 0x96b   : > { %11001 = vmatprep.subr.bf16.mxu0 %v15627_v22 }
 0x988   : > { %v8853_v23 = vpop.f32.mrb[90].mxu0 }
 0x989   : > { %v8860_v33 = vmul.f32 %v8853_v23, %v8853_v23  ;;  %v8855_v57 = vpop.f32.mrb[91].mxu0  ;;  %v8921_v19 = vpack.c.bf16 %v8853_v23, %v8853_v23 }
 0x98a   : > { %v8922_v59 = vpack.c.bf16 %v8855_v57, %v8855_v57  ;;  %v8861_v53 = vmul.f32 %v8855_v57, %v8855_v57 }
 0x98b   : > { %v8866_v8 = vsel %vm8862_vm12, %v8860_v33, 0.0 }
 0x98c   : > { %9252 = vmatprep.mubr.bf16.mxu0 %v8922_v59  ;;  %v8867_v45 = vadd.f32 %v8866_v8, %v8865_v55  ;;  %v8868_v9 = vsel %vm8862_vm12, %v8861_v53, 0.0 }
 0x98d   : > { %9253 = vmatmul.mubr.bf16.vlgmr.msra.gmra.mrb[96].mxu0 %v8921_v19 }
 0x98e   : > { %v8869_v12 = vadd.f32 %v8868_v9, %v8867_v45  ;;  %11002 = vmatpush3.bf16.msra.mxu0 %v12465_v3  ;;  %11017 = vmatprep.mubr.msk.bf16.mxu0 %vm12561_vm13, %v15627_v22 }
 0x98f   : > { %11003 = vmatprep.subr.bf16.mxu0 %v15627_v22 }
 0x990   : > { %8870 = vadd.xlane.f32.xlu0 %v8869_v12 }
 0x992   : > { %11004 = vmatpush3.bf16.msra.mxu0 %v12466_v15 }
 0x993   : > { %11005 = vmatprep.subr.bf16.mxu0 %v15627_v22 }
 0x996   : > { %11006 = vmatpush3.bf16.msra.mxu0 %v12467_v34 }
 0x997   : > { %11007 = vmatprep.subr.bf16.mxu0 %v15627_v22 }
 0x99a   : > { %11008 = vmatpush3.bf16.msra.mxu0 %v12468_v0 }
 0x99b   : > { %11009 = vmatprep.subr.bf16.mxu0 %v15627_v22 }
 0x99e   : > { %11010 = vmatpush3.bf16.msra.mxu0 %v12469_v11 }
 0x99f   : > { %11011 = vmatprep.subr.bf16.mxu0 %v15627_v22 }
 0x9a2   : > { %11012 = vmatpush3.bf16.msra.mxu0 %v12470_v16 }
 0x9a3   : > { %11013 = vmatprep.subr.bf16.mxu0 %v15627_v22 }
 0x9a6   : > { %11014 = vmatpush3.bf16.msra.mxu0 %v12471_v32 }
 0x9a7   : > { %11015 = vmatprep.subr.bf16.mxu0 %v15627_v22  ;;  %v8892_v22 = vunpack.c.l.s4 %v12562_v14 }
 0x9a9   : > { %v8893_v54 = vunpack.c.0.s8 %v8892_v22 }
 0x9aa   : > { %11016 = vmatpush3.bf16.msra.mxu0 %v12472_v62 }
 0x9ab   : > { %v8896_v58 = vsub.s32 %v8893_v54, %v13525_v49 }
 0xa1d   : > { %v8871_v43 = vpop.xlane.xlu0 %8870 }
 0xa1e   : > { %12473 = vrsqrt.f32 %v8871_v43  ;;  %vm8874_vm14 = vcmp.eq.f32.partialorder %v8871_v43, inf  ;;  %v8877_v36 = vand.u32 2147483648, %v8871_v43  ;;  %vm8876_vm15 = vcmp.eq.f32.partialorder %v8871_v43, 0.0 }
 0xa20   : > { %v10964_v13 = vpop.f32.mrb[92].mxu0 }
 0xa21   : > { %v10965_v6 = vpop.f32.mrb[93].mxu0 }
 0xa22   : > { %v10966_v21 = vadd.f32 %v10965_v6, %v10964_v13  ;;  %v10967_v10 = vpop.f32.mrb[94].mxu0 }
 0xa23   : > { %v10968_v17 = vpop.f32.mrb[95].mxu0 }
 0xa28   : > { %v12474_v37 = vpop.eup %12473 }
 0xa29   : > { %v8873_v46 = vmul.f32 %v12474_v37, %v8871_v43 }
 0xa2b   : > { %v8875_v50 = vsel %vm8874_vm14, %v8871_v43, %v8873_v46 }
 0xa2c   : > { %v8878_v24 = vsel %vm8876_vm15, %v8877_v36, %v8875_v50 }
 0xa2d   : > { %v8879_v44 = vmax.f32 %v8878_v24, 1e-12 }
 0xa2f   : > { %12475 = vrcp.f32 %v8879_v44 }
 0xa39   : > { %v12476_v40 = vpop.eup %12475 }
 0xa3a   : > { %v8881_v20 = vmul.f32 %v12476_v40, %v15690_v7  ;;  %v8882_v35 = vmul.f32 %v12476_v40, %v15696_v5  ;;  %v8883_v51 = vmul.f32 %v12476_v40, %v8853_v23  ;;  %v8884_v1 = vmul.f32 %v12476_v40, %v8855_v57  ;;  %v8987_v7 = vld [vmem:[%s15853_s8] sm:$0x1] }
 0xa3b   : > { %v9215_v31 = vadd.f32 %v10966_v21, %v8987_v7 }
 0xa3c   : > { %v8889_v63 = vcombine.low %v8881_v20, %v8882_v35  ;;  %v8890_v27 = vcombine.low %v8883_v51, %v8884_v1 }
 0xa3e   : > { %v8897_v18 = vrot.slane %v8889_v63, %v8896_v58  ;;  %v8904_v26 = vrot.slane %v8890_v27, %v8896_v58 }
 0xa40   : > { %v8905_v30 = vcombine.low %v8897_v18, %v8904_v26 }
 0xa42   : > { %v8912_v49 = vrot.slane %v8905_v30, %v8896_v58 }
 0xa44   : > { %8918 = vst.msk [vmem:[%s448_s17] sm:$0xf] %vm8916_vm0, %v8912_v49  ;;  %s9373_s17 = scalar_lea.sflag [#allocation6], %s438_s24 }
 0xa60   : > { %v10986_v5 = vpop.f32.mrb[96].mxu0 }
 0xa61   : > { %v10987_v39 = vpop.f32.mrb[97].mxu0 }
 0xa62   : > { %v10988_v55 = vadd.f32 %v10987_v39, %v10986_v5  ;;  %v10989_v41 = vpop.f32.mrb[98].mxu0 }
 0xa63   : > { %v10990_v60 = vpop.f32.mrb[99].mxu0 }
 0xa64   : > { %v9255_v2 = vadd.f32 %v10988_v55, %v9215_v31 }
 0xa66   : > { %v9260_v4 = vmax.f32 %v9255_v2, 0.0 }
 0xa68   : > { %v9261_v25 = vpack.c.bf16 %v9260_v4, %v9260_v4 }
 0xa6a   : > { %11018 = vmatmul.mubr.bf16.vlgmr.msra.gmra.mrb[100].mxu0 %v9261_v25 }
 0xb3d   : > { %v9361_v61 = vpop.f32.mrb[100].mxu0 }
 0xb3e   : > { %v9362_v42 = vadd.f32 %v9361_v61, %v9278_v48  ;;  %v11019_v47 = vpop.f32.mrb[101].mxu0 }
 0xb3f   : > { %v9364_v28 = vpop.f32.mrb[102].mxu0 }
 0xb40   : > { %9367 = vst [vmem:[%s439_s0] sm:$0x1] %v9362_v42  ;;  %v11020_v38 = vpop.f32.mrb[103].mxu0 }
 0xb41   : > { %12508 = shalt.err (!%p12505_p3)
}
 0xb42   : > { %s12509_s24 = scalar_lea.hbm %s15803_s15, 16  ;;  %s12513_s0 = scalar_lea.hbm %s15858_s13, 32 }
 0xb43   : > { %p12510_p4 = scmp.ne.s32.totalorder %s15803_s15, %s12509_s24  ;;  %p12514_p9 = scmp.lt.u32.totalorder %s15803_s15, %s15858_s13 }
 0xb44   : > { %p12515_p10 = scmp.lt.u32.totalorder %s12513_s0, %s12509_s24  ;;  %p12517_p12 = scmp.lt.u32.totalorder %s12509_s24, %s15803_s15 }
 0xb45   : > { %p12511_p7 = pnand %p12510_p4, %p12672_p5 }
 0xb46   : > { %p12516_p11 = por %p12515_p10, %p12514_p9 }
 0xb47   : > { %p12512_p8 = pneg %p12511_p7 }
 0xb48   : > { %p12518_p13 = por %p12517_p12, %p12516_p11 }
 0xb4a   : > { %p12519_p0 = pnand %p12518_p13, %p12512_p8 }
 0xb4c   : > { %12522 = shalt.err (!%p12519_p0)
}
 0xb4d   : > { %11253 = dma.vmem_to_hbm [thread:$0]  (%p12672_p5), %s15805_s21, 16, %s15803_s15, %s9373_s17  }
 0xb4e PF: > { %p11259_p1 = scmp.ge.s32.totalorder %s12557_s28, 2  ;;  %s9407_s29 = sand.u32 1, %s12545_s25  }
 0xb4f   : > { %s9408_s16 = scalar_lea.sflag [#allocation6], %s9407_s29 }
 0xb50   : > { %p11256_p2 = pnand %p11259_p1, %p12676_p6 }
 0xb52   : > { %12540 = dma.done.wait (!%p11256_p2), %s9408_s16, 16  }
 0xb53   : > { %12542 = vsyncadd (!%p11256_p2), %s9408_s16, 4294967280  ;;  %s15869_s28 = sld [smem:[#allocation9_spill]]  ;;  %s15870_s20 = sld [smem:[#allocation8_spill]] }
 0xb54   : > { %s15871_s27 = sld [smem:[#allocation10_spill]]  ;;  %s15872_s25 = smov %s12549_s26 }
 0xb59   : > { %p24_p3 = scmp.ge.s32.totalorder %s15869_s28, 4   ;;  %s15873_s26 = smov %s15870_s20 }
 0xb5b   :  { %26 = sbr.rel (!%p24_p3) target bundleno = 5 (0x5), region = 131 }
 0xb62   :  { %9412 = vsyncpa [#allocation6], 1 }
 0xb63   :  { %9414 = vsyncpa [#allocation6 + $0x1], 1 }

</bundles_post_ra>
